<compile_context>
chip_gen: v5e
topology: v5e:2x2
jax: 0.10.0
libtpu: 0.0.40
codegen_flags: <defaults>
</compile_context>

<pallas_src>
import functools

import jax
import jax.numpy as jnp
from jax import lax
from jax.experimental import pallas as pl
from jax.experimental.pallas import tpu as pltpu

LANE = 128


# ---------------------------------------------------------------------------
# Fused Pallas kernel: one grid step == `batch_tile` images
# ---------------------------------------------------------------------------
def _bottleneck_kernel(x_ref, w1_ref, b1_ref, w2_ref, b2_ref, w3_ref, b3_ref,
                       ws_ref, bs_ref, o_ref, *, H, W, has_projection):
    B, _, _, Cin = x_ref.shape
    Cp = w1_ref.shape[-1]            # mid channels, padded to a multiple of 128
    Cout = w3_ref.shape[-1]
    M = B * H * W
    cd = x_ref.dtype                 # MXU compute dtype (bf16 by default)

    x = x_ref[...].reshape(M, Cin)

    # ---- shortcut FIRST, parked in o_ref so x dies before conv2/conv3 ------
    if has_projection:
        sc = jnp.dot(x, ws_ref[...], preferred_element_type=jnp.float32) + bs_ref[...]
    else:
        sc = x.astype(jnp.float32)   # identity (Cin == Cout)
    o_ref[...] = sc.reshape(B, H, W, Cout).astype(o_ref.dtype)

    # ---- conv1 (1x1) + folded BN + ReLU -------------------------------------
    y1 = jnp.dot(x, w1_ref[...], preferred_element_type=jnp.float32) + b1_ref[...]
    y1 = jnp.maximum(y1, 0.0).reshape(B, H, W, Cp)            # f32, lane-dense

    # ---- conv2 (3x3, pad=1, stride=1): im2col along kx + 3 row matmuls ------
    # kx taps: lane-concatenate [y1[w-1] | y1[w] | y1[w+1]]  -> (B,H,W,3*Cp).
    # Only these two +/-1 shifts touch the sublane (W) axis.
    zw = jnp.zeros((B, H, 1, Cp), jnp.float32)
    left = jnp.concatenate([zw, y1[:, :, :W - 1, :]], axis=2)   # y1[.., w-1, :]  (kx=0)
    right = jnp.concatenate([y1[:, :, 1:, :], zw], axis=2)      # y1[.., w+1, :]  (kx=2)
    p = jnp.concatenate([left, y1, right], axis=-1).astype(cd)  # (B, H, W, 3*Cp)

    # ky taps: shifts along H are leading-dim concats/slices (free, no relayout).
    zh = jnp.zeros((B, 1, W, 3 * Cp), cd)
    up = jnp.concatenate([zh, p[:, :H - 1, :, :]], axis=1)      # row h-1  (ky=0)
    down = jnp.concatenate([p[:, 1:, :, :], zh], axis=1)        # row h+1  (ky=2)

    # Three K=3*Cp, N=Cp MXU matmuls (instead of nine K=Cmid, N=Cmid ones).
    acc = jnp.dot(up.reshape(M, 3 * Cp), w2_ref[0], preferred_element_type=jnp.float32)
    acc += jnp.dot(p.reshape(M, 3 * Cp), w2_ref[1], preferred_element_type=jnp.float32)
    acc += jnp.dot(down.reshape(M, 3 * Cp), w2_ref[2], preferred_element_type=jnp.float32)
    y2 = jnp.maximum(acc + b2_ref[...], 0.0).astype(cd)         # (M, Cp)

    # ---- conv3 (1x1) + folded BN, residual add (shortcut in o_ref), ReLU ----
    y3 = jnp.dot(y2, w3_ref[...], preferred_element_type=jnp.float32) + b3_ref[...]
    out = jnp.maximum(y3.reshape(B, H, W, Cout) + o_ref[...], 0.0)
    o_ref[...] = out.astype(o_ref.dtype)


# ---------------------------------------------------------------------------
# Parameter prep: fold eval-mode BatchNorm into conv weights + f32 bias
# ---------------------------------------------------------------------------
def _fold_bn(w_hwio, bn, eps=1e-5):
    scale = bn["gamma"] / jnp.sqrt(bn["var"] + eps)             # (Cout,)
    return w_hwio * scale, bn["beta"] - bn["mean"] * scale      # weight, bias (Cout,)


def _round_up(v, m):
    return ((v + m - 1) // m) * m


def _pick_batch_tile(n, per_image_bytes, budget_bytes=12 * 1024 * 1024):
    """Largest divisor of n that fits a conservative VMEM budget, preferring >= 2 grid steps."""
    divisors = [d for d in range(1, n + 1) if n % d == 0]
    fitting = [d for d in divisors if d * per_image_bytes <= budget_bytes] or [1]
    multi_step = [d for d in fitting if n // d >= 2]
    return max(multi_step) if multi_step else max(fitting)


# ---------------------------------------------------------------------------
# Pallas forward (NCHW in / NCHW out, like the PyTorch module)
# ---------------------------------------------------------------------------
def forward_pallas(x_nchw, params, *, compute_dtype=jnp.bfloat16, batch_tile=None):
    if params["stride"] != 1:
        # TODO(synk): strided conv2 / strided projection shortcut not implemented.
        raise NotImplementedError("fused Pallas bottleneck kernel supports stride=1 only")

    cd = compute_dtype
    x = jnp.transpose(x_nchw, (0, 2, 3, 1))                     # NCHW -> NHWC
    N, H, W, Cin = x.shape

    w1, b1 = _fold_bn(params["w1"], params["bn1"])
    w2, b2 = _fold_bn(params["w2"], params["bn2"])
    w3, b3 = _fold_bn(params["w3"], params["bn3"])
    Cmid = w1.shape[-1]
    Cout = w3.shape[-1]
    Cp = max(LANE, _round_up(Cmid, LANE))                       # lane-dense mid channels

    # Zero-padded / reshaped weights: pad channels stay exactly zero end-to-end.
    w1p = jnp.zeros((Cin, Cp), jnp.float32).at[:, :Cmid].set(w1.reshape(Cin, Cmid))
    b1p = jnp.zeros((1, Cp), jnp.float32).at[:, :Cmid].set(b1[None, :])
    w2p = jnp.zeros((3, 3, Cp, Cp), jnp.float32).at[:, :, :Cmid, :Cmid].set(w2)
    w2r = w2p.reshape(3, 3 * Cp, Cp)                            # (ky, kx*ci, co)
    b2p = jnp.zeros((1, Cp), jnp.float32).at[:, :Cmid].set(b2[None, :])
    w3p = jnp.zeros((Cp, Cout), jnp.float32).at[:Cmid, :].set(w3.reshape(Cmid, Cout))
    b3p = b3[None, :]

    has_projection = params["has_projection"]
    if has_projection:
        ws, bs = _fold_bn(params["ws"], params["bns"])
        wsp = ws.reshape(Cin, Cout)
        bsp = bs[None, :]
    else:
        wsp = jnp.zeros((1, LANE), jnp.float32)                 # unused dummies
        bsp = jnp.zeros((1, LANE), jnp.float32)

    # bf16 (MXU-native on v6e/v7x) matmul operands; biases stay f32 (f32 accumulation).
    x = x.astype(cd)
    w1p, w2r, w3p, wsp = (a.astype(cd) for a in (w1p, w2r, w3p, wsp))

    itemsize = jnp.dtype(cd).itemsize
    per_image = H * W * (2 * Cin * itemsize + 2 * Cout * 4        # double-buffered in/out blocks
                         + 3 * 3 * Cp * itemsize + 4 * Cp * 4)    # patch copies + f32 temporaries
    if batch_tile is None:
        batch_tile = _pick_batch_tile(N, per_image)
    assert N % batch_tile == 0, (N, batch_tile)

    kernel = functools.partial(_bottleneck_kernel, H=H, W=W,
                               has_projection=has_projection)

    def whole(a):                                               # whole-array BlockSpec
        return pl.BlockSpec(a.shape, lambda n, _nd=a.ndim: (0,) * _nd)

    out = pl.pallas_call(
        kernel,
        out_shape=jax.ShapeDtypeStruct((N, H, W, Cout), jnp.float32),
        grid_spec=pltpu.PrefetchScalarGridSpec(
            num_scalar_prefetch=0,
            grid=(N // batch_tile,),                            # batch_tile images per step
            in_specs=[
                pl.BlockSpec((batch_tile, H, W, Cin), lambda n: (n, 0, 0, 0)),
                whole(w1p), whole(b1p),
                whole(w2r), whole(b2p),
                whole(w3p), whole(b3p),
                whole(wsp), whole(bsp),
            ],
            out_specs=pl.BlockSpec((batch_tile, H, W, Cout), lambda n: (n, 0, 0, 0)),
        ),
        compiler_params=pltpu.CompilerParams(
            dimension_semantics=("parallel",)),                 # shard batch over TCs (v7x)
    )(x, w1p, b1p, w2r, b2p, w3p, b3p, wsp, bsp)

    return jnp.transpose(out, (0, 3, 1, 2))                     # NHWC -> NCHW


# ---------------------------------------------------------------------------
# Pure-JAX reference with the same BN folding and (optional) bf16 rounding
# points as the kernel; f32 accumulation throughout.  compute_dtype=float32
# reproduces the module's full-precision math.
# ---------------------------------------------------------------------------
def _conv2d_nhwc(x, w, stride=1, pad=0):
    return lax.conv_general_dilated(
        x, w, window_strides=(stride, stride),
        padding=((pad, pad), (pad, pad)),
        dimension_numbers=("NHWC", "HWIO", "NHWC"),
        preferred_element_type=jnp.float32,
        precision=lax.Precision.HIGHEST)


def forward_reference(x_nchw, params, *, compute_dtype=jnp.float32):
    cd = compute_dtype
    s = params["stride"]
    x = jnp.transpose(x_nchw, (0, 2, 3, 1)).astype(cd)

    w1, b1 = _fold_bn(params["w1"], params["bn1"])
    w2, b2 = _fold_bn(params["w2"], params["bn2"])
    w3, b3 = _fold_bn(params["w3"], params["bn3"])

    y = _conv2d_nhwc(x, w1.astype(cd)) + b1
    y = jax.nn.relu(y).astype(cd)
    y = _conv2d_nhwc(y, w2.astype(cd), stride=s, pad=1) + b2
    y = jax.nn.relu(y).astype(cd)
    y = _conv2d_nhwc(y, w3.astype(cd)) + b3
    if params["has_projection"]:
        ws, bs = _fold_bn(params["ws"], params["bns"])
        sc = _conv2d_nhwc(x, ws.astype(cd), stride=s) + bs
    else:
        sc = x.astype(jnp.float32)
    out = jax.nn.relu(y + sc)
    return jnp.transpose(out, (0, 3, 1, 2))


# ---------------------------------------------------------------------------
# Deterministic parameter initialization (mimics the PyTorch module, eval-mode BN)
# ---------------------------------------------------------------------------
def init_params(key, in_channels, out_channels, stride=1, expansion=4):
    cexp = expansion * out_channels
    ks = iter(jax.random.split(key, 32))

    def conv(kh, kw, ci, co):
        return 0.1 * jax.random.normal(next(ks), (kh, kw, ci, co), jnp.float32)

    def bn(c):
        return dict(
            gamma=1.0 + 0.1 * jax.random.normal(next(ks), (c,), jnp.float32),
            beta=0.1 * jax.random.normal(next(ks), (c,), jnp.float32),
            mean=0.1 * jax.random.normal(next(ks), (c,), jnp.float32),
            var=1.0 + 0.1 * jnp.abs(jax.random.normal(next(ks), (c,), jnp.float32)),
        )

    has_projection = (stride != 1) or (in_channels != cexp)
    p = dict(
        stride=stride, has_projection=has_projection,
        w1=conv(1, 1, in_channels, out_channels), bn1=bn(out_channels),
        w2=conv(3, 3, out_channels, out_channels), bn2=bn(out_channels),
        w3=conv(1, 1, out_channels, cexp), bn3=bn(cexp),
    )
    if has_projection:
        p["ws"] = conv(1, 1, in_channels, cexp)
        p["bns"] = bn(cexp)
    return p


# ---------------------------------------------------------------------------
if __name__ == "__main__":
    key = jax.random.PRNGKey(0)
    pkey, xkey = jax.random.split(key)

    # in=64, out_channels=32 -> expansion*out = 128 (lane-dense output; projection
    # shortcut exercised since 64 != 128); stride=1 (module default).
    in_channels, out_channels, stride = 64, 32, 1
    params = init_params(pkey, in_channels, out_channels, stride)

    x = jax.random.normal(xkey, (4, in_channels, 16, 16), jnp.float32)   # NCHW

    out = jax.block_until_ready(forward_pallas(x, params))               # bf16 MXU path
    assert out.shape == (4, 4 * out_channels, 16, 16), out.shape

    # Reference uses the same bf16 operand rounding (f32 accumulation), so the
    # comparison stays tight; pass compute_dtype=jnp.float32 to both for a
    # full-precision comparison instead.
    ref = jax.block_until_ready(
        forward_reference(x, params, compute_dtype=jnp.bfloat16))
    if not jnp.allclose(out, ref, atol=2e-3, rtol=2e-3):
        err = float(jnp.max(jnp.abs(out - ref)))
        raise AssertionError(f"Pallas output does not match reference, max abs err = {err}")

    print("KERNEL_OK")
</pallas_src>

<mosaic_0001>
module attributes {stable_mosaic.version = 11 : i64} {
  func.func @_bottleneck_kernel(%arg0: i32, %arg1: memref<2x16x16x64xbf16, #tpu.memory_space<vmem>>, %arg2: memref<64x128xbf16, #tpu.memory_space<vmem>>, %arg3: memref<1x128xf32, #tpu.memory_space<vmem>>, %arg4: memref<3x384x128xbf16, #tpu.memory_space<vmem>>, %arg5: memref<1x128xf32, #tpu.memory_space<vmem>>, %arg6: memref<128x128xbf16, #tpu.memory_space<vmem>>, %arg7: memref<1x128xf32, #tpu.memory_space<vmem>>, %arg8: memref<64x128xbf16, #tpu.memory_space<vmem>>, %arg9: memref<1x128xf32, #tpu.memory_space<vmem>>, %arg10: memref<2x16x16x128xf32, #tpu.memory_space<vmem>>) attributes {dimension_semantics = [#tpu.dimension_semantics<parallel>], iteration_bounds = array<i64: 2>, scalar_prefetch = 0 : i64, scratch_operands = 0 : i64, tpu.core_type = #tpu.core_type<tc>, window_params = [{transform_indices = @transform_0, window_bounds = array<i64: 2, 16, 16, 64>}, {pipeline_mode = #tpu.pipeline_mode<synchronous>, transform_indices = @transform_1, window_bounds = array<i64: 64, 128>}, {pipeline_mode = #tpu.pipeline_mode<synchronous>, transform_indices = @transform_2, window_bounds = array<i64: 1, 128>}, {pipeline_mode = #tpu.pipeline_mode<synchronous>, transform_indices = @transform_3, window_bounds = array<i64: 3, 384, 128>}, {pipeline_mode = #tpu.pipeline_mode<synchronous>, transform_indices = @transform_4, window_bounds = array<i64: 1, 128>}, {pipeline_mode = #tpu.pipeline_mode<synchronous>, transform_indices = @transform_5, window_bounds = array<i64: 128, 128>}, {pipeline_mode = #tpu.pipeline_mode<synchronous>, transform_indices = @transform_6, window_bounds = array<i64: 1, 128>}, {pipeline_mode = #tpu.pipeline_mode<synchronous>, transform_indices = @transform_7, window_bounds = array<i64: 64, 128>}, {pipeline_mode = #tpu.pipeline_mode<synchronous>, transform_indices = @transform_8, window_bounds = array<i64: 1, 128>}, {transform_indices = @transform_9, window_bounds = array<i64: 2, 16, 16, 128>}]} {
    %c0 = arith.constant 0 : index
    %c0_0 = arith.constant 0 : index
    %c0_1 = arith.constant 0 : index
    %c0_2 = arith.constant 0 : index
    %0 = vector.load %arg1[%c0, %c0_0, %c0_1, %c0_2] : memref<2x16x16x64xbf16, #tpu.memory_space<vmem>>, vector<2x16x16x64xbf16>
    %1 = vector.shape_cast %0 : vector<2x16x16x64xbf16> to vector<512x64xbf16>
    %c0_3 = arith.constant 0 : index
    %c0_4 = arith.constant 0 : index
    %2 = vector.load %arg8[%c0_3, %c0_4] : memref<64x128xbf16, #tpu.memory_space<vmem>>, vector<64x128xbf16>
    %cst = arith.constant dense<0.000000e+00> : vector<512x128xf32>
    %3 = tpu.matmul %1, %2, %cst {dimension_numbers = #tpu.dot_dimension_numbers<[1], [0], [0], [1], [0, 0, 1, 1], [], []>} : vector<512x64xbf16>, vector<64x128xbf16>, vector<512x128xf32> -> vector<512x128xf32>
    %c0_5 = arith.constant 0 : index
    %c0_6 = arith.constant 0 : index
    %4 = vector.load %arg9[%c0_5, %c0_6] : memref<1x128xf32, #tpu.memory_space<vmem>>, vector<1x128xf32>
    %5 = vector.broadcast %4 : vector<1x128xf32> to vector<512x128xf32>
    %6 = arith.addf %3, %5 : vector<512x128xf32>
    %7 = vector.shape_cast %6 : vector<512x128xf32> to vector<2x16x16x128xf32>
    %c0_7 = arith.constant 0 : index
    %c0_8 = arith.constant 0 : index
    %c0_9 = arith.constant 0 : index
    %c0_10 = arith.constant 0 : index
    %8 = vector.load %arg10[%c0_7, %c0_8, %c0_9, %c0_10] : memref<2x16x16x128xf32, #tpu.memory_space<vmem>>, vector<2x16x16x128xf32>
    tpu.vector_store %arg10[%c0_7, %c0_8, %c0_9, %c0_10], %7 {strides = array<i32>} : memref<2x16x16x128xf32, #tpu.memory_space<vmem>>, vector<2x16x16x128xf32>,
    %c0_11 = arith.constant 0 : index
    %c0_12 = arith.constant 0 : index
    %9 = vector.load %arg2[%c0_11, %c0_12] : memref<64x128xbf16, #tpu.memory_space<vmem>>, vector<64x128xbf16>
    %cst_13 = arith.constant dense<0.000000e+00> : vector<512x128xf32>
    %10 = tpu.matmul %1, %9, %cst_13 {dimension_numbers = #tpu.dot_dimension_numbers<[1], [0], [0], [1], [0, 0, 1, 1], [], []>} : vector<512x64xbf16>, vector<64x128xbf16>, vector<512x128xf32> -> vector<512x128xf32>
    %c0_14 = arith.constant 0 : index
    %c0_15 = arith.constant 0 : index
    %11 = vector.load %arg3[%c0_14, %c0_15] : memref<1x128xf32, #tpu.memory_space<vmem>>, vector<1x128xf32>
    %12 = vector.broadcast %11 : vector<1x128xf32> to vector<512x128xf32>
    %13 = arith.addf %10, %12 : vector<512x128xf32>
    %cst_16 = arith.constant 0.000000e+00 : f32
    %14 = vector.broadcast %cst_16 : f32 to vector<512x128xf32>
    %15 = arith.maximumf %13, %14 : vector<512x128xf32>
    %16 = vector.shape_cast %15 : vector<512x128xf32> to vector<2x16x16x128xf32>
    %cst_17 = arith.constant 0.000000e+00 : f32
    %17 = vector.broadcast %cst_17 : f32 to vector<2x16x1x128xf32>
    %18 = vector.extract_strided_slice %16 {offsets = [0, 0, 0, 0], sizes = [2, 16, 15, 128], strides = [1, 1, 1, 1]} : vector<2x16x16x128xf32> to vector<2x16x15x128xf32>
    %19 = tpu.concatenate %17, %18 in 2 : vector<2x16x1x128xf32>, vector<2x16x15x128xf32> -> vector<2x16x16x128xf32>
    %20 = vector.extract_strided_slice %16 {offsets = [0, 0, 1, 0], sizes = [2, 16, 15, 128], strides = [1, 1, 1, 1]} : vector<2x16x16x128xf32> to vector<2x16x15x128xf32>
    %21 = tpu.concatenate %20, %17 in 2 : vector<2x16x15x128xf32>, vector<2x16x1x128xf32> -> vector<2x16x16x128xf32>
    %22 = tpu.concatenate %19, %16, %21 in 3 : vector<2x16x16x128xf32>, vector<2x16x16x128xf32>, vector<2x16x16x128xf32> -> vector<2x16x16x384xf32>
    %23 = arith.truncf %22 : vector<2x16x16x384xf32> to vector<2x16x16x384xbf16>
    %cst_18 = arith.constant 0.000000e+00 : bf16
    %24 = vector.broadcast %cst_18 : bf16 to vector<2x1x16x384xbf16>
    %25 = vector.extract_strided_slice %23 {offsets = [0, 0, 0, 0], sizes = [2, 15, 16, 384], strides = [1, 1, 1, 1]} : vector<2x16x16x384xbf16> to vector<2x15x16x384xbf16>
    %26 = tpu.concatenate %24, %25 in 1 : vector<2x1x16x384xbf16>, vector<2x15x16x384xbf16> -> vector<2x16x16x384xbf16>
    %27 = vector.extract_strided_slice %23 {offsets = [0, 1, 0, 0], sizes = [2, 15, 16, 384], strides = [1, 1, 1, 1]} : vector<2x16x16x384xbf16> to vector<2x15x16x384xbf16>
    %28 = tpu.concatenate %27, %24 in 1 : vector<2x15x16x384xbf16>, vector<2x1x16x384xbf16> -> vector<2x16x16x384xbf16>
    %29 = vector.shape_cast %26 : vector<2x16x16x384xbf16> to vector<512x384xbf16>
    %c0_19 = arith.constant 0 : index
    %c0_20 = arith.constant 0 : index
    %c0_21 = arith.constant 0 : index
    %30 = vector.load %arg4[%c0_19, %c0_20, %c0_21] : memref<3x384x128xbf16, #tpu.memory_space<vmem>>, vector<1x384x128xbf16>
    %31 = vector.shape_cast %30 : vector<1x384x128xbf16> to vector<384x128xbf16>
    %cst_22 = arith.constant dense<0.000000e+00> : vector<512x128xf32>
    %32 = tpu.matmul %29, %31, %cst_22 {dimension_numbers = #tpu.dot_dimension_numbers<[1], [0], [0], [1], [0, 0, 1, 1], [], []>} : vector<512x384xbf16>, vector<384x128xbf16>, vector<512x128xf32> -> vector<512x128xf32>
    %33 = vector.shape_cast %23 : vector<2x16x16x384xbf16> to vector<512x384xbf16>
    %c1 = arith.constant 1 : index
    %c0_23 = arith.constant 0 : index
    %c0_24 = arith.constant 0 : index
    %34 = vector.load %arg4[%c1, %c0_23, %c0_24] : memref<3x384x128xbf16, #tpu.memory_space<vmem>>, vector<1x384x128xbf16>
    %35 = vector.shape_cast %34 : vector<1x384x128xbf16> to vector<384x128xbf16>
    %cst_25 = arith.constant dense<0.000000e+00> : vector<512x128xf32>
    %36 = tpu.matmul %33, %35, %cst_25 {dimension_numbers = #tpu.dot_dimension_numbers<[1], [0], [0], [1], [0, 0, 1, 1], [], []>} : vector<512x384xbf16>, vector<384x128xbf16>, vector<512x128xf32> -> vector<512x128xf32>
    %37 = arith.addf %32, %36 : vector<512x128xf32>
    %38 = vector.shape_cast %28 : vector<2x16x16x384xbf16> to vector<512x384xbf16>
    %c2 = arith.constant 2 : index
    %c0_26 = arith.constant 0 : index
    %c0_27 = arith.constant 0 : index
    %39 = vector.load %arg4[%c2, %c0_26, %c0_27] : memref<3x384x128xbf16, #tpu.memory_space<vmem>>, vector<1x384x128xbf16>
    %40 = vector.shape_cast %39 : vector<1x384x128xbf16> to vector<384x128xbf16>
    %cst_28 = arith.constant dense<0.000000e+00> : vector<512x128xf32>
    %41 = tpu.matmul %38, %40, %cst_28 {dimension_numbers = #tpu.dot_dimension_numbers<[1], [0], [0], [1], [0, 0, 1, 1], [], []>} : vector<512x384xbf16>, vector<384x128xbf16>, vector<512x128xf32> -> vector<512x128xf32>
    %42 = arith.addf %37, %41 : vector<512x128xf32>
    %c0_29 = arith.constant 0 : index
    %c0_30 = arith.constant 0 : index
    %43 = vector.load %arg5[%c0_29, %c0_30] : memref<1x128xf32, #tpu.memory_space<vmem>>, vector<1x128xf32>
    %44 = vector.broadcast %43 : vector<1x128xf32> to vector<512x128xf32>
    %45 = arith.addf %42, %44 : vector<512x128xf32>
    %cst_31 = arith.constant 0.000000e+00 : f32
    %46 = vector.broadcast %cst_31 : f32 to vector<512x128xf32>
    %47 = arith.maximumf %45, %46 : vector<512x128xf32>
    %48 = arith.truncf %47 : vector<512x128xf32> to vector<512x128xbf16>
    %c0_32 = arith.constant 0 : index
    %c0_33 = arith.constant 0 : index
    %49 = vector.load %arg6[%c0_32, %c0_33] : memref<128x128xbf16, #tpu.memory_space<vmem>>, vector<128x128xbf16>
    %cst_34 = arith.constant dense<0.000000e+00> : vector<512x128xf32>
    %50 = tpu.matmul %48, %49, %cst_34 {dimension_numbers = #tpu.dot_dimension_numbers<[1], [0], [0], [1], [0, 0, 1, 1], [], []>} : vector<512x128xbf16>, vector<128x128xbf16>, vector<512x128xf32> -> vector<512x128xf32>
    %c0_35 = arith.constant 0 : index
    %c0_36 = arith.constant 0 : index
    %51 = vector.load %arg7[%c0_35, %c0_36] : memref<1x128xf32, #tpu.memory_space<vmem>>, vector<1x128xf32>
    %52 = vector.broadcast %51 : vector<1x128xf32> to vector<512x128xf32>
    %53 = arith.addf %50, %52 : vector<512x128xf32>
    %54 = vector.shape_cast %53 : vector<512x128xf32> to vector<2x16x16x128xf32>
    %c0_37 = arith.constant 0 : index
    %c0_38 = arith.constant 0 : index
    %c0_39 = arith.constant 0 : index
    %c0_40 = arith.constant 0 : index
    %55 = vector.load %arg10[%c0_37, %c0_38, %c0_39, %c0_40] : memref<2x16x16x128xf32, #tpu.memory_space<vmem>>, vector<2x16x16x128xf32>
    %56 = arith.addf %54, %55 : vector<2x16x16x128xf32>
    %cst_41 = arith.constant 0.000000e+00 : f32
    %57 = vector.broadcast %cst_41 : f32 to vector<2x16x16x128xf32>
    %58 = arith.maximumf %56, %57 : vector<2x16x16x128xf32>
    %c0_42 = arith.constant 0 : index
    %c0_43 = arith.constant 0 : index
    %c0_44 = arith.constant 0 : index
    %c0_45 = arith.constant 0 : index
    %59 = vector.load %arg10[%c0_42, %c0_43, %c0_44, %c0_45] : memref<2x16x16x128xf32, #tpu.memory_space<vmem>>, vector<2x16x16x128xf32>
    tpu.vector_store %arg10[%c0_42, %c0_43, %c0_44, %c0_45], %58 {strides = array<i32>} : memref<2x16x16x128xf32, #tpu.memory_space<vmem>>, vector<2x16x16x128xf32>,
    return
  }
  func.func @transform_0(%arg0: i32) -> (i32, i32, i32, i32) {
    %c0_i32 = arith.constant 0 : i32
    %c0_i32_0 = arith.constant 0 : i32
    %c0_i32_1 = arith.constant 0 : i32
    %c0_i32_2 = arith.constant 0 : i32
    return %arg0, %c0_i32, %c0_i32_0, %c0_i32_1 : i32, i32, i32, i32
  }
  func.func @transform_1(%arg0: i32) -> (i32, i32) {
    %c0_i32 = arith.constant 0 : i32
    %c0_i32_0 = arith.constant 0 : i32
    %c0_i32_1 = arith.constant 0 : i32
    return %c0_i32, %c0_i32_0 : i32, i32
  }
  func.func @transform_2(%arg0: i32) -> (i32, i32) {
    %c0_i32 = arith.constant 0 : i32
    %c0_i32_0 = arith.constant 0 : i32
    %c0_i32_1 = arith.constant 0 : i32
    return %c0_i32, %c0_i32_0 : i32, i32
  }
  func.func @transform_3(%arg0: i32) -> (i32, i32, i32) {
    %c0_i32 = arith.constant 0 : i32
    %c0_i32_0 = arith.constant 0 : i32
    %c0_i32_1 = arith.constant 0 : i32
    %c0_i32_2 = arith.constant 0 : i32
    return %c0_i32, %c0_i32_0, %c0_i32_1 : i32, i32, i32
  }
  func.func @transform_4(%arg0: i32) -> (i32, i32) {
    %c0_i32 = arith.constant 0 : i32
    %c0_i32_0 = arith.constant 0 : i32
    %c0_i32_1 = arith.constant 0 : i32
    return %c0_i32, %c0_i32_0 : i32, i32
  }
  func.func @transform_5(%arg0: i32) -> (i32, i32) {
    %c0_i32 = arith.constant 0 : i32
    %c0_i32_0 = arith.constant 0 : i32
    %c0_i32_1 = arith.constant 0 : i32
    return %c0_i32, %c0_i32_0 : i32, i32
  }
  func.func @transform_6(%arg0: i32) -> (i32, i32) {
    %c0_i32 = arith.constant 0 : i32
    %c0_i32_0 = arith.constant 0 : i32
    %c0_i32_1 = arith.constant 0 : i32
    return %c0_i32, %c0_i32_0 : i32, i32
  }
  func.func @transform_7(%arg0: i32) -> (i32, i32) {
    %c0_i32 = arith.constant 0 : i32
    %c0_i32_0 = arith.constant 0 : i32
    %c0_i32_1 = arith.constant 0 : i32
    return %c0_i32, %c0_i32_0 : i32, i32
  }
  func.func @transform_8(%arg0: i32) -> (i32, i32) {
    %c0_i32 = arith.constant 0 : i32
    %c0_i32_0 = arith.constant 0 : i32
    %c0_i32_1 = arith.constant 0 : i32
    return %c0_i32, %c0_i32_0 : i32, i32
  }
  func.func @transform_9(%arg0: i32) -> (i32, i32, i32, i32) {
    %c0_i32 = arith.constant 0 : i32
    %c0_i32_0 = arith.constant 0 : i32
    %c0_i32_1 = arith.constant 0 : i32
    %c0_i32_2 = arith.constant 0 : i32
    return %arg0, %c0_i32, %c0_i32_0, %c0_i32_1 : i32, i32, i32, i32
  }
}

</mosaic_0001>

<bundles_post_ra>
// kernel: tpu_custom_call.1
= control target key start
LH: loop header
LB: loop body
LE: loop exit
PB: predicated region body
PF: predicated region fallthrough
CT: control target
= control target key end

     0   :  { %s8584_s0 = inlined_call_operand.hbm [shape: bf16[4,16,16,64], index: 0, kind: input, shape index: {}]   ;;  %s8585_s1 = inlined_call_operand.hbm [shape: bf16[64,128], index: 1, kind: input, shape index: {}]   ;;  %s8586_s2 = inlined_call_operand.vmem [shape: f32[1,128], index: 2, kind: input, shape index: {}]   ;;  %s8587_s3 = inlined_call_operand.hbm [shape: bf16[3,384,128], index: 3, kind: input, shape index: {}]   ;;  %s8588_s4 = inlined_call_operand.vmem [shape: f32[1,128], index: 4, kind: input, shape index: {}]   ;;  %s8589_s5 = inlined_call_operand.hbm [shape: bf16[128,128], index: 5, kind: input, shape index: {}]   ;;  %s8590_s6 = inlined_call_operand.vmem [shape: f32[1,128], index: 6, kind: input, shape index: {}]   ;;  %s8591_s7 = inlined_call_operand.hbm [shape: bf16[64,128], index: 7, kind: input, shape index: {}]   ;;  %s8592_s8 = inlined_call_operand.vmem [shape: f32[1,128], index: 8, kind: input, shape index: {}]   ;;  %s8593_s9 = inlined_call_operand.hbm [shape: f32[4,16,16,128], index: 9, kind: output, shape index: {}]  }
   0x1   :  { %8741 = sst [smem:[#allocation138_spill]] %s8585_s1 }
   0x2   :  { %8742 = sst [smem:[#allocation139_spill]] %s8587_s3 }
   0x3   :  { %8743 = sst [smem:[#allocation140_spill]] %s8589_s5 }
   0x4   :  { %14 = vsyncpa [#allocation3], 0 }
   0x5   :  { %16 = vsyncpa [#allocation3 + $0x1], 0 }
   0x6   :  { %17 = vsyncpa [#allocation6], 0 }
   0x7   :  { %18 = vsyncpa [#allocation9], 0 }
   0x8   :  { %19 = vsyncpa [#allocation4], 0 }
   0x9   :  { %21 = vsyncpa [#allocation4 + $0x1], 0  ;;  %s6406_s30 = smov 0   ;;  %s6408_s10 = smov 0  }
   0xa   :  { %s6410_s11 = smov 0   ;;  %s6412_s12 = smov 0  }
   0xb LB: > { %s6427_s13 = sadd.s32 4294967295, %s6345_s12   ;;  %s5327_s14 = sadd.s32 4294967294, %s6345_s12   ;;  %s6345_s12 = sphi %s6412_s12, %s9197_s12   ;;  %s6341_s11 = sphi %s6410_s11, %s9196_s11   ;;  %s6337_s10 = sphi %s6408_s10, %s9195_s10   ;;  %s6333_s30 = sphi %s6406_s30, %s9194_s30  }
   0xc   : > { %p47_p0 = scmp.ne.s32.totalorder %s6337_s10, %s6333_s30  ;;  %p48_p1 = scmp.eq.s32.totalorder %s6427_s13, 0 }
   0xd   : > { %p239_p2 = scmp.eq.s32.totalorder %s6427_s13, 1  ;;  %p245_p3 = scmp.eq.s32.totalorder %s5327_s14, 1 }
   0xe   : > { %p6436_p4 = por %p48_p1, %p47_p0  ;;  %p5328_p5 = scmp.ge.s32.totalorder %s6345_s12, 1 }
   0xf   : > { %p6441_p6 = por %p245_p3, %p47_p0  ;;  %p252_p7 = scmp.lt.s32.totalorder %s6345_s12, 3 }
  0x10   : > { %s8746_s1 = sld [smem:[#allocation138_spill]]  ;;  %s6347_s21 = smov [#allocation5]  }
  0x11   : > { %p6449_p8 = pnand %p5328_p5, %p252_p7  ;;  %s265_s22 = sshll.u32 %s6347_s21, 4  ;;  %s266_s22 = int_to_ptr.vmem [resolvable:$true] %s265_s22 }
  0x12   : > { %s8749_s5 = sld [smem:[#allocation140_spill]]  ;;  %s8594_s27 = smov 64  }
  0x13   : > { %p6039_p9 = pneg %p6449_p8  ;;  %s8595_s28 = smov 4  }
  0x14   : > { %s6350_s29 = smov [#allocation8]   ;;  %s8750_s3 = sld [smem:[#allocation139_spill]] }
  0x15   : > { %p6457_p10 = pnand %p6039_p9, %p48_p1  ;;  %s299_s14 = sshll.u32 %s6350_s29, 4  ;;  %s300_s14 = int_to_ptr.vmem [resolvable:$true] %s299_s14 }
  0x16   : > { %s263_s19 = sshll.u32 %s8746_s1, 4  ;;  %s314_s24 = sshll.u32 %s8591_s7, 4  ;;  %s264_s19 = int_to_ptr.hbm [resolvable:$true] %s263_s19  ;;  %s315_s24 = int_to_ptr.hbm [resolvable:$true] %s314_s24 }
  0x17   : > { %6042 = dma.hbm_to_vmem [thread:$0]  (!%p6457_p10), %s264_s19, 512, %s266_s22, [#allocation6], %s8594_s27, %s8594_s27, %s8595_s28  }
  0x18   : > { %s297_s26 = sshll.u32 %s8749_s5, 4  ;;  %s6351_s25 = smov [#allocation7]   ;;  %s298_s26 = int_to_ptr.hbm [resolvable:$true] %s297_s26 }
  0x19   : > { %6048 = dma.hbm_to_vmem [thread:$0]  (!%p6457_p10), %s298_s26, 1024, %s300_s14, [#allocation9], %s8594_s27, %s8594_s27, %s8595_s28  }
  0x1a   : > { %s280_s21 = sshll.u32 %s8750_s3, 4  ;;  %s282_s29 = sshll.u32 %s6351_s25, 4  ;;  %s281_s21 = int_to_ptr.hbm [resolvable:$true] %s280_s21  ;;  %s283_s29 = int_to_ptr.vmem [resolvable:$true] %s282_s29 }
  0x1b   : > { %6045 = dma.hbm_to_vmem [thread:$0]  (!%p6457_p10), %s281_s21, 9216, %s283_s29, [#allocation6], %s8594_s27, %s8594_s27, %s8595_s28  }
  0x1c   : > { %s6352_s17 = smov [#allocation10]   ;;  %s6492_s14 = sadd.s32 1, %s6345_s12  }
  0x1d   : > { %s316_s26 = sshll.u32 %s6352_s17, 4  ;;  %s34_s18 = sadd.s32 1, %s6341_s11  ;;  %s317_s26 = int_to_ptr.vmem [resolvable:$true] %s316_s26 }
  0x1e   : > { %6051 = dma.hbm_to_vmem [thread:$0]  (!%p6457_p10), %s315_s24, 512, %s317_s26, [#allocation9], %s8594_s27, %s8594_s27, %s8595_s28  }
  0x1f   : > { %s31_s19 = ssub.s32 %s6345_s12, %s6492_s14  ;;  %p41_p12 = scmp.ne.s32.totalorder %s6341_s11, %s6337_s10 }
  0x20   : > { %p32_p13 = scmp.eq.s32.totalorder %s31_s19, 0  ;;  %p42_p0 = scmp.eq.s32.totalorder %s6345_s12, 0 }
  0x21   : > { %p6502_p3 = por %p239_p2, %p41_p12  ;;  %p6064_p5 = scmp.lt.s32.totalorder %s6345_s12, 2 }
  0x22   : > { %s6508_s22 = scalar_select %p32_p13, %s6341_s11, %s34_s18  }
  0x23   : > { %p43_p7 = por %p42_p0, %p41_p12  ;;  %s333_s23 = sand.u32 1, %s6341_s11  }
  0x24   : > { %s5334_s25 = sshll.u32 %s333_s23, 8  ;;  %s5896_s24 = sshll.u32 %s6345_s12, 8 }
  0x25   : > { %s343_s26 = scalar_lea.hbm %s8584_s0, %s5896_s24  ;;  %s337_s27 = scalar_lea.vmem [#allocation2], %s5334_s25 }
  0x26   : > { %s346_s28 = sshll.u32 %s337_s27, 4  ;;  %s344_s19 = sshll.u32 %s343_s26, 4  ;;  %s347_s28 = int_to_ptr.vmem [resolvable:$true] %s346_s28  ;;  %s345_s19 = int_to_ptr.hbm [resolvable:$true] %s344_s19 }
  0x27   : > { %p6515_p2 = pnand %p6064_p5, %p43_p7  ;;  %s334_s18 = scalar_lea.sflag [#allocation3], %s333_s23 }
  0x28   : > { %s6241_s3 = sshra.s32 %s345_s19, 4  ;;  %s6248_s27 = scalar_lea.hbm %s8584_s0, 512  ;;  %s6242_s3 = int_to_ptr.hbm [resolvable:$true] %s6241_s3 }
  0x29   : > { %s6243_s5 = scalar_lea.hbm %s6242_s3, 256  ;;  %p6245_p10 = pneg %p6515_p2 }
  0x2a   : > { %p6244_p9 = scmp.ne.s32.totalorder %s6242_s3, %s6243_s5  ;;  %p6249_p0 = scmp.lt.s32.totalorder %s6242_s3, %s8584_s0 }
  0x2b   : > { %p6250_p5 = scmp.lt.s32.totalorder %s6248_s27, %s6243_s5 }
  0x2c   : > { %p6246_p12 = pnand %p6245_p10, %p6244_p9 }
  0x2d   : > { %p6251_p7 = por %p6250_p5, %p6249_p0 }
  0x2e   : > { %p6247_p13 = pneg %p6246_p12 }
  0x30   : > { %p6252_p11 = pnand %p6251_p7, %p6247_p13 }
  0x32   : > { %6255 = shalt.err (!%p6252_p11)
}
  0x33   : > { %s8753_s23 = smov 4   ;;  %s8754_s26 = smov 64  }
  0x34   : > { %6055 = dma.hbm_to_vmem [thread:$0]  (!%p6515_p2), %s345_s19, 4096, %s347_s28, %s334_s18, %s8754_s26, %s8754_s26, %s8753_s23  }
  0x35   : > { %358 = sbr.rel (%p6449_p8) target bundleno = 2050 (0x802), region = 56 }
  0x3a   : > { %s6535_s24 = sand.u32 1, %s6337_s10  }
  0x3b   : > { %s5339_s3 = sshll.u32 %s6535_s24, 8  ;;  %s361_s5 = scalar_lea.sflag [#allocation3], %s6535_s24 }
  0x3c   : > { %s6539_s25 = scalar_lea.vmem [#allocation2], %s5339_s3 }
  0x3d   : > { %6316 = dma.done.wait (%p6436_p4), %s361_s5, 4096  }
  0x3e   : > { %6318 = vsyncadd (%p6436_p4), %s361_s5, 4294963200 }
  0x3f   : > { %6320 = dma.done.wait (%p48_p1), [#allocation6], 9728  }
  0x40   : > { %6322 = vsyncadd (%p48_p1), [#allocation6], 4294957568 }
  0x41   : > { %6324 = dma.done.wait (%p48_p1), [#allocation9], 1536  }
  0x42   : > { %6326 = vsyncadd (%p48_p1), [#allocation9], 4294965760  ;;  %v5932_v0 = vld [vmem:[#allocation10 + $0x18] sm:$0xff]  ;;  %v5931_v2 = vld [vmem:[#allocation10 + $0x10] sm:$0xff]  ;;  %vm683_vm0 = vcmask 523264   ;;  %s5344_s1 = sshll.u32 %s6535_s24, 9 }
  0x43   : > { %v5936_v1 = vld [vmem:[#allocation5 + $0x18] sm:$0xff]  ;;  %784 = vmatpush.bf16.msra.mxu0 %v5932_v0  ;;  %v5935_v3 = vld [vmem:[#allocation5 + $0x10] sm:$0xff]  ;;  %v5930_v4 = vld [vmem:[#allocation10 + $0x8] sm:$0xff]  ;;  %s6591_s18 = scalar_lea.vmem [#allocation11], %s5344_s1  ;;  %vm1346_vm1 = vcmask 1040384   ;;  %vm1539_vm2 = vcmask 1046528  }
  0x44   : > { %1053 = vmatpush.bf16.msra.mxu1 %v5936_v1  ;;  %v5934_v5 = vld [vmem:[#allocation5 + $0x8] sm:$0xff]  ;;  %v5929_v6 = vld [vmem:[#allocation10] sm:$0xff]  ;;  %v5899_v10 = vld [vmem:[%s6539_s25 + $0x10] sm:$0xff]  ;;  %s6018_s23 = sshll.u32 %s6427_s13, 9  ;;  %s5200_s15 = scalar_lea.sflag [#allocation4], %s6535_s24 }
  0x45   : > { %v5933_v7 = vld [vmem:[#allocation5] sm:$0xff]  ;;  %v5898_v9 = vld [vmem:[%s6539_s25 + $0x8] sm:$0xff]  ;;  %v5900_v11 = vld [vmem:[%s6539_s25 + $0x18] sm:$0xff]  ;;  %s5212_s5 = scalar_lea.hbm %s8593_s9, %s6018_s23  ;;  %s6291_s27 = scalar_lea.hbm %s8593_s9, 1024 }
  0x46   : > { %v5897_v8 = vld [vmem:[%s6539_s25] sm:$0xff]  ;;  %v5902_v13 = vld [vmem:[%s6539_s25 + $0x28] sm:$0xff]  ;;  %v5968_v14 = vld [vmem:[#allocation7 + $0xf8] sm:$0xff]  ;;  %s5215_s1 = sshll.u32 %s5212_s5, 4  ;;  %s5216_s1 = int_to_ptr.hbm [resolvable:$true] %s5215_s1 }
  0x47   : > { %785 = vmatpush.bf16.msra.mxu0 %v5931_v2  ;;  %v5901_v12 = vld [vmem:[%s6539_s25 + $0x20] sm:$0xff]  ;;  %v5976_v15 = vld [vmem:[#allocation7 + $0x138] sm:$0xff]  ;;  %2613 = vmatpush.bf16.msra.mxu2 %v5968_v14  ;;  %v5967_v16 = vld [vmem:[#allocation7 + $0xf0] sm:$0xff]  ;;  %s6285_s13 = sshra.s32 %s5216_s1, 4  ;;  %s6286_s13 = int_to_ptr.hbm [resolvable:$true] %s6285_s13 }
  0x48   : > { %1054 = vmatpush.bf16.msra.mxu1 %v5935_v3  ;;  %2782 = vmatpush.bf16.msra.mxu3 %v5976_v15  ;;  %v5975_v17 = vld [vmem:[#allocation7 + $0x130] sm:$0xff]  ;;  %v5966_v18 = vld [vmem:[#allocation7 + $0xe8] sm:$0xff]  ;;  %v5965_v21 = vld [vmem:[#allocation7 + $0xe0] sm:$0xff]  ;;  %s6287_s20 = scalar_lea.hbm %s6286_s13, 512  ;;  %p6292_p11 = scmp.lt.s32.totalorder %s6286_s13, %s8593_s9 }
  0x49   : > { %v5974_v19 = vld [vmem:[#allocation7 + $0x128] sm:$0xff]  ;;  %v5903_v20 = vld [vmem:[%s6539_s25 + $0x30] sm:$0xff]  ;;  %v5973_v22 = vld [vmem:[#allocation7 + $0x120] sm:$0xff]  ;;  %p6288_p1 = scmp.ne.s32.totalorder %s6286_s13, %s6287_s20  ;;  %p6293_p2 = scmp.lt.s32.totalorder %s6291_s27, %s6287_s20 }
  0x4a   : > { %v5964_v23 = vld [vmem:[#allocation7 + $0xd8] sm:$0xff]  ;;  %v5963_v25 = vld [vmem:[#allocation7 + $0xd0] sm:$0xff]  ;;  %v5962_v27 = vld [vmem:[#allocation7 + $0xc8] sm:$0xff] }
  0x4b   : > { %786 = vmatpush.bf16.msra.mxu0 %v5930_v4  ;;  %2614 = vmatpush.bf16.msra.mxu2 %v5967_v16  ;;  %v5972_v24 = vld [vmem:[#allocation7 + $0x118] sm:$0xff]  ;;  %v5971_v26 = vld [vmem:[#allocation7 + $0x110] sm:$0xff]  ;;  %v5970_v28 = vld [vmem:[#allocation7 + $0x108] sm:$0xff]  ;;  %p6289_p4 = pnand %p6288_p1, %p6502_p3  ;;  %p6294_p9 = por %p6293_p2, %p6292_p11 }
  0x4c   : > { %1055 = vmatpush.bf16.msra.mxu1 %v5934_v5  ;;  %2783 = vmatpush.bf16.msra.mxu3 %v5975_v17  ;;  %v5904_v29 = vld [vmem:[%s6539_s25 + $0x38] sm:$0xff]  ;;  %v5961_v30 = vld [vmem:[#allocation7 + $0xc0] sm:$0xff]  ;;  %v5906_v55 = vld [vmem:[%s6539_s25 + $0x48] sm:$0xff] }
  0x4d   : > { %v5969_v31 = vld [vmem:[#allocation7 + $0x100] sm:$0xff]  ;;  %v5952_v32 = vld [vmem:[#allocation7 + $0x78] sm:$0xff]  ;;  %p6290_p8 = pneg %p6289_p4 }
  0x4e   : > { %v6581_v33 = vld [vmem:[%s8592_s8] ss:$0 sm:$0xff]  ;;  %v5984_v38 = vld [vmem:[#allocation7 + $0x178] sm:$0xff] }
  0x4f   : > { %787 = vmatpush.bf16.msra.mxu0 %v5929_v6  ;;  %2615 = vmatpush.bf16.msra.mxu2 %v5966_v18  ;;  %v6586_v34 = vld [vmem:[%s8586_s2] ss:$0 sm:$0xff]  ;;  %v5944_v39 = vld [vmem:[#allocation7 + $0x38] sm:$0xff]  ;;  %p6295_p10 = pnand %p6294_p9, %p6290_p8 }
  0x50   : > { %1056 = vmatpush.bf16.msra.mxu1 %v5933_v7  ;;  %2784 = vmatpush.bf16.msra.mxu3 %v5974_v19  ;;  %v5905_v35 = vld [vmem:[%s6539_s25 + $0x40] sm:$0xff] }
  0x52   : > { %5489 = vmatmul.msk.bf16.vlgmr.msra.gmra.mxu0 %vm683_vm0, %v5897_v8 }
  0x53   : > { %5537 = vmatmul.msk.bf16.vlgmr.msra.gmra.mxu1 %vm683_vm0, %v5897_v8  ;;  %2616 = vmatpush.bf16.msra.mxu2 %v5965_v21 }
  0x54   : > { %2785 = vmatpush.bf16.msra.mxu3 %v5973_v22  ;;  %2951 = vmatpush.bf16.msrb.mxu0 %v5984_v38 }
  0x55   : > { %3264 = vmatpush.bf16.msrb.mxu1 %v5944_v39 }
  0x57   : > { %2617 = vmatpush.bf16.msra.mxu2 %v5964_v23  ;;  %v5907_v23 = vld [vmem:[%s6539_s25 + $0x50] sm:$0xff] }
  0x58   : > { %2786 = vmatpush.bf16.msra.mxu3 %v5972_v24 }
  0x5b   : > { %2618 = vmatpush.bf16.msra.mxu2 %v5963_v25 }
  0x5c   : > { %2787 = vmatpush.bf16.msra.mxu3 %v5971_v26 }
  0x5f   : > { %2619 = vmatpush.bf16.msra.mxu2 %v5962_v27 }
  0x60   : > { %2788 = vmatpush.bf16.msra.mxu3 %v5970_v28 }
  0x62   : > { %5490 = vmatmul.msk.bf16.gmra.mxu0 %vm683_vm0, %v5898_v9 }
  0x63   : > { %5538 = vmatmul.msk.bf16.gmra.mxu1 %vm683_vm0, %v5898_v9  ;;  %2620 = vmatpush.bf16.msra.mxu2 %v5961_v30 }
  0x64   : > { %2789 = vmatpush.bf16.msra.mxu3 %v5969_v31 }
  0x67   : > { %3433 = vmatpush.bf16.msrb.mxu2 %v5952_v32 }
  0x72   : > { %5491 = vmatmul.msk.bf16.gmra.mxu0 %vm683_vm0, %v5899_v10 }
  0x73   : > { %5539 = vmatmul.msk.bf16.gmra.mxu1 %vm683_vm0, %v5899_v10 }
  0x82   : > { %5492 = vmatmul.msk.bf16.gmra.mxu0 %vm683_vm0, %v5900_v11 }
  0x83   : > { %5540 = vmatmul.msk.bf16.gmra.mxu1 %vm683_vm0, %v5900_v11 }
  0x92   : > { %5493 = vmatmul.msk.bf16.gmra.mxu0 %vm683_vm0, %v5901_v12 }
  0x93   : > { %5541 = vmatmul.msk.bf16.gmra.mxu1 %vm683_vm0, %v5901_v12 }
  0xa2   : > { %5494 = vmatmul.msk.bf16.gmra.mxu0 %vm683_vm0, %v5902_v13 }
  0xa3   : > { %5542 = vmatmul.msk.bf16.gmra.mxu1 %vm683_vm0, %v5902_v13 }
  0xb2   : > { %5495 = vmatmul.msk.bf16.gmra.mxu0 %vm683_vm0, %v5903_v20 }
  0xb3   : > { %5543 = vmatmul.msk.bf16.gmra.mxu1 %vm683_vm0, %v5903_v20 }
  0xc2   : > { %5496 = vmatmul.msk.bf16.gmra.mxu0 %vm683_vm0, %v5904_v29 }
  0xc3   : > { %5544 = vmatmul.msk.bf16.gmra.mxu1 %vm683_vm0, %v5904_v29 }
  0xcf   : > { %v789_v36 = vpop.f32.mrf.mxu0 }
  0xd0   : > { %v1058_v37 = vpop.f32.mrf.mxu1  ;;  %v790_v40 = vadd.f32 %v6581_v33, %v789_v36 }
  0xd1   : > { %v1059_v41 = vadd.f32 %v6586_v34, %v1058_v37 }
  0xd2   : > { %949 = vst [vmem:[%s6591_s18] sm:$0xff] %v790_v40  ;;  %5497 = vmatmul.msk.bf16.gmra.mxu0 %vm683_vm0, %v5905_v35 }
  0xd3   : > { %v1218_v42 = vmax.f32 %v1059_v41, 0.0  ;;  %5545 = vmatmul.msk.bf16.gmra.mxu1 %vm683_vm0, %v5905_v35 }
  0xd5   : > { %v1347_v43 = vrot.slane %v1218_v42, 7  ;;  %v1540_v50 = vrot.slane %v1218_v42, 1 }
  0xd7   : > { %v791_v44 = vpop.f32.mrf.mxu0  ;;  %v1507_v48 = vsel %vm1346_vm1, 0.0, %v1347_v43 }
  0xd8   : > { %v1060_v45 = vpop.f32.mrf.mxu1  ;;  %v792_v46 = vadd.f32 %v6581_v33, %v791_v44  ;;  %v1732_v53 = vpack.c.bf16 %v1218_v42, %v1507_v48 }
  0xd9   : > { %v1061_v47 = vadd.f32 %v6586_v34, %v1060_v45 }
  0xda   : > { %950 = vst [vmem:[%s6591_s18 + $0x8] sm:$0xff] %v792_v46  ;;  %v1980_v1 = vunpack.c.l.b16 %v1732_v53  ;;  %v1981_v2 = vunpack.c.h.b16 %v1732_v53 }
  0xdb   : > { %v1219_v49 = vmax.f32 %v1061_v47, 0.0 }
  0xdd   : > { %v1348_v51 = vrot.slane %v1219_v49, 7  ;;  %v1541_v52 = vrot.slane %v1219_v49, 1 }
  0xdf   : > { %v1700_v54 = vsel %vm1539_vm2, %v1541_v52, 0.0  ;;  %v1349_v56 = vsel %vm1346_vm1, %v1347_v43, %v1348_v51  ;;  %v1542_v57 = vsel %vm1539_vm2, %v1540_v50, %v1541_v52  ;;  %v794_v59 = vpop.f32.mrf.mxu0 }
  0xe0   : > { %v1735_v58 = vpack.c.bf16 %v1700_v54, %v1700_v54  ;;  %v1063_v60 = vpop.f32.mrf.mxu1  ;;  %v1734_v61 = vpack.c.bf16 %v1219_v49, %v1349_v56  ;;  %v1733_v62 = vpack.c.bf16 %v1542_v57, %v1542_v57  ;;  %v795_v63 = vadd.f32 %v6581_v33, %v794_v59  ;;  %v5908_v57 = vld [vmem:[%s6539_s25 + $0x58] sm:$0xff] }
  0xe1   : > { %v1064_v0 = vadd.f32 %v6586_v34, %v1063_v60 }
  0xe2   : > { %v1983_v3 = vunpack.c.l.b16 %v1734_v61  ;;  %v1984_v4 = vunpack.c.h.b16 %v1734_v61  ;;  %v1982_v5 = vunpack.c.l.b16 %v1733_v62  ;;  %v1985_v6 = vunpack.c.l.b16 %v1735_v58  ;;  %951 = vst [vmem:[%s6591_s18 + $0x10] sm:$0xff] %v795_v63  ;;  %5498 = vmatmul.msk.bf16.gmra.mxu0 %vm683_vm0, %v5906_v55 }
  0xe3   : > { %v1220_v7 = vmax.f32 %v1064_v0, 0.0  ;;  %5546 = vmatmul.msk.bf16.gmra.mxu1 %vm683_vm0, %v5906_v55 }
  0xe4   : > { %v6609_v8 = vpack.c.b16 %v1983_v3, %v1980_v1  ;;  %v6611_v9 = vpack.c.b16 %v1984_v4, %v1981_v2  ;;  %v6613_v10 = vpack.c.b16 %v1985_v6, %v1982_v5 }
  0xe5   : > { %v1350_v11 = vrot.slane %v1220_v7, 7  ;;  %v1543_v18 = vrot.slane %v1220_v7, 1 }
  0xe6   : > { %2621 = vmatmul.bf16.vlgmr.msra.gmra.mxu2 %v6609_v8  ;;  %2790 = vmatmul.bf16.vlgmr.msra.gmra.mxu3 %v6611_v9 }
  0xe7   : > { %v796_v12 = vpop.f32.mrf.mxu0  ;;  %v1508_v16 = vsel %vm1346_vm1, 0.0, %v1350_v11 }
  0xe8   : > { %v1065_v13 = vpop.f32.mrf.mxu1  ;;  %v797_v14 = vadd.f32 %v6581_v33, %v796_v12  ;;  %v1736_v19 = vpack.c.bf16 %v1220_v7, %v1508_v16 }
  0xe9   : > { %v1066_v15 = vadd.f32 %v6586_v34, %v1065_v13 }
  0xea   : > { %952 = vst [vmem:[%s6591_s18 + $0x18] sm:$0xff] %v797_v14  ;;  %v1986_v35 = vunpack.c.l.b16 %v1736_v19  ;;  %v1987_v36 = vunpack.c.h.b16 %v1736_v19  ;;  %v5951_v19 = vld [vmem:[#allocation7 + $0x70] sm:$0xff] }
  0xeb   : > { %v1221_v17 = vmax.f32 %v1066_v15, 0.0  ;;  %3434 = vmatpush.bf16.msrb.mxu2 %v5951_v19 }
  0xed   : > { %v1351_v20 = vrot.slane %v1221_v17, 7  ;;  %v1544_v21 = vrot.slane %v1221_v17, 1 }
  0xef   : > { %v1352_v22 = vsel %vm1346_vm1, %v1350_v11, %v1351_v20  ;;  %v1545_v24 = vsel %vm1539_vm2, %v1543_v18, %v1544_v21  ;;  %v1701_v25 = vsel %vm1539_vm2, %v1544_v21, 0.0  ;;  %v799_v27 = vpop.f32.mrf.mxu0 }
  0xf0   : > { %v1738_v26 = vpack.c.bf16 %v1221_v17, %v1352_v22  ;;  %v1068_v28 = vpop.f32.mrf.mxu1  ;;  %v1737_v29 = vpack.c.bf16 %v1545_v24, %v1545_v24  ;;  %v1739_v30 = vpack.c.bf16 %v1701_v25, %v1701_v25  ;;  %v800_v31 = vadd.f32 %v6581_v33, %v799_v27 }
  0xf1   : > { %v1069_v32 = vadd.f32 %v6586_v34, %v1068_v28 }
  0xf2   : > { %v1989_v37 = vunpack.c.l.b16 %v1738_v26  ;;  %v1990_v38 = vunpack.c.h.b16 %v1738_v26  ;;  %v1988_v39 = vunpack.c.l.b16 %v1737_v29  ;;  %v1991_v40 = vunpack.c.l.b16 %v1739_v30  ;;  %953 = vst [vmem:[%s6591_s18 + $0x20] sm:$0xff] %v800_v31  ;;  %5499 = vmatmul.msk.bf16.gmra.mxu0 %vm683_vm0, %v5907_v23  ;;  %v5909_v29 = vld [vmem:[%s6539_s25 + $0x60] sm:$0xff] }
  0xf3   : > { %v1222_v41 = vmax.f32 %v1069_v32, 0.0  ;;  %5547 = vmatmul.msk.bf16.gmra.mxu1 %vm683_vm0, %v5907_v23 }
  0xf4   : > { %v6630_v42 = vpack.c.b16 %v1989_v37, %v1986_v35  ;;  %v6632_v43 = vpack.c.b16 %v1990_v38, %v1987_v36  ;;  %v6634_v44 = vpack.c.b16 %v1991_v40, %v1988_v39  ;;  %v5983_v37 = vld [vmem:[#allocation7 + $0x170] sm:$0xff] }
  0xf5   : > { %v1353_v45 = vrot.slane %v1222_v41, 7  ;;  %v1546_v52 = vrot.slane %v1222_v41, 1  ;;  %v5943_v38 = vld [vmem:[#allocation7 + $0x30] sm:$0xff]  ;;  %2952 = vmatpush.bf16.msrb.mxu0 %v5983_v37 }
  0xf6   : > { %8755 = vst [vmem:[#allocation16_spill] sm:$0xff] %v6630_v42  ;;  %2626 = vmatmul.bf16.gmra.mxu2 %v6630_v42  ;;  %2795 = vmatmul.bf16.gmra.mxu3 %v6632_v43 }
  0xf7   : > { %8756 = vst [vmem:[#allocation17_spill] sm:$0xff] %v6634_v44  ;;  %v801_v46 = vpop.f32.mrf.mxu0  ;;  %v1509_v50 = vsel %vm1346_vm1, 0.0, %v1353_v45  ;;  %3265 = vmatpush.bf16.msrb.mxu1 %v5943_v38 }
  0xf8   : > { %v1070_v47 = vpop.f32.mrf.mxu1  ;;  %v802_v48 = vadd.f32 %v6581_v33, %v801_v46  ;;  %v1740_v53 = vpack.c.bf16 %v1222_v41, %v1509_v50 }
  0xf9   : > { %v1071_v49 = vadd.f32 %v6586_v34, %v1070_v47 }
  0xfa   : > { %954 = vst [vmem:[%s6591_s18 + $0x28] sm:$0xff] %v802_v48  ;;  %v1992_v3 = vunpack.c.l.b16 %v1740_v53  ;;  %v1993_v4 = vunpack.c.h.b16 %v1740_v53 }
  0xfb   : > { %v1223_v51 = vmax.f32 %v1071_v49, 0.0 }
  0xfd   : > { %v1354_v54 = vrot.slane %v1223_v51, 7  ;;  %v1547_v55 = vrot.slane %v1223_v51, 1 }
  0xff   : > { %v1355_v56 = vsel %vm1346_vm1, %v1353_v45, %v1354_v54  ;;  %v1548_v58 = vsel %vm1539_vm2, %v1546_v52, %v1547_v55  ;;  %v1702_v59 = vsel %vm1539_vm2, %v1547_v55, 0.0  ;;  %v804_v61 = vpop.f32.mrf.mxu0 }
 0x100   : > { %v1742_v60 = vpack.c.bf16 %v1223_v51, %v1355_v56  ;;  %v1073_v62 = vpop.f32.mrf.mxu1  ;;  %v1741_v63 = vpack.c.bf16 %v1548_v58, %v1548_v58  ;;  %v1743_v0 = vpack.c.bf16 %v1702_v59, %v1702_v59  ;;  %v805_v1 = vadd.f32 %v6581_v33, %v804_v61 }
 0x101   : > { %v1074_v2 = vadd.f32 %v6586_v34, %v1073_v62 }
 0x102   : > { %v1995_v5 = vunpack.c.l.b16 %v1742_v60  ;;  %v1996_v6 = vunpack.c.h.b16 %v1742_v60  ;;  %v1994_v7 = vunpack.c.l.b16 %v1741_v63  ;;  %v1997_v11 = vunpack.c.l.b16 %v1743_v0  ;;  %955 = vst [vmem:[%s6591_s18 + $0x30] sm:$0xff] %v805_v1  ;;  %5500 = vmatmul.msk.bf16.gmra.mxu0 %vm683_vm0, %v5908_v57 }
 0x103   : > { %v1224_v12 = vmax.f32 %v1074_v2, 0.0  ;;  %5548 = vmatmul.msk.bf16.gmra.mxu1 %vm683_vm0, %v5908_v57 }
 0x104   : > { %v6651_v13 = vpack.c.b16 %v1995_v5, %v1992_v3  ;;  %v6653_v14 = vpack.c.b16 %v1996_v6, %v1993_v4  ;;  %v6655_v15 = vpack.c.b16 %v1997_v11, %v1994_v7  ;;  %v5910_v4 = vld [vmem:[%s6539_s25 + $0x68] sm:$0xff] }
 0x105   : > { %v1356_v16 = vrot.slane %v1224_v12, 7  ;;  %v1549_v24 = vrot.slane %v1224_v12, 1 }
 0x106   : > { %8757 = vst [vmem:[#allocation18_spill] sm:$0xff] %v6651_v13  ;;  %2631 = vmatmul.bf16.gmra.mxu2 %v6651_v13  ;;  %2800 = vmatmul.bf16.gmra.mxu3 %v6653_v14 }
 0x107   : > { %8758 = vst [vmem:[#allocation19_spill] sm:$0xff] %v6653_v14  ;;  %v806_v17 = vpop.f32.mrf.mxu0  ;;  %v1510_v22 = vsel %vm1346_vm1, 0.0, %v1356_v16 }
 0x108   : > { %8759 = vst [vmem:[#allocation20_spill] sm:$0xff] %v6655_v15  ;;  %v1075_v18 = vpop.f32.mrf.mxu1  ;;  %v807_v20 = vadd.f32 %v6581_v33, %v806_v17  ;;  %v1744_v25 = vpack.c.bf16 %v1224_v12, %v1510_v22 }
 0x109   : > { %v1076_v21 = vadd.f32 %v6586_v34, %v1075_v18 }
 0x10a   : > { %956 = vst [vmem:[%s6591_s18 + $0x38] sm:$0xff] %v807_v20  ;;  %v1998_v46 = vunpack.c.l.b16 %v1744_v25  ;;  %v1999_v47 = vunpack.c.h.b16 %v1744_v25 }
 0x10b   : > { %v1225_v23 = vmax.f32 %v1076_v21, 0.0 }
 0x10d   : > { %v1357_v26 = vrot.slane %v1225_v23, 7  ;;  %v1550_v27 = vrot.slane %v1225_v23, 1 }
 0x10f   : > { %v1358_v28 = vsel %vm1346_vm1, %v1356_v16, %v1357_v26  ;;  %v1551_v30 = vsel %vm1539_vm2, %v1549_v24, %v1550_v27  ;;  %v1703_v31 = vsel %vm1539_vm2, %v1550_v27, 0.0  ;;  %v809_v35 = vpop.f32.mrf.mxu0 }
 0x110   : > { %v1746_v32 = vpack.c.bf16 %v1225_v23, %v1358_v28  ;;  %v1078_v36 = vpop.f32.mrf.mxu1  ;;  %v1745_v39 = vpack.c.bf16 %v1551_v30, %v1551_v30  ;;  %v1747_v40 = vpack.c.bf16 %v1703_v31, %v1703_v31  ;;  %v810_v41 = vadd.f32 %v6581_v33, %v809_v35 }
 0x111   : > { %v1079_v45 = vadd.f32 %v6586_v34, %v1078_v36 }
 0x112   : > { %v2001_v48 = vunpack.c.l.b16 %v1746_v32  ;;  %v2002_v49 = vunpack.c.h.b16 %v1746_v32  ;;  %v2000_v50 = vunpack.c.l.b16 %v1745_v39  ;;  %v2003_v51 = vunpack.c.l.b16 %v1747_v40  ;;  %957 = vst [vmem:[%s6591_s18 + $0x40] sm:$0xff] %v810_v41  ;;  %5501 = vmatmul.msk.bf16.gmra.mxu0 %vm683_vm0, %v5909_v29 }
 0x113   : > { %v1226_v52 = vmax.f32 %v1079_v45, 0.0  ;;  %5549 = vmatmul.msk.bf16.gmra.mxu1 %vm683_vm0, %v5909_v29 }
 0x114   : > { %v6672_v53 = vpack.c.b16 %v2001_v48, %v1998_v46  ;;  %v6674_v54 = vpack.c.b16 %v2002_v49, %v1999_v47  ;;  %v6676_v55 = vpack.c.b16 %v2003_v51, %v2000_v50  ;;  %v5911_v47 = vld [vmem:[%s6539_s25 + $0x70] sm:$0xff] }
 0x115   : > { %v1359_v56 = vrot.slane %v1226_v52, 7  ;;  %v1552_v63 = vrot.slane %v1226_v52, 1 }
 0x116   : > { %8760 = vst [vmem:[#allocation21_spill] sm:$0xff] %v6672_v53  ;;  %2636 = vmatmul.bf16.gmra.mxu2 %v6672_v53  ;;  %2805 = vmatmul.bf16.gmra.mxu3 %v6674_v54 }
 0x117   : > { %8761 = vst [vmem:[#allocation22_spill] sm:$0xff] %v6674_v54  ;;  %v811_v57 = vpop.f32.mrf.mxu0  ;;  %v1511_v61 = vsel %vm1346_vm1, 0.0, %v1359_v56 }
 0x118   : > { %8762 = vst [vmem:[#allocation23_spill] sm:$0xff] %v6676_v55  ;;  %v1080_v58 = vpop.f32.mrf.mxu1  ;;  %v812_v59 = vadd.f32 %v6581_v33, %v811_v57  ;;  %v1748_v0 = vpack.c.bf16 %v1226_v52, %v1511_v61 }
 0x119   : > { %v1081_v60 = vadd.f32 %v6586_v34, %v1080_v58 }
 0x11a   : > { %958 = vst [vmem:[%s6591_s18 + $0x48] sm:$0xff] %v812_v59  ;;  %v2004_v20 = vunpack.c.l.b16 %v1748_v0  ;;  %v2005_v21 = vunpack.c.h.b16 %v1748_v0 }
 0x11b   : > { %v1227_v62 = vmax.f32 %v1081_v60, 0.0 }
 0x11d   : > { %v1360_v1 = vrot.slane %v1227_v62, 7  ;;  %v1553_v2 = vrot.slane %v1227_v62, 1 }
 0x11f   : > { %v1361_v3 = vsel %vm1346_vm1, %v1359_v56, %v1360_v1  ;;  %v1554_v5 = vsel %vm1539_vm2, %v1552_v63, %v1553_v2  ;;  %v1704_v6 = vsel %vm1539_vm2, %v1553_v2, 0.0  ;;  %v814_v11 = vpop.f32.mrf.mxu0 }
 0x120   : > { %v1750_v7 = vpack.c.bf16 %v1227_v62, %v1361_v3  ;;  %v1083_v12 = vpop.f32.mrf.mxu1  ;;  %v1749_v16 = vpack.c.bf16 %v1554_v5, %v1554_v5  ;;  %v1751_v17 = vpack.c.bf16 %v1704_v6, %v1704_v6  ;;  %v815_v18 = vadd.f32 %v6581_v33, %v814_v11 }
 0x121   : > { %v1084_v19 = vadd.f32 %v6586_v34, %v1083_v12 }
 0x122   : > { %v2007_v22 = vunpack.c.l.b16 %v1750_v7  ;;  %v2008_v23 = vunpack.c.h.b16 %v1750_v7  ;;  %v2006_v24 = vunpack.c.l.b16 %v1749_v16  ;;  %v2009_v25 = vunpack.c.l.b16 %v1751_v17  ;;  %959 = vst [vmem:[%s6591_s18 + $0x50] sm:$0xff] %v815_v18  ;;  %5502 = vmatmul.msk.bf16.gmra.mxu0 %vm683_vm0, %v5910_v4 }
 0x123   : > { %v1228_v26 = vmax.f32 %v1084_v19, 0.0  ;;  %5550 = vmatmul.msk.bf16.gmra.mxu1 %vm683_vm0, %v5910_v4 }
 0x124   : > { %v6693_v27 = vpack.c.b16 %v2007_v22, %v2004_v20  ;;  %v6695_v28 = vpack.c.b16 %v2008_v23, %v2005_v21  ;;  %v6697_v29 = vpack.c.b16 %v2009_v25, %v2006_v24  ;;  %v5912_v24 = vld [vmem:[%s6539_s25 + $0x78] sm:$0xff] }
 0x125   : > { %v1362_v30 = vrot.slane %v1228_v26, 7  ;;  %v1555_v39 = vrot.slane %v1228_v26, 1 }
 0x126   : > { %8763 = vst [vmem:[#allocation24_spill] sm:$0xff] %v6693_v27  ;;  %2641 = vmatmul.bf16.gmra.mxu2 %v6693_v27  ;;  %2810 = vmatmul.bf16.gmra.mxu3 %v6695_v28 }
 0x127   : > { %8764 = vst [vmem:[#allocation25_spill] sm:$0xff] %v6695_v28  ;;  %v816_v31 = vpop.f32.mrf.mxu0  ;;  %v1512_v37 = vsel %vm1346_vm1, 0.0, %v1362_v30 }
 0x128   : > { %8765 = vst [vmem:[#allocation26_spill] sm:$0xff] %v6697_v29  ;;  %v1085_v32 = vpop.f32.mrf.mxu1  ;;  %v817_v35 = vadd.f32 %v6581_v33, %v816_v31  ;;  %v1752_v40 = vpack.c.bf16 %v1228_v26, %v1512_v37 }
 0x129   : > { %v1086_v36 = vadd.f32 %v6586_v34, %v1085_v32 }
 0x12a   : > { %960 = vst [vmem:[%s6591_s18 + $0x58] sm:$0xff] %v817_v35  ;;  %v2010_v60 = vunpack.c.l.b16 %v1752_v40  ;;  %v2011_v61 = vunpack.c.h.b16 %v1752_v40 }
 0x12b   : > { %v1229_v38 = vmax.f32 %v1086_v36, 0.0 }
 0x12d   : > { %v1363_v41 = vrot.slane %v1229_v38, 7  ;;  %v1556_v45 = vrot.slane %v1229_v38, 1 }
 0x12f   : > { %v1364_v46 = vsel %vm1346_vm1, %v1362_v30, %v1363_v41  ;;  %v1557_v48 = vsel %vm1539_vm2, %v1555_v39, %v1556_v45  ;;  %v1705_v49 = vsel %vm1539_vm2, %v1556_v45, 0.0  ;;  %v819_v51 = vpop.f32.mrf.mxu0 }
 0x130   : > { %v1754_v50 = vpack.c.bf16 %v1229_v38, %v1364_v46  ;;  %v1088_v52 = vpop.f32.mrf.mxu1  ;;  %v1753_v56 = vpack.c.bf16 %v1557_v48, %v1557_v48  ;;  %v1755_v57 = vpack.c.bf16 %v1705_v49, %v1705_v49  ;;  %v820_v58 = vadd.f32 %v6581_v33, %v819_v51 }
 0x131   : > { %v1089_v59 = vadd.f32 %v6586_v34, %v1088_v52 }
 0x132   : > { %v2013_v62 = vunpack.c.l.b16 %v1754_v50  ;;  %v2014_v63 = vunpack.c.h.b16 %v1754_v50  ;;  %v2012_v0 = vunpack.c.l.b16 %v1753_v56  ;;  %v2015_v1 = vunpack.c.l.b16 %v1755_v57  ;;  %961 = vst [vmem:[%s6591_s18 + $0x60] sm:$0xff] %v820_v58  ;;  %5503 = vmatmul.msk.bf16.gmra.mxu0 %vm683_vm0, %v5911_v47  ;;  %v5950_v58 = vld [vmem:[#allocation7 + $0x68] sm:$0xff] }
 0x133   : > { %v1230_v2 = vmax.f32 %v1089_v59, 0.0  ;;  %5551 = vmatmul.msk.bf16.gmra.mxu1 %vm683_vm0, %v5911_v47  ;;  %3435 = vmatpush.bf16.msrb.mxu2 %v5950_v58 }
 0x134   : > { %v6714_v3 = vpack.c.b16 %v2013_v62, %v2010_v60  ;;  %v6716_v4 = vpack.c.b16 %v2014_v63, %v2011_v61  ;;  %v6718_v5 = vpack.c.b16 %v2015_v1, %v2012_v0 }
 0x135   : > { %v1365_v6 = vrot.slane %v1230_v2, 7  ;;  %v1558_v19 = vrot.slane %v1230_v2, 1 }
 0x136   : > { %8766 = vst [vmem:[#allocation27_spill] sm:$0xff] %v6714_v3  ;;  %2646 = vmatmul.bf16.gmra.mxu2 %v6714_v3  ;;  %2815 = vmatmul.bf16.gmra.mxu3 %v6716_v4 }
 0x137   : > { %8767 = vst [vmem:[#allocation28_spill] sm:$0xff] %v6716_v4  ;;  %v821_v7 = vpop.f32.mrf.mxu0  ;;  %v1513_v17 = vsel %vm1346_vm1, 0.0, %v1365_v6 }
 0x138   : > { %8768 = vst [vmem:[#allocation29_spill] sm:$0xff] %v6718_v5  ;;  %v1090_v11 = vpop.f32.mrf.mxu1  ;;  %v822_v12 = vadd.f32 %v6581_v33, %v821_v7  ;;  %v1756_v20 = vpack.c.bf16 %v1230_v2, %v1513_v17  ;;  %v5913_v7 = vld [vmem:[%s6539_s25 + $0x80] sm:$0xff] }
 0x139   : > { %v1091_v16 = vadd.f32 %v6586_v34, %v1090_v11 }
 0x13a   : > { %962 = vst [vmem:[%s6591_s18 + $0x68] sm:$0xff] %v822_v12  ;;  %v2016_v39 = vunpack.c.l.b16 %v1756_v20  ;;  %v2017_v40 = vunpack.c.h.b16 %v1756_v20  ;;  %v5942_v20 = vld [vmem:[#allocation7 + $0x28] sm:$0xff] }
 0x13b   : > { %v1231_v18 = vmax.f32 %v1091_v16, 0.0  ;;  %3266 = vmatpush.bf16.msrb.mxu1 %v5942_v20 }
 0x13d   : > { %v1366_v21 = vrot.slane %v1231_v18, 7  ;;  %v1559_v22 = vrot.slane %v1231_v18, 1 }
 0x13f   : > { %v1367_v23 = vsel %vm1346_vm1, %v1365_v6, %v1366_v21  ;;  %v1560_v25 = vsel %vm1539_vm2, %v1558_v19, %v1559_v22  ;;  %v1706_v26 = vsel %vm1539_vm2, %v1559_v22, 0.0  ;;  %v824_v31 = vpop.f32.mrf.mxu0  ;;  %v5982_v19 = vld [vmem:[#allocation7 + $0x168] sm:$0xff] }
 0x140   : > { %v1758_v30 = vpack.c.bf16 %v1231_v18, %v1367_v23  ;;  %v1093_v32 = vpop.f32.mrf.mxu1  ;;  %v1757_v35 = vpack.c.bf16 %v1560_v25, %v1560_v25  ;;  %v1759_v36 = vpack.c.bf16 %v1706_v26, %v1706_v26  ;;  %v825_v37 = vadd.f32 %v6581_v33, %v824_v31  ;;  %2953 = vmatpush.bf16.msrb.mxu0 %v5982_v19 }
 0x141   : > { %v1094_v38 = vadd.f32 %v6586_v34, %v1093_v32 }
 0x142   : > { %v2019_v41 = vunpack.c.l.b16 %v1758_v30  ;;  %v2020_v45 = vunpack.c.h.b16 %v1758_v30  ;;  %v2018_v46 = vunpack.c.l.b16 %v1757_v35  ;;  %v2021_v47 = vunpack.c.l.b16 %v1759_v36  ;;  %963 = vst [vmem:[%s6591_s18 + $0x70] sm:$0xff] %v825_v37  ;;  %5504 = vmatmul.msk.bf16.gmra.mxu0 %vm683_vm0, %v5912_v24 }
 0x143   : > { %v1232_v48 = vmax.f32 %v1094_v38, 0.0  ;;  %5552 = vmatmul.msk.bf16.gmra.mxu1 %vm683_vm0, %v5912_v24 }
 0x144   : > { %v6735_v49 = vpack.c.b16 %v2019_v41, %v2016_v39  ;;  %v6737_v50 = vpack.c.b16 %v2020_v45, %v2017_v40  ;;  %v6739_v51 = vpack.c.b16 %v2021_v47, %v2018_v46 }
 0x145   : > { %v1368_v52 = vrot.slane %v1232_v48, 7  ;;  %v1561_v63 = vrot.slane %v1232_v48, 1 }
 0x146   : > { %8769 = vst [vmem:[#allocation30_spill] sm:$0xff] %v6735_v49  ;;  %2651 = vmatmul.bf16.gmra.mxu2 %v6735_v49  ;;  %2820 = vmatmul.bf16.gmra.mxu3 %v6737_v50 }
 0x147   : > { %8770 = vst [vmem:[#allocation31_spill] sm:$0xff] %v6737_v50  ;;  %v826_v56 = vpop.f32.mrf.mxu0  ;;  %v1514_v61 = vsel %vm1346_vm1, 0.0, %v1368_v52 }
 0x148   : > { %8771 = vst [vmem:[#allocation32_spill] sm:$0xff] %v6739_v51  ;;  %v1095_v57 = vpop.f32.mrf.mxu1  ;;  %v827_v59 = vadd.f32 %v6581_v33, %v826_v56  ;;  %v1760_v0 = vpack.c.bf16 %v1232_v48, %v1514_v61  ;;  %v5914_v61 = vld [vmem:[%s6539_s25 + $0x88] sm:$0xff] }
 0x149   : > { %v1096_v60 = vadd.f32 %v6586_v34, %v1095_v57 }
 0x14a   : > { %964 = vst [vmem:[%s6591_s18 + $0x78] sm:$0xff] %v827_v59  ;;  %v2022_v25 = vunpack.c.l.b16 %v1760_v0  ;;  %v2023_v26 = vunpack.c.h.b16 %v1760_v0 }
 0x14b   : > { %v1233_v62 = vmax.f32 %v1096_v60, 0.0 }
 0x14d   : > { %v1369_v1 = vrot.slane %v1233_v62, 7  ;;  %v1562_v2 = vrot.slane %v1233_v62, 1 }
 0x14f   : > { %v1370_v6 = vsel %vm1346_vm1, %v1368_v52, %v1369_v1  ;;  %v1563_v11 = vsel %vm1539_vm2, %v1561_v63, %v1562_v2  ;;  %v1707_v12 = vsel %vm1539_vm2, %v1562_v2, 0.0  ;;  %v829_v17 = vpop.f32.mrf.mxu0 }
 0x150   : > { %v1762_v16 = vpack.c.bf16 %v1233_v62, %v1370_v6  ;;  %v1098_v18 = vpop.f32.mrf.mxu1  ;;  %v1761_v21 = vpack.c.bf16 %v1563_v11, %v1563_v11  ;;  %v1763_v22 = vpack.c.bf16 %v1707_v12, %v1707_v12  ;;  %v830_v23 = vadd.f32 %v6581_v33, %v829_v17  ;;  %v5960_v6 = vld [vmem:[#allocation7 + $0xb8] sm:$0xff] }
 0x151   : > { %v1099_v24 = vadd.f32 %v6586_v34, %v1098_v18  ;;  %3602 = vmatpush.bf16.msrb.mxu3 %v5960_v6 }
 0x152   : > { %v2025_v30 = vunpack.c.l.b16 %v1762_v16  ;;  %v2026_v31 = vunpack.c.h.b16 %v1762_v16  ;;  %v2024_v32 = vunpack.c.l.b16 %v1761_v21  ;;  %v2027_v35 = vunpack.c.l.b16 %v1763_v22  ;;  %965 = vst [vmem:[%s6591_s18 + $0x80] sm:$0xff] %v830_v23  ;;  %5505 = vmatmul.msk.bf16.gmra.mxu0 %vm683_vm0, %v5913_v7 }
 0x153   : > { %v1234_v36 = vmax.f32 %v1099_v24, 0.0  ;;  %5553 = vmatmul.msk.bf16.gmra.mxu1 %vm683_vm0, %v5913_v7 }
 0x154   : > { %v6756_v37 = vpack.c.b16 %v2025_v30, %v2022_v25  ;;  %v6758_v38 = vpack.c.b16 %v2026_v31, %v2023_v26  ;;  %v6760_v39 = vpack.c.b16 %v2027_v35, %v2024_v32 }
 0x155   : > { %v1371_v40 = vrot.slane %v1234_v36, 7  ;;  %v1564_v56 = vrot.slane %v1234_v36, 1 }
 0x156   : > { %8772 = vst [vmem:[#allocation33_spill] sm:$0xff] %v6756_v37  ;;  %2656 = vmatmul.bf16.gmra.mxu2 %v6756_v37  ;;  %2825 = vmatmul.bf16.gmra.mxu3 %v6758_v38 }
 0x157   : > { %8773 = vst [vmem:[#allocation34_spill] sm:$0xff] %v6758_v38  ;;  %v831_v41 = vpop.f32.mrf.mxu0  ;;  %v1515_v48 = vsel %vm1346_vm1, 0.0, %v1371_v40 }
 0x158   : > { %8774 = vst [vmem:[#allocation35_spill] sm:$0xff] %v6760_v39  ;;  %v1100_v45 = vpop.f32.mrf.mxu1  ;;  %v832_v46 = vadd.f32 %v6581_v33, %v831_v41  ;;  %v1764_v57 = vpack.c.bf16 %v1234_v36, %v1515_v48 }
 0x159   : > { %v1101_v47 = vadd.f32 %v6586_v34, %v1100_v45 }
 0x15a   : > { %966 = vst [vmem:[%s6591_s18 + $0x88] sm:$0xff] %v832_v46  ;;  %v2028_v17 = vunpack.c.l.b16 %v1764_v57  ;;  %v2029_v18 = vunpack.c.h.b16 %v1764_v57 }
 0x15b   : > { %v1235_v52 = vmax.f32 %v1101_v47, 0.0 }
 0x15d   : > { %v1372_v58 = vrot.slane %v1235_v52, 7  ;;  %v1565_v59 = vrot.slane %v1235_v52, 1 }
 0x15f   : > { %v1373_v60 = vsel %vm1346_vm1, %v1371_v40, %v1372_v58  ;;  %v1566_v62 = vsel %vm1539_vm2, %v1564_v56, %v1565_v59  ;;  %v1708_v63 = vsel %vm1539_vm2, %v1565_v59, 0.0  ;;  %v834_v1 = vpop.f32.mrf.mxu0  ;;  %v5915_v59 = vld [vmem:[%s6539_s25 + $0x90] sm:$0xff] }
 0x160   : > { %v1766_v0 = vpack.c.bf16 %v1235_v52, %v1373_v60  ;;  %v1103_v2 = vpop.f32.mrf.mxu1  ;;  %v1765_v7 = vpack.c.bf16 %v1566_v62, %v1566_v62  ;;  %v1767_v11 = vpack.c.bf16 %v1708_v63, %v1708_v63  ;;  %v835_v12 = vadd.f32 %v6581_v33, %v834_v1 }
 0x161   : > { %v1104_v16 = vadd.f32 %v6586_v34, %v1103_v2 }
 0x162   : > { %v2031_v19 = vunpack.c.l.b16 %v1766_v0  ;;  %v2032_v20 = vunpack.c.h.b16 %v1766_v0  ;;  %v2030_v21 = vunpack.c.l.b16 %v1765_v7  ;;  %v2033_v22 = vunpack.c.l.b16 %v1767_v11  ;;  %967 = vst [vmem:[%s6591_s18 + $0x90] sm:$0xff] %v835_v12  ;;  %5506 = vmatmul.msk.bf16.gmra.mxu0 %vm683_vm0, %v5914_v61 }
 0x163   : > { %v1236_v23 = vmax.f32 %v1104_v16, 0.0  ;;  %5554 = vmatmul.msk.bf16.gmra.mxu1 %vm683_vm0, %v5914_v61 }
 0x164   : > { %v6777_v24 = vpack.c.b16 %v2031_v19, %v2028_v17  ;;  %v6779_v25 = vpack.c.b16 %v2032_v20, %v2029_v18  ;;  %v6781_v26 = vpack.c.b16 %v2033_v22, %v2030_v21 }
 0x165   : > { %v1374_v30 = vrot.slane %v1236_v23, 7  ;;  %v1567_v48 = vrot.slane %v1236_v23, 1 }
 0x166   : > { %8775 = vst [vmem:[#allocation36_spill] sm:$0xff] %v6777_v24  ;;  %2661 = vmatmul.bf16.gmra.mxu2 %v6777_v24  ;;  %2830 = vmatmul.bf16.gmra.mxu3 %v6779_v25 }
 0x167   : > { %8776 = vst [vmem:[#allocation37_spill] sm:$0xff] %v6779_v25  ;;  %v836_v31 = vpop.f32.mrf.mxu0  ;;  %v1516_v45 = vsel %vm1346_vm1, 0.0, %v1374_v30 }
 0x168   : > { %8777 = vst [vmem:[#allocation38_spill] sm:$0xff] %v6781_v26  ;;  %v1105_v32 = vpop.f32.mrf.mxu1  ;;  %v837_v35 = vadd.f32 %v6581_v33, %v836_v31  ;;  %v1768_v52 = vpack.c.bf16 %v1236_v23, %v1516_v45 }
 0x169   : > { %v1106_v36 = vadd.f32 %v6586_v34, %v1105_v32  ;;  %v2622_v40 = vpop.f32.mrf.mxu2  ;;  %v2791_v41 = vpop.f32.mrf.mxu3 }
 0x16a   : > { %v6788_v46 = vadd.f32 %v2791_v41, %v2622_v40  ;;  %968 = vst [vmem:[%s6591_s18 + $0x98] sm:$0xff] %v837_v35  ;;  %v2034_v16 = vunpack.c.l.b16 %v1768_v52  ;;  %v2035_v17 = vunpack.c.h.b16 %v1768_v52 }
 0x16b   : > { %v1237_v47 = vmax.f32 %v1106_v36, 0.0 }
 0x16d   : > { %v1375_v56 = vrot.slane %v1237_v47, 7  ;;  %v1568_v57 = vrot.slane %v1237_v47, 1 }
 0x16f   : > { %v1376_v58 = vsel %vm1346_vm1, %v1374_v30, %v1375_v56  ;;  %v1569_v60 = vsel %vm1539_vm2, %v1567_v48, %v1568_v57  ;;  %v1709_v61 = vsel %vm1539_vm2, %v1568_v57, 0.0  ;;  %v839_v63 = vpop.f32.mrf.mxu0 }
 0x170   : > { %v1770_v62 = vpack.c.bf16 %v1237_v47, %v1376_v58  ;;  %v1108_v0 = vpop.f32.mrf.mxu1  ;;  %v1769_v1 = vpack.c.bf16 %v1569_v60, %v1569_v60  ;;  %v1771_v2 = vpack.c.bf16 %v1709_v61, %v1709_v61  ;;  %v840_v6 = vadd.f32 %v6581_v33, %v839_v63  ;;  %v5916_v63 = vld [vmem:[%s6539_s25 + $0x98] sm:$0xff] }
 0x171   : > { %v1109_v7 = vadd.f32 %v6586_v34, %v1108_v0  ;;  %v2624_v11 = vpop.f32.mrf.mxu2  ;;  %v2793_v12 = vpop.f32.mrf.mxu3 }
 0x172   : > { %v6797_v18 = vadd.f32 %v2793_v12, %v2624_v11  ;;  %v2037_v19 = vunpack.c.l.b16 %v1770_v62  ;;  %v2038_v20 = vunpack.c.h.b16 %v1770_v62  ;;  %v2036_v21 = vunpack.c.l.b16 %v1769_v1  ;;  %969 = vst [vmem:[%s6591_s18 + $0xa0] sm:$0xff] %v840_v6  ;;  %5507 = vmatmul.msk.bf16.gmra.mxu0 %vm683_vm0, %v5915_v59 }
 0x173   : > { %v1238_v22 = vmax.f32 %v1109_v7, 0.0  ;;  %5555 = vmatmul.msk.bf16.gmra.mxu1 %vm683_vm0, %v5915_v59  ;;  %v2039_v23 = vunpack.c.l.b16 %v1771_v2 }
 0x174   : > { %v6802_v30 = vpack.c.b16 %v2037_v19, %v2034_v16  ;;  %v6804_v31 = vpack.c.b16 %v2038_v20, %v2035_v17 }
 0x175   : > { %v6806_v32 = vpack.c.b16 %v2039_v23, %v2036_v21  ;;  %v1377_v35 = vrot.slane %v1238_v22, 7  ;;  %v1570_v58 = vrot.slane %v1238_v22, 1 }
 0x176   : > { %8778 = vst [vmem:[#allocation39_spill] sm:$0xff] %v6802_v30  ;;  %2666 = vmatmul.bf16.gmra.mxu2 %v6802_v30  ;;  %2835 = vmatmul.bf16.gmra.mxu3 %v6804_v31 }
 0x177   : > { %8779 = vst [vmem:[#allocation40_spill] sm:$0xff] %v6804_v31  ;;  %v841_v36 = vpop.f32.mrf.mxu0  ;;  %v1517_v52 = vsel %vm1346_vm1, 0.0, %v1377_v35 }
 0x178   : > { %8780 = vst [vmem:[#allocation41_spill] sm:$0xff] %v6806_v32  ;;  %v1110_v40 = vpop.f32.mrf.mxu1  ;;  %v842_v41 = vadd.f32 %v6581_v33, %v841_v36  ;;  %v1772_v59 = vpack.c.bf16 %v1238_v22, %v1517_v52 }
 0x179   : > { %v1111_v45 = vadd.f32 %v6586_v34, %v1110_v40  ;;  %v2627_v47 = vpop.f32.mrf.mxu2  ;;  %v2796_v48 = vpop.f32.mrf.mxu3 }
 0x17a   : > { %v6813_v56 = vadd.f32 %v2796_v48, %v2627_v47  ;;  %970 = vst [vmem:[%s6591_s18 + $0xa8] sm:$0xff] %v842_v41  ;;  %v2040_v21 = vunpack.c.l.b16 %v1772_v59  ;;  %v2041_v22 = vunpack.c.h.b16 %v1772_v59 }
 0x17b   : > { %v1239_v57 = vmax.f32 %v1111_v45, 0.0 }
 0x17d   : > { %v1378_v60 = vrot.slane %v1239_v57, 7  ;;  %v1571_v61 = vrot.slane %v1239_v57, 1 }
 0x17f   : > { %v1379_v62 = vsel %vm1346_vm1, %v1377_v35, %v1378_v60  ;;  %v1572_v0 = vsel %vm1539_vm2, %v1570_v58, %v1571_v61  ;;  %v1710_v1 = vsel %vm1539_vm2, %v1571_v61, 0.0  ;;  %v844_v6 = vpop.f32.mrf.mxu0  ;;  %v5949_v60 = vld [vmem:[#allocation7 + $0x60] sm:$0xff] }
 0x180   : > { %v1774_v2 = vpack.c.bf16 %v1239_v57, %v1379_v62  ;;  %v1113_v7 = vpop.f32.mrf.mxu1  ;;  %v1773_v11 = vpack.c.bf16 %v1572_v0, %v1572_v0  ;;  %v1775_v12 = vpack.c.bf16 %v1710_v1, %v1710_v1  ;;  %v845_v16 = vadd.f32 %v6581_v33, %v844_v6  ;;  %3436 = vmatpush.bf16.msrb.mxu2 %v5949_v60 }
 0x181   : > { %v1114_v17 = vadd.f32 %v6586_v34, %v1113_v7  ;;  %v2629_v19 = vpop.f32.mrf.mxu2  ;;  %v2798_v20 = vpop.f32.mrf.mxu3 }
 0x182   : > { %v6822_v23 = vadd.f32 %v2798_v20, %v2629_v19  ;;  %v2043_v35 = vunpack.c.l.b16 %v1774_v2  ;;  %v2044_v36 = vunpack.c.h.b16 %v1774_v2  ;;  %v2042_v40 = vunpack.c.l.b16 %v1773_v11  ;;  %971 = vst [vmem:[%s6591_s18 + $0xb0] sm:$0xff] %v845_v16  ;;  %5508 = vmatmul.msk.bf16.gmra.mxu0 %vm683_vm0, %v5916_v63  ;;  %v5917_v19 = vld [vmem:[%s6539_s25 + $0xa0] sm:$0xff] }
 0x183   : > { %v1240_v41 = vmax.f32 %v1114_v17, 0.0  ;;  %5556 = vmatmul.msk.bf16.gmra.mxu1 %vm683_vm0, %v5916_v63  ;;  %v2045_v45 = vunpack.c.l.b16 %v1775_v12 }
 0x184   : > { %v6827_v47 = vpack.c.b16 %v2043_v35, %v2040_v21  ;;  %v6829_v48 = vpack.c.b16 %v2044_v36, %v2041_v22 }
 0x185   : > { %v6831_v52 = vpack.c.b16 %v2045_v45, %v2042_v40  ;;  %v1380_v57 = vrot.slane %v1240_v41, 7  ;;  %v1573_v7 = vrot.slane %v1240_v41, 1  ;;  %v5981_v40 = vld [vmem:[#allocation7 + $0x160] sm:$0xff] }
 0x186   : > { %8781 = vst [vmem:[#allocation42_spill] sm:$0xff] %v6827_v47  ;;  %2671 = vmatmul.bf16.gmra.mxu2 %v6827_v47  ;;  %2840 = vmatmul.bf16.gmra.mxu3 %v6829_v48  ;;  %v5941_v45 = vld [vmem:[#allocation7 + $0x20] sm:$0xff] }
 0x187   : > { %8782 = vst [vmem:[#allocation43_spill] sm:$0xff] %v6829_v48  ;;  %v846_v58 = vpop.f32.mrf.mxu0  ;;  %v1518_v1 = vsel %vm1346_vm1, 0.0, %v1380_v57  ;;  %2954 = vmatpush.bf16.msrb.mxu0 %v5981_v40  ;;  %3267 = vmatpush.bf16.msrb.mxu1 %v5941_v45 }
 0x188   : > { %8783 = vst [vmem:[#allocation44_spill] sm:$0xff] %v6831_v52  ;;  %v1115_v59 = vpop.f32.mrf.mxu1  ;;  %v847_v61 = vadd.f32 %v6581_v33, %v846_v58  ;;  %v1776_v11 = vpack.c.bf16 %v1240_v41, %v1518_v1 }
 0x189   : > { %v1116_v62 = vadd.f32 %v6586_v34, %v1115_v59  ;;  %v2632_v63 = vpop.f32.mrf.mxu2  ;;  %v2801_v0 = vpop.f32.mrf.mxu3 }
 0x18a   : > { %v6838_v2 = vadd.f32 %v2801_v0, %v2632_v63  ;;  %972 = vst [vmem:[%s6591_s18 + $0xb8] sm:$0xff] %v847_v61  ;;  %v2047_v63 = vunpack.c.h.b16 %v1776_v11 }
 0x18b   : > { %v1241_v6 = vmax.f32 %v1116_v62, 0.0 }
 0x18d   : > { %v1381_v12 = vrot.slane %v1241_v6, 7  ;;  %v1574_v16 = vrot.slane %v1241_v6, 1 }
 0x18f   : > { %v1382_v17 = vsel %vm1346_vm1, %v1380_v57, %v1381_v12  ;;  %v1575_v20 = vsel %vm1539_vm2, %v1573_v7, %v1574_v16  ;;  %v1711_v21 = vsel %vm1539_vm2, %v1574_v16, 0.0  ;;  %v849_v35 = vpop.f32.mrf.mxu0  ;;  %v2046_v57 = vunpack.c.l.b16 %v1776_v11 }
 0x190   : > { %v1778_v22 = vpack.c.bf16 %v1241_v6, %v1382_v17  ;;  %v1118_v36 = vpop.f32.mrf.mxu1  ;;  %v1777_v58 = vpack.c.bf16 %v1575_v20, %v1575_v20  ;;  %v1779_v59 = vpack.c.bf16 %v1711_v21, %v1711_v21  ;;  %v850_v60 = vadd.f32 %v6581_v33, %v849_v35  ;;  %v6869_v35 = vld [vmem:[%s8586_s2] ss:$0 sm:$0xff] }
 0x191   : > { %v1119_v41 = vadd.f32 %v6586_v34, %v1118_v36  ;;  %v2634_v61 = vpop.f32.mrf.mxu2  ;;  %v2803_v62 = vpop.f32.mrf.mxu3 }
 0x192   : > { %v6847_v0 = vadd.f32 %v2803_v62, %v2634_v61  ;;  %v2049_v1 = vunpack.c.l.b16 %v1778_v22  ;;  %v2050_v7 = vunpack.c.h.b16 %v1778_v22  ;;  %v2048_v6 = vunpack.c.l.b16 %v1777_v58  ;;  %973 = vst [vmem:[%s6591_s18 + $0xc0] sm:$0xff] %v850_v60  ;;  %5509 = vmatmul.msk.bf16.gmra.mxu0 %vm683_vm0, %v5917_v19 }
 0x193   : > { %v1242_v12 = vmax.f32 %v1119_v41, 0.0  ;;  %5557 = vmatmul.msk.bf16.gmra.mxu1 %vm683_vm0, %v5917_v19  ;;  %v2051_v33 = vunpack.c.l.b16 %v1779_v59  ;;  %v6863_v19 = vld [vmem:[%s8592_s8] ss:$0 sm:$0xff] }
 0x194   : > { %v6852_v16 = vpack.c.b16 %v2049_v1, %v2046_v57  ;;  %v6854_v34 = vpack.c.b16 %v2050_v7, %v2047_v63  ;;  %v5918_v1 = vld [vmem:[%s6539_s25 + $0xa8] sm:$0xff] }
 0x195   : > { %v6856_v11 = vpack.c.b16 %v2051_v33, %v2048_v6  ;;  %v1383_v17 = vrot.slane %v1242_v12, 7  ;;  %v1576_v41 = vrot.slane %v1242_v12, 1 }
 0x196   : > { %8784 = vst [vmem:[#allocation45_spill] sm:$0xff] %v6852_v16  ;;  %2676 = vmatmul.bf16.gmra.mxu2 %v6852_v16  ;;  %2845 = vmatmul.bf16.gmra.mxu3 %v6854_v34 }
 0x197   : > { %8785 = vst [vmem:[#allocation46_spill] sm:$0xff] %v6854_v34  ;;  %v851_v20 = vpop.f32.mrf.mxu0  ;;  %v1519_v58 = vsel %vm1346_vm1, 0.0, %v1383_v17  ;;  %v5959_v34 = vld [vmem:[#allocation7 + $0xb0] sm:$0xff] }
 0x198   : > { %8786 = vst [vmem:[#allocation47_spill] sm:$0xff] %v6856_v11  ;;  %v1120_v21 = vpop.f32.mrf.mxu1  ;;  %v852_v22 = vadd.f32 %v6863_v19, %v851_v20  ;;  %v1780_v61 = vpack.c.bf16 %v1242_v12, %v1519_v58  ;;  %3603 = vmatpush.bf16.msrb.mxu3 %v5959_v34 }
 0x199   : > { %v1121_v36 = vadd.f32 %v6869_v35, %v1120_v21  ;;  %v2637_v40 = vpop.f32.mrf.mxu2  ;;  %v2806_v45 = vpop.f32.mrf.mxu3 }
 0x19a   : > { %v6873_v59 = vadd.f32 %v2806_v45, %v2637_v40  ;;  %974 = vst [vmem:[%s6591_s18 + $0xc8] sm:$0xff] %v852_v22  ;;  %v2052_v48 = vunpack.c.l.b16 %v1780_v61 }
 0x19b   : > { %v1243_v60 = vmax.f32 %v1121_v36, 0.0 }
 0x19d   : > { %v1384_v62 = vrot.slane %v1243_v60, 7  ;;  %v1577_v57 = vrot.slane %v1243_v60, 1 }
 0x19f   : > { %v1385_v63 = vsel %vm1346_vm1, %v1383_v17, %v1384_v62  ;;  %v1578_v7 = vsel %vm1539_vm2, %v1576_v41, %v1577_v57  ;;  %v1712_v6 = vsel %vm1539_vm2, %v1577_v57, 0.0  ;;  %v854_v20 = vpop.f32.mrf.mxu0  ;;  %v2053_v17 = vunpack.c.h.b16 %v1780_v61 }
 0x1a0   : > { %v1782_v33 = vpack.c.bf16 %v1243_v60, %v1385_v63  ;;  %v1123_v21 = vpop.f32.mrf.mxu1  ;;  %v1781_v40 = vpack.c.bf16 %v1578_v7, %v1578_v7  ;;  %v1783_v45 = vpack.c.bf16 %v1712_v6, %v1712_v6  ;;  %v855_v22 = vadd.f32 %v6863_v19, %v854_v20 }
 0x1a1   : > { %v1124_v12 = vadd.f32 %v6869_v35, %v1123_v21  ;;  %v2639_v36 = vpop.f32.mrf.mxu2  ;;  %v2808_v58 = vpop.f32.mrf.mxu3 }
 0x1a2   : > { %v6882_v62 = vadd.f32 %v2808_v58, %v2639_v36  ;;  %v2055_v41 = vunpack.c.l.b16 %v1782_v33  ;;  %v2056_v31 = vunpack.c.h.b16 %v1782_v33  ;;  %v2054_v60 = vunpack.c.l.b16 %v1781_v40  ;;  %975 = vst [vmem:[%s6591_s18 + $0xd0] sm:$0xff] %v855_v22  ;;  %5510 = vmatmul.msk.bf16.gmra.mxu0 %vm683_vm0, %v5918_v1 }
 0x1a3   : > { %v1244_v57 = vmax.f32 %v1124_v12, 0.0  ;;  %5558 = vmatmul.msk.bf16.gmra.mxu1 %vm683_vm0, %v5918_v1  ;;  %v2057_v63 = vunpack.c.l.b16 %v1783_v45 }
 0x1a4   : > { %v6887_v7 = vpack.c.b16 %v2055_v41, %v2052_v48  ;;  %v6889_v6 = vpack.c.b16 %v2056_v31, %v2053_v17 }
 0x1a5   : > { %v6891_v20 = vpack.c.b16 %v2057_v63, %v2054_v60  ;;  %v1386_v61 = vrot.slane %v1244_v57, 7  ;;  %v1579_v12 = vrot.slane %v1244_v57, 1  ;;  %v5919_v60 = vld [vmem:[%s6539_s25 + $0xb0] sm:$0xff] }
 0x1a6   : > { %8787 = vst [vmem:[#allocation48_spill] sm:$0xff] %v6887_v7  ;;  %2681 = vmatmul.bf16.gmra.mxu2 %v6887_v7  ;;  %2850 = vmatmul.bf16.gmra.mxu3 %v6889_v6 }
 0x1a7   : > { %8788 = vst [vmem:[#allocation49_spill] sm:$0xff] %v6889_v6  ;;  %v856_v34 = vpop.f32.mrf.mxu0  ;;  %v1520_v48 = vsel %vm1346_vm1, 0.0, %v1386_v61 }
 0x1a8   : > { %8789 = vst [vmem:[#allocation50_spill] sm:$0xff] %v6891_v20  ;;  %v1125_v33 = vpop.f32.mrf.mxu1  ;;  %v857_v21 = vadd.f32 %v6863_v19, %v856_v34  ;;  %v1784_v36 = vpack.c.bf16 %v1244_v57, %v1520_v48 }
 0x1a9   : > { %v1126_v1 = vadd.f32 %v6869_v35, %v1125_v33  ;;  %v2642_v40 = vpop.f32.mrf.mxu2  ;;  %v2811_v45 = vpop.f32.mrf.mxu3 }
 0x1aa   : > { %v6898_v31 = vadd.f32 %v2811_v45, %v2642_v40  ;;  %976 = vst [vmem:[%s6591_s18 + $0xd8] sm:$0xff] %v857_v21  ;;  %v2058_v48 = vunpack.c.l.b16 %v1784_v36  ;;  %v2059_v50 = vunpack.c.h.b16 %v1784_v36 }
 0x1ab   : > { %v1245_v22 = vmax.f32 %v1126_v1, 0.0 }
 0x1ad   : > { %v1387_v58 = vrot.slane %v1245_v22, 7  ;;  %v1580_v17 = vrot.slane %v1245_v22, 1 }
 0x1af   : > { %v1388_v41 = vsel %vm1346_vm1, %v1386_v61, %v1387_v58  ;;  %v1581_v63 = vsel %vm1539_vm2, %v1579_v12, %v1580_v17  ;;  %v1713_v34 = vsel %vm1539_vm2, %v1580_v17, 0.0  ;;  %v859_v6 = vpop.f32.mrf.mxu0 }
 0x1b0   : > { %v1786_v33 = vpack.c.bf16 %v1245_v22, %v1388_v41  ;;  %v1128_v25 = vpop.f32.mrf.mxu1  ;;  %v1785_v38 = vpack.c.bf16 %v1581_v63, %v1581_v63  ;;  %v1787_v40 = vpack.c.bf16 %v1713_v34, %v1713_v34  ;;  %v860_v21 = vadd.f32 %v6863_v19, %v859_v6 }
 0x1b1   : > { %v1129_v1 = vadd.f32 %v6869_v35, %v1128_v25  ;;  %v2644_v57 = vpop.f32.mrf.mxu2  ;;  %v2813_v45 = vpop.f32.mrf.mxu3 }
 0x1b2   : > { %v6907_v61 = vadd.f32 %v2813_v45, %v2644_v57  ;;  %v2061_v58 = vunpack.c.l.b16 %v1786_v33  ;;  %v2062_v12 = vunpack.c.h.b16 %v1786_v33  ;;  %v2060_v4 = vunpack.c.l.b16 %v1785_v38  ;;  %977 = vst [vmem:[%s6591_s18 + $0xe0] sm:$0xff] %v860_v21  ;;  %5511 = vmatmul.msk.bf16.gmra.mxu0 %vm683_vm0, %v5919_v60 }
 0x1b3   : > { %v1246_v17 = vmax.f32 %v1129_v1, 0.0  ;;  %5559 = vmatmul.msk.bf16.gmra.mxu1 %vm683_vm0, %v5919_v60  ;;  %v2063_v22 = vunpack.c.l.b16 %v1787_v40 }
 0x1b4   : > { %v6912_v6 = vpack.c.b16 %v2061_v58, %v2058_v48  ;;  %v6914_v25 = vpack.c.b16 %v2062_v12, %v2059_v50  ;;  %v5920_v12 = vld [vmem:[%s6539_s25 + $0xb8] sm:$0xff] }
 0x1b5   : > { %v6916_v41 = vpack.c.b16 %v2063_v22, %v2060_v4  ;;  %v1389_v36 = vrot.slane %v1246_v17, 7  ;;  %v1582_v1 = vrot.slane %v1246_v17, 1 }
 0x1b6   : > { %8790 = vst [vmem:[#allocation51_spill] sm:$0xff] %v6912_v6  ;;  %2686 = vmatmul.bf16.gmra.mxu2 %v6912_v6  ;;  %2855 = vmatmul.bf16.gmra.mxu3 %v6914_v25 }
 0x1b7   : > { %8791 = vst [vmem:[#allocation52_spill] sm:$0xff] %v6914_v25  ;;  %v861_v38 = vpop.f32.mrf.mxu0  ;;  %v1521_v21 = vsel %vm1346_vm1, 0.0, %v1389_v36 }
 0x1b8   : > { %8792 = vst [vmem:[#allocation53_spill] sm:$0xff] %v6916_v41  ;;  %v1130_v63 = vpop.f32.mrf.mxu1  ;;  %v862_v34 = vadd.f32 %v6863_v19, %v861_v38  ;;  %v1788_v57 = vpack.c.bf16 %v1246_v17, %v1521_v21 }
 0x1b9   : > { %v1131_v60 = vadd.f32 %v6869_v35, %v1130_v63  ;;  %v2647_v33 = vpop.f32.mrf.mxu2  ;;  %v2816_v40 = vpop.f32.mrf.mxu3 }
 0x1ba   : > { %v6923_v50 = vadd.f32 %v2816_v40, %v2647_v33  ;;  %978 = vst [vmem:[%s6591_s18 + $0xe8] sm:$0xff] %v862_v34  ;;  %v2064_v21 = vunpack.c.l.b16 %v1788_v57  ;;  %v2065_v54 = vunpack.c.h.b16 %v1788_v57 }
 0x1bb   : > { %v1247_v4 = vmax.f32 %v1131_v60, 0.0 }
 0x1bd   : > { %v1390_v45 = vrot.slane %v1247_v4, 7  ;;  %v1583_v48 = vrot.slane %v1247_v4, 1 }
 0x1bf   : > { %v1391_v58 = vsel %vm1346_vm1, %v1389_v36, %v1390_v45  ;;  %v1584_v22 = vsel %vm1539_vm2, %v1582_v1, %v1583_v48  ;;  %v1714_v38 = vsel %vm1539_vm2, %v1583_v48, 0.0  ;;  %v864_v25 = vpop.f32.mrf.mxu0 }
 0x1c0   : > { %v1790_v63 = vpack.c.bf16 %v1247_v4, %v1391_v58  ;;  %v1133_v28 = vpop.f32.mrf.mxu1  ;;  %v1789_v6 = vpack.c.bf16 %v1584_v22, %v1584_v22  ;;  %v1791_v33 = vpack.c.bf16 %v1714_v38, %v1714_v38  ;;  %v865_v34 = vadd.f32 %v6863_v19, %v864_v25  ;;  %v5948_v38 = vld [vmem:[#allocation7 + $0x58] sm:$0xff] }
 0x1c1   : > { %v1134_v60 = vadd.f32 %v6869_v35, %v1133_v28  ;;  %v2649_v17 = vpop.f32.mrf.mxu2  ;;  %v2818_v40 = vpop.f32.mrf.mxu3  ;;  %3437 = vmatpush.bf16.msrb.mxu2 %v5948_v38 }
 0x1c2   : > { %v6932_v36 = vadd.f32 %v2818_v40, %v2649_v17  ;;  %v2067_v45 = vunpack.c.l.b16 %v1790_v63  ;;  %v2068_v1 = vunpack.c.h.b16 %v1790_v63  ;;  %v2066_v7 = vunpack.c.l.b16 %v1789_v6  ;;  %979 = vst [vmem:[%s6591_s18 + $0xf0] sm:$0xff] %v865_v34  ;;  %5512 = vmatmul.msk.bf16.gmra.mxu0 %vm683_vm0, %v5920_v12 }
 0x1c3   : > { %v1248_v48 = vmax.f32 %v1134_v60, 0.0  ;;  %5560 = vmatmul.msk.bf16.gmra.mxu1 %vm683_vm0, %v5920_v12  ;;  %v2069_v4 = vunpack.c.l.b16 %v1791_v33 }
 0x1c4   : > { %8793 = vst [vmem:[#allocation54_spill] sm:$0xff] %v6932_v36  ;;  %v6937_v58 = vpack.c.b16 %v2067_v45, %v2064_v21  ;;  %v6939_v28 = vpack.c.b16 %v2068_v1, %v2065_v54  ;;  %v5980_v36 = vld [vmem:[#allocation7 + $0x158] sm:$0xff] }
 0x1c5   : > { %v6941_v25 = vpack.c.b16 %v2069_v4, %v2066_v7  ;;  %v1392_v57 = vrot.slane %v1248_v48, 7  ;;  %v1585_v17 = vrot.slane %v1248_v48, 1  ;;  %v5921_v4 = vld [vmem:[%s6539_s25 + $0xc0] sm:$0xff]  ;;  %2955 = vmatpush.bf16.msrb.mxu0 %v5980_v36 }
 0x1c6   : > { %8794 = vst [vmem:[#allocation55_spill] sm:$0xff] %v6937_v58  ;;  %2691 = vmatmul.bf16.gmra.mxu2 %v6937_v58  ;;  %2860 = vmatmul.bf16.gmra.mxu3 %v6939_v28 }
 0x1c7   : > { %8795 = vst [vmem:[#allocation56_spill] sm:$0xff] %v6939_v28  ;;  %v866_v6 = vpop.f32.mrf.mxu0  ;;  %v1522_v54 = vsel %vm1346_vm1, 0.0, %v1392_v57 }
 0x1c8   : > { %8796 = vst [vmem:[#allocation57_spill] sm:$0xff] %v6941_v25  ;;  %v1135_v22 = vpop.f32.mrf.mxu1  ;;  %v867_v63 = vadd.f32 %v6863_v19, %v866_v6  ;;  %v1792_v40 = vpack.c.bf16 %v1248_v48, %v1522_v54 }
 0x1c9   : > { %v1136_v12 = vadd.f32 %v6869_v35, %v1135_v22  ;;  %v2652_v33 = vpop.f32.mrf.mxu2  ;;  %v2821_v34 = vpop.f32.mrf.mxu3 }
 0x1ca   : > { %v6948_v60 = vadd.f32 %v2821_v34, %v2652_v33  ;;  %980 = vst [vmem:[%s6591_s18 + $0xf8] sm:$0xff] %v867_v63  ;;  %v5940_v33 = vld [vmem:[#allocation7 + $0x18] sm:$0xff] }
 0x1cb   : > { %v1249_v7 = vmax.f32 %v1136_v12, 0.0  ;;  %3268 = vmatpush.bf16.msrb.mxu1 %v5940_v33 }
 0x1cc   : > { %8797 = vst [vmem:[#allocation58_spill] sm:$0xff] %v6948_v60 }
 0x1cd   : > { %v1393_v21 = vrot.slane %v1249_v7, 7  ;;  %v1586_v45 = vrot.slane %v1249_v7, 1 }
 0x1cf   : > { %v1394_v1 = vsel %vm1346_vm1, %v1392_v57, %v1393_v21  ;;  %v1587_v6 = vsel %vm1539_vm2, %v1585_v17, %v1586_v45  ;;  %v1715_v22 = vsel %vm1539_vm2, %v1586_v45, 0.0  ;;  %v869_v58 = vpop.f32.mrf.mxu0  ;;  %v2445_v57 = vunpack.c.l.b16 %v1792_v40 }
 0x1d0   : > { %v1794_v28 = vpack.c.bf16 %v1249_v7, %v1394_v1  ;;  %v1138_v25 = vpop.f32.mrf.mxu1  ;;  %v1793_v38 = vpack.c.bf16 %v1587_v6, %v1587_v6  ;;  %v1795_v63 = vpack.c.bf16 %v1715_v22, %v1715_v22  ;;  %v870_v12 = vadd.f32 %v6863_v19, %v869_v58 }
 0x1d1   : > { %v1139_v48 = vadd.f32 %v6869_v35, %v1138_v25  ;;  %v2654_v34 = vpop.f32.mrf.mxu2  ;;  %v2823_v54 = vpop.f32.mrf.mxu3  ;;  %v2446_v21 = vunpack.c.h.b16 %v1792_v40 }
 0x1d2   : > { %v6957_v60 = vadd.f32 %v2823_v54, %v2654_v34  ;;  %v2448_v17 = vunpack.c.l.b16 %v1794_v28  ;;  %v2449_v45 = vunpack.c.h.b16 %v1794_v28  ;;  %v2447_v7 = vunpack.c.l.b16 %v1793_v38  ;;  %981 = vst [vmem:[%s6591_s18 + $0x100] sm:$0xff] %v870_v12  ;;  %5513 = vmatmul.msk.bf16.gmra.mxu0 %vm683_vm0, %v5921_v4 }
 0x1d3   : > { %v1250_v1 = vmax.f32 %v1139_v48, 0.0  ;;  %5561 = vmatmul.msk.bf16.gmra.mxu1 %vm683_vm0, %v5921_v4  ;;  %v2450_v58 = vunpack.c.l.b16 %v1795_v63 }
 0x1d4   : > { %8798 = vst [vmem:[#allocation59_spill] sm:$0xff] %v6957_v60  ;;  %v6962_v25 = vpack.c.b16 %v2448_v17, %v2445_v57  ;;  %v6964_v6 = vpack.c.b16 %v2449_v45, %v2446_v21 }
 0x1d5   : > { %v6966_v40 = vpack.c.b16 %v2450_v58, %v2447_v7  ;;  %v1395_v22 = vrot.slane %v1250_v1, 7  ;;  %v1588_v54 = vrot.slane %v1250_v1, 1  ;;  %v5922_v7 = vld [vmem:[%s6539_s25 + $0xc8] sm:$0xff] }
 0x1d6   : > { %8799 = vst [vmem:[#allocation60_spill] sm:$0xff] %v6962_v25  ;;  %2696 = vmatmul.bf16.gmra.mxu2 %v6962_v25  ;;  %2865 = vmatmul.bf16.gmra.mxu3 %v6964_v6 }
 0x1d7   : > { %8800 = vst [vmem:[#allocation61_spill] sm:$0xff] %v6964_v6  ;;  %v871_v36 = vpop.f32.mrf.mxu0  ;;  %v1523_v12 = vsel %vm1346_vm1, 0.0, %v1395_v22 }
 0x1d8   : > { %8801 = vst [vmem:[#allocation62_spill] sm:$0xff] %v6966_v40  ;;  %v1140_v28 = vpop.f32.mrf.mxu1  ;;  %v872_v33 = vadd.f32 %v6863_v19, %v871_v36  ;;  %v1796_v57 = vpack.c.bf16 %v1250_v1, %v1523_v12  ;;  %v5958_v40 = vld [vmem:[#allocation7 + $0xa8] sm:$0xff] }
 0x1d9   : > { %v1141_v4 = vadd.f32 %v6869_v35, %v1140_v28  ;;  %v2657_v38 = vpop.f32.mrf.mxu2  ;;  %v2826_v63 = vpop.f32.mrf.mxu3  ;;  %3604 = vmatpush.bf16.msrb.mxu3 %v5958_v40 }
 0x1da   : > { %v6973_v48 = vadd.f32 %v2826_v63, %v2657_v38  ;;  %982 = vst [vmem:[%s6591_s18 + $0x108] sm:$0xff] %v872_v33 }
 0x1db   : > { %v1251_v34 = vmax.f32 %v1141_v4, 0.0 }
 0x1dc   : > { %8802 = vst [vmem:[#allocation63_spill] sm:$0xff] %v6973_v48  ;;  %v2070_v48 = vunpack.c.l.b16 %v1796_v57 }
 0x1dd   : > { %v1396_v21 = vrot.slane %v1251_v34, 7  ;;  %v1589_v17 = vrot.slane %v1251_v34, 1 }
 0x1df   : > { %v1397_v45 = vsel %vm1346_vm1, %v1395_v22, %v1396_v21  ;;  %v1590_v58 = vsel %vm1539_vm2, %v1588_v54, %v1589_v17  ;;  %v1716_v36 = vsel %vm1539_vm2, %v1589_v17, 0.0  ;;  %v874_v6 = vpop.f32.mrf.mxu0  ;;  %v2071_v22 = vunpack.c.h.b16 %v1796_v57 }
 0x1e0   : > { %v1798_v28 = vpack.c.bf16 %v1251_v34, %v1397_v45  ;;  %v1143_v25 = vpop.f32.mrf.mxu1  ;;  %v1797_v38 = vpack.c.bf16 %v1590_v58, %v1590_v58  ;;  %v1799_v63 = vpack.c.bf16 %v1716_v36, %v1716_v36  ;;  %v875_v33 = vadd.f32 %v6863_v19, %v874_v6 }
 0x1e1   : > { %v1144_v1 = vadd.f32 %v6869_v35, %v1143_v25  ;;  %v2659_v4 = vpop.f32.mrf.mxu2  ;;  %v2828_v12 = vpop.f32.mrf.mxu3 }
 0x1e2   : > { %v6982_v21 = vadd.f32 %v2828_v12, %v2659_v4  ;;  %v2073_v54 = vunpack.c.l.b16 %v1798_v28  ;;  %v2074_v60 = vunpack.c.h.b16 %v1798_v28  ;;  %v2072_v34 = vunpack.c.l.b16 %v1797_v38  ;;  %983 = vst [vmem:[%s6591_s18 + $0x110] sm:$0xff] %v875_v33  ;;  %5514 = vmatmul.msk.bf16.gmra.mxu0 %vm683_vm0, %v5922_v7 }
 0x1e3   : > { %v1252_v17 = vmax.f32 %v1144_v1, 0.0  ;;  %5562 = vmatmul.msk.bf16.gmra.mxu1 %vm683_vm0, %v5922_v7  ;;  %v2075_v6 = vunpack.c.l.b16 %v1799_v63 }
 0x1e4   : > { %8803 = vst [vmem:[#allocation64_spill] sm:$0xff] %v6982_v21  ;;  %v6987_v45 = vpack.c.b16 %v2073_v54, %v2070_v48  ;;  %v6989_v25 = vpack.c.b16 %v2074_v60, %v2071_v22 }
 0x1e5   : > { %v6991_v58 = vpack.c.b16 %v2075_v6, %v2072_v34  ;;  %v1398_v57 = vrot.slane %v1252_v17, 7  ;;  %v1591_v1 = vrot.slane %v1252_v17, 1  ;;  %v5923_v34 = vld [vmem:[%s6539_s25 + $0xd0] sm:$0xff] }
 0x1e6   : > { %8804 = vst [vmem:[#allocation65_spill] sm:$0xff] %v6987_v45  ;;  %2701 = vmatmul.bf16.gmra.mxu2 %v6987_v45  ;;  %2870 = vmatmul.bf16.gmra.mxu3 %v6989_v25 }
 0x1e7   : > { %8805 = vst [vmem:[#allocation66_spill] sm:$0xff] %v6989_v25  ;;  %v876_v40 = vpop.f32.mrf.mxu0  ;;  %v1524_v48 = vsel %vm1346_vm1, 0.0, %v1398_v57 }
 0x1e8   : > { %8806 = vst [vmem:[#allocation67_spill] sm:$0xff] %v6991_v58  ;;  %v1145_v36 = vpop.f32.mrf.mxu1  ;;  %v877_v28 = vadd.f32 %v6863_v19, %v876_v40  ;;  %v1800_v4 = vpack.c.bf16 %v1252_v17, %v1524_v48 }
 0x1e9   : > { %v1146_v7 = vadd.f32 %v6869_v35, %v1145_v36  ;;  %v2662_v38 = vpop.f32.mrf.mxu2  ;;  %v2831_v63 = vpop.f32.mrf.mxu3 }
 0x1ea   : > { %v6998_v60 = vadd.f32 %v2831_v63, %v2662_v38  ;;  %984 = vst [vmem:[%s6591_s18 + $0x118] sm:$0xff] %v877_v28  ;;  %v2076_v48 = vunpack.c.l.b16 %v1800_v4 }
 0x1eb   : > { %v1253_v33 = vmax.f32 %v1146_v7, 0.0 }
 0x1ec   : > { %8807 = vst [vmem:[#allocation68_spill] sm:$0xff] %v6998_v60  ;;  %v2077_v60 = vunpack.c.h.b16 %v1800_v4 }
 0x1ed   : > { %v1399_v12 = vrot.slane %v1253_v33, 7  ;;  %v1592_v22 = vrot.slane %v1253_v33, 1 }
 0x1ef   : > { %v1400_v54 = vsel %vm1346_vm1, %v1398_v57, %v1399_v12  ;;  %v1593_v6 = vsel %vm1539_vm2, %v1591_v1, %v1592_v22  ;;  %v1717_v40 = vsel %vm1539_vm2, %v1592_v22, 0.0  ;;  %v879_v25 = vpop.f32.mrf.mxu0 }
 0x1f0   : > { %v1802_v36 = vpack.c.bf16 %v1253_v33, %v1400_v54  ;;  %v1148_v45 = vpop.f32.mrf.mxu1  ;;  %v1801_v58 = vpack.c.bf16 %v1593_v6, %v1593_v6  ;;  %v1803_v38 = vpack.c.bf16 %v1717_v40, %v1717_v40  ;;  %v880_v28 = vadd.f32 %v6863_v19, %v879_v25 }
 0x1f1   : > { %v1149_v7 = vadd.f32 %v6869_v35, %v1148_v45  ;;  %v2664_v17 = vpop.f32.mrf.mxu2  ;;  %v2833_v63 = vpop.f32.mrf.mxu3 }
 0x1f2   : > { %v7007_v57 = vadd.f32 %v2833_v63, %v2664_v17  ;;  %v2079_v12 = vunpack.c.l.b16 %v1802_v36  ;;  %v2080_v1 = vunpack.c.h.b16 %v1802_v36  ;;  %v2078_v21 = vunpack.c.l.b16 %v1801_v58  ;;  %985 = vst [vmem:[%s6591_s18 + $0x120] sm:$0xff] %v880_v28  ;;  %5515 = vmatmul.msk.bf16.gmra.mxu0 %vm683_vm0, %v5923_v34 }
 0x1f3   : > { %v1254_v22 = vmax.f32 %v1149_v7, 0.0  ;;  %5563 = vmatmul.msk.bf16.gmra.mxu1 %vm683_vm0, %v5923_v34  ;;  %v2081_v33 = vunpack.c.l.b16 %v1803_v38 }
 0x1f4   : > { %8808 = vst [vmem:[#allocation69_spill] sm:$0xff] %v7007_v57  ;;  %v7012_v25 = vpack.c.b16 %v2079_v12, %v2076_v48  ;;  %v7014_v45 = vpack.c.b16 %v2080_v1, %v2077_v60  ;;  %v5924_v1 = vld [vmem:[%s6539_s25 + $0xd8] sm:$0xff] }
 0x1f5   : > { %v7016_v54 = vpack.c.b16 %v2081_v33, %v2078_v21  ;;  %v1401_v4 = vrot.slane %v1254_v22, 7  ;;  %v1594_v7 = vrot.slane %v1254_v22, 1 }
 0x1f6   : > { %8809 = vst [vmem:[#allocation70_spill] sm:$0xff] %v7012_v25  ;;  %2706 = vmatmul.bf16.gmra.mxu2 %v7012_v25  ;;  %2875 = vmatmul.bf16.gmra.mxu3 %v7014_v45 }
 0x1f7   : > { %8810 = vst [vmem:[#allocation71_spill] sm:$0xff] %v7014_v45  ;;  %v881_v58 = vpop.f32.mrf.mxu0  ;;  %v1525_v28 = vsel %vm1346_vm1, 0.0, %v1401_v4 }
 0x1f8   : > { %8811 = vst [vmem:[#allocation72_spill] sm:$0xff] %v7016_v54  ;;  %v1150_v6 = vpop.f32.mrf.mxu1  ;;  %v882_v40 = vadd.f32 %v6863_v19, %v881_v58  ;;  %v1804_v17 = vpack.c.bf16 %v1254_v22, %v1525_v28 }
 0x1f9   : > { %v1151_v34 = vadd.f32 %v6869_v35, %v1150_v6  ;;  %v2667_v36 = vpop.f32.mrf.mxu2  ;;  %v2836_v38 = vpop.f32.mrf.mxu3 }
 0x1fa   : > { %v7023_v60 = vadd.f32 %v2836_v38, %v2667_v36  ;;  %986 = vst [vmem:[%s6591_s18 + $0x128] sm:$0xff] %v882_v40  ;;  %v2082_v28 = vunpack.c.l.b16 %v1804_v17 }
 0x1fb   : > { %v1255_v21 = vmax.f32 %v1151_v34, 0.0 }
 0x1fc   : > { %8812 = vst [vmem:[#allocation73_spill] sm:$0xff] %v7023_v60  ;;  %v2083_v60 = vunpack.c.h.b16 %v1804_v17 }
 0x1fd   : > { %v1402_v63 = vrot.slane %v1255_v21, 7  ;;  %v1595_v48 = vrot.slane %v1255_v21, 1 }
 0x1ff   : > { %v1403_v12 = vsel %vm1346_vm1, %v1401_v4, %v1402_v63  ;;  %v1596_v33 = vsel %vm1539_vm2, %v1594_v7, %v1595_v48  ;;  %v1718_v58 = vsel %vm1539_vm2, %v1595_v48, 0.0  ;;  %v884_v45 = vpop.f32.mrf.mxu0 }
 0x200   : > { %v1806_v6 = vpack.c.bf16 %v1255_v21, %v1403_v12  ;;  %v1153_v25 = vpop.f32.mrf.mxu1  ;;  %v1805_v54 = vpack.c.bf16 %v1596_v33, %v1596_v33  ;;  %v1807_v36 = vpack.c.bf16 %v1718_v58, %v1718_v58  ;;  %v885_v40 = vadd.f32 %v6863_v19, %v884_v45  ;;  %v5947_v58 = vld [vmem:[#allocation7 + $0x50] sm:$0xff] }
 0x201   : > { %v1154_v34 = vadd.f32 %v6869_v35, %v1153_v25  ;;  %v2669_v22 = vpop.f32.mrf.mxu2  ;;  %v2838_v38 = vpop.f32.mrf.mxu3  ;;  %3438 = vmatpush.bf16.msrb.mxu2 %v5947_v58 }
 0x202   : > { %v7032_v4 = vadd.f32 %v2838_v38, %v2669_v22  ;;  %v2085_v63 = vunpack.c.l.b16 %v1806_v6  ;;  %v2086_v7 = vunpack.c.h.b16 %v1806_v6  ;;  %v2084_v57 = vunpack.c.l.b16 %v1805_v54  ;;  %987 = vst [vmem:[%s6591_s18 + $0x130] sm:$0xff] %v885_v40  ;;  %5516 = vmatmul.msk.bf16.gmra.mxu0 %vm683_vm0, %v5924_v1 }
 0x203   : > { %v1256_v48 = vmax.f32 %v1154_v34, 0.0  ;;  %5564 = vmatmul.msk.bf16.gmra.mxu1 %vm683_vm0, %v5924_v1  ;;  %v2087_v21 = vunpack.c.l.b16 %v1807_v36 }
 0x204   : > { %8813 = vst [vmem:[#allocation74_spill] sm:$0xff] %v7032_v4  ;;  %v7037_v12 = vpack.c.b16 %v2085_v63, %v2082_v28  ;;  %v7039_v25 = vpack.c.b16 %v2086_v7, %v2083_v60  ;;  %v5979_v4 = vld [vmem:[#allocation7 + $0x150] sm:$0xff] }
 0x205   : > { %v7041_v45 = vpack.c.b16 %v2087_v21, %v2084_v57  ;;  %v1404_v17 = vrot.slane %v1256_v48, 7  ;;  %v1597_v22 = vrot.slane %v1256_v48, 1  ;;  %v5925_v21 = vld [vmem:[%s6539_s25 + $0xe0] sm:$0xff]  ;;  %2956 = vmatpush.bf16.msrb.mxu0 %v5979_v4 }
 0x206   : > { %8814 = vst [vmem:[#allocation75_spill] sm:$0xff] %v7037_v12  ;;  %2711 = vmatmul.bf16.gmra.mxu2 %v7037_v12  ;;  %2880 = vmatmul.bf16.gmra.mxu3 %v7039_v25 }
 0x207   : > { %8815 = vst [vmem:[#allocation76_spill] sm:$0xff] %v7039_v25  ;;  %v886_v54 = vpop.f32.mrf.mxu0  ;;  %v1526_v60 = vsel %vm1346_vm1, 0.0, %v1404_v17 }
 0x208   : > { %8816 = vst [vmem:[#allocation77_spill] sm:$0xff] %v7041_v45  ;;  %v1155_v33 = vpop.f32.mrf.mxu1  ;;  %v887_v6 = vadd.f32 %v6863_v19, %v886_v54  ;;  %v1808_v38 = vpack.c.bf16 %v1256_v48, %v1526_v60 }
 0x209   : > { %v1156_v1 = vadd.f32 %v6869_v35, %v1155_v33  ;;  %v2672_v36 = vpop.f32.mrf.mxu2  ;;  %v2841_v40 = vpop.f32.mrf.mxu3 }
 0x20a   : > { %v7048_v34 = vadd.f32 %v2841_v40, %v2672_v36  ;;  %988 = vst [vmem:[%s6591_s18 + $0x138] sm:$0xff] %v887_v6  ;;  %v5939_v36 = vld [vmem:[#allocation7 + $0x10] sm:$0xff] }
 0x20b   : > { %v1257_v57 = vmax.f32 %v1156_v1, 0.0  ;;  %3269 = vmatpush.bf16.msrb.mxu1 %v5939_v36 }
 0x20c   : > { %8817 = vst [vmem:[#allocation78_spill] sm:$0xff] %v7048_v34 }
 0x20d   : > { %v1405_v28 = vrot.slane %v1257_v57, 7  ;;  %v1598_v63 = vrot.slane %v1257_v57, 1 }
 0x20f   : > { %v1406_v7 = vsel %vm1346_vm1, %v1404_v17, %v1405_v28  ;;  %v1599_v54 = vsel %vm1539_vm2, %v1597_v22, %v1598_v63  ;;  %v1719_v33 = vsel %vm1539_vm2, %v1598_v63, 0.0  ;;  %v889_v12 = vpop.f32.mrf.mxu0  ;;  %v2088_v17 = vunpack.c.l.b16 %v1808_v38 }
 0x210   : > { %v1810_v25 = vpack.c.bf16 %v1257_v57, %v1406_v7  ;;  %v1158_v45 = vpop.f32.mrf.mxu1  ;;  %v1809_v58 = vpack.c.bf16 %v1599_v54, %v1599_v54  ;;  %v1811_v6 = vpack.c.bf16 %v1719_v33, %v1719_v33  ;;  %v890_v1 = vadd.f32 %v6863_v19, %v889_v12 }
 0x211   : > { %v1159_v48 = vadd.f32 %v6869_v35, %v1158_v45  ;;  %v2674_v40 = vpop.f32.mrf.mxu2  ;;  %v2843_v60 = vpop.f32.mrf.mxu3  ;;  %v2089_v28 = vunpack.c.h.b16 %v1808_v38 }
 0x212   : > { %v7057_v34 = vadd.f32 %v2843_v60, %v2674_v40  ;;  %v2091_v22 = vunpack.c.l.b16 %v1810_v25  ;;  %v2092_v63 = vunpack.c.h.b16 %v1810_v25  ;;  %v2090_v57 = vunpack.c.l.b16 %v1809_v58  ;;  %989 = vst [vmem:[%s6591_s18 + $0x140] sm:$0xff] %v890_v1  ;;  %5517 = vmatmul.msk.bf16.gmra.mxu0 %vm683_vm0, %v5925_v21 }
 0x213   : > { %v1258_v7 = vmax.f32 %v1159_v48, 0.0  ;;  %5565 = vmatmul.msk.bf16.gmra.mxu1 %vm683_vm0, %v5925_v21  ;;  %v2093_v12 = vunpack.c.l.b16 %v1811_v6 }
 0x214   : > { %8818 = vst [vmem:[#allocation79_spill] sm:$0xff] %v7057_v34  ;;  %v7062_v45 = vpack.c.b16 %v2091_v22, %v2088_v17  ;;  %v7064_v54 = vpack.c.b16 %v2092_v63, %v2089_v28 }
 0x215   : > { %v7066_v38 = vpack.c.b16 %v2093_v12, %v2090_v57  ;;  %v1407_v33 = vrot.slane %v1258_v7, 7  ;;  %v1600_v60 = vrot.slane %v1258_v7, 1  ;;  %v5926_v57 = vld [vmem:[%s6539_s25 + $0xe8] sm:$0xff] }
 0x216   : > { %8819 = vst [vmem:[#allocation80_spill] sm:$0xff] %v7062_v45  ;;  %2716 = vmatmul.bf16.gmra.mxu2 %v7062_v45  ;;  %2885 = vmatmul.bf16.gmra.mxu3 %v7064_v54 }
 0x217   : > { %8820 = vst [vmem:[#allocation81_spill] sm:$0xff] %v7064_v54  ;;  %v891_v4 = vpop.f32.mrf.mxu0  ;;  %v1527_v1 = vsel %vm1346_vm1, 0.0, %v1407_v33 }
 0x218   : > { %8821 = vst [vmem:[#allocation82_spill] sm:$0xff] %v7066_v38  ;;  %v1160_v25 = vpop.f32.mrf.mxu1  ;;  %v892_v36 = vadd.f32 %v6863_v19, %v891_v4  ;;  %v1812_v17 = vpack.c.bf16 %v1258_v7, %v1527_v1  ;;  %v5957_v38 = vld [vmem:[#allocation7 + $0xa0] sm:$0xff] }
 0x219   : > { %v1161_v21 = vadd.f32 %v6869_v35, %v1160_v25  ;;  %v2677_v58 = vpop.f32.mrf.mxu2  ;;  %v2846_v6 = vpop.f32.mrf.mxu3  ;;  %3605 = vmatpush.bf16.msrb.mxu3 %v5957_v38 }
 0x21a   : > { %v7073_v48 = vadd.f32 %v2846_v6, %v2677_v58  ;;  %990 = vst [vmem:[%s6591_s18 + $0x148] sm:$0xff] %v892_v36 }
 0x21b   : > { %v1259_v40 = vmax.f32 %v1161_v21, 0.0 }
 0x21c   : > { %8822 = vst [vmem:[#allocation83_spill] sm:$0xff] %v7073_v48  ;;  %v2094_v48 = vunpack.c.l.b16 %v1812_v17 }
 0x21d   : > { %v1408_v28 = vrot.slane %v1259_v40, 7  ;;  %v1601_v22 = vrot.slane %v1259_v40, 1 }
 0x21f   : > { %v1409_v63 = vsel %vm1346_vm1, %v1407_v33, %v1408_v28  ;;  %v1602_v12 = vsel %vm1539_vm2, %v1600_v60, %v1601_v22  ;;  %v1720_v4 = vsel %vm1539_vm2, %v1601_v22, 0.0  ;;  %v894_v54 = vpop.f32.mrf.mxu0  ;;  %v2095_v33 = vunpack.c.h.b16 %v1812_v17 }
 0x220   : > { %v1814_v25 = vpack.c.bf16 %v1259_v40, %v1409_v63  ;;  %v1163_v45 = vpop.f32.mrf.mxu1  ;;  %v1813_v58 = vpack.c.bf16 %v1602_v12, %v1602_v12  ;;  %v1815_v6 = vpack.c.bf16 %v1720_v4, %v1720_v4  ;;  %v895_v36 = vadd.f32 %v6863_v19, %v894_v54 }
 0x221   : > { %v1164_v7 = vadd.f32 %v6869_v35, %v1163_v45  ;;  %v2679_v21 = vpop.f32.mrf.mxu2  ;;  %v2848_v1 = vpop.f32.mrf.mxu3 }
 0x222   : > { %v7082_v28 = vadd.f32 %v2848_v1, %v2679_v21  ;;  %v2097_v60 = vunpack.c.l.b16 %v1814_v25  ;;  %v2098_v34 = vunpack.c.h.b16 %v1814_v25  ;;  %v2096_v40 = vunpack.c.l.b16 %v1813_v58  ;;  %991 = vst [vmem:[%s6591_s18 + $0x150] sm:$0xff] %v895_v36  ;;  %5518 = vmatmul.msk.bf16.gmra.mxu0 %vm683_vm0, %v5926_v57  ;;  %v5978_v36 = vld [vmem:[#allocation7 + $0x148] sm:$0xff] }
 0x223   : > { %v1260_v22 = vmax.f32 %v1164_v7, 0.0  ;;  %5566 = vmatmul.msk.bf16.gmra.mxu1 %vm683_vm0, %v5926_v57  ;;  %v2099_v63 = vunpack.c.l.b16 %v1815_v6  ;;  %v5938_v7 = vld [vmem:[#allocation7 + $0x8] sm:$0xff]  ;;  %2957 = vmatpush.bf16.msrb.mxu0 %v5978_v36 }
 0x224   : > { %8823 = vst [vmem:[#allocation84_spill] sm:$0xff] %v7082_v28  ;;  %v7087_v54 = vpack.c.b16 %v2097_v60, %v2094_v48  ;;  %v7089_v45 = vpack.c.b16 %v2098_v34, %v2095_v33  ;;  %3270 = vmatpush.bf16.msrb.mxu1 %v5938_v7 }
 0x225   : > { %v7091_v12 = vpack.c.b16 %v2099_v63, %v2096_v40  ;;  %v1410_v17 = vrot.slane %v1260_v22, 7  ;;  %v1603_v1 = vrot.slane %v1260_v22, 1  ;;  %v5977_v63 = vld [vmem:[#allocation7 + $0x140] sm:$0xff] }
 0x226   : > { %8824 = vst [vmem:[#allocation85_spill] sm:$0xff] %v7087_v54  ;;  %2721 = vmatmul.bf16.gmra.mxu2 %v7087_v54  ;;  %2890 = vmatmul.bf16.gmra.mxu3 %v7089_v45 }
 0x227   : > { %8825 = vst [vmem:[#allocation86_spill] sm:$0xff] %v7089_v45  ;;  %v896_v38 = vpop.f32.mrf.mxu0  ;;  %v1528_v48 = vsel %vm1346_vm1, 0.0, %v1410_v17  ;;  %v5927_v45 = vld [vmem:[%s6539_s25 + $0xf0] sm:$0xff]  ;;  %2958 = vmatpush.bf16.msrb.mxu0 %v5977_v63 }
 0x228   : > { %8826 = vst [vmem:[#allocation87_spill] sm:$0xff] %v7091_v12  ;;  %v1165_v4 = vpop.f32.mrf.mxu1  ;;  %v897_v25 = vadd.f32 %v6863_v19, %v896_v38  ;;  %v1816_v33 = vpack.c.bf16 %v1260_v22, %v1528_v48  ;;  %v5937_v38 = vld [vmem:[#allocation7] sm:$0xff] }
 0x229   : > { %v1166_v58 = vadd.f32 %v6869_v35, %v1165_v4  ;;  %v2682_v57 = vpop.f32.mrf.mxu2  ;;  %v2851_v6 = vpop.f32.mrf.mxu3  ;;  %3271 = vmatpush.bf16.msrb.mxu1 %v5937_v38 }
 0x22a   : > { %v7098_v34 = vadd.f32 %v2851_v6, %v2682_v57  ;;  %992 = vst [vmem:[%s6591_s18 + $0x158] sm:$0xff] %v897_v25  ;;  %v2101_v28 = vunpack.c.h.b16 %v1816_v33 }
 0x22b   : > { %v1261_v21 = vmax.f32 %v1166_v58, 0.0 }
 0x22c   : > { %8827 = vst [vmem:[#allocation88_spill] sm:$0xff] %v7098_v34 }
 0x22d   : > { %v1411_v60 = vrot.slane %v1261_v21, 7  ;;  %v1604_v40 = vrot.slane %v1261_v21, 1 }
 0x22f   : > { %v1412_v4 = vsel %vm1346_vm1, %v1410_v17, %v1411_v60  ;;  %v1605_v54 = vsel %vm1539_vm2, %v1603_v1, %v1604_v40  ;;  %v1721_v57 = vsel %vm1539_vm2, %v1604_v40, 0.0  ;;  %v899_v12 = vpop.f32.mrf.mxu0  ;;  %v2100_v17 = vunpack.c.l.b16 %v1816_v33 }
 0x230   : > { %v1818_v6 = vpack.c.bf16 %v1261_v21, %v1412_v4  ;;  %v1168_v25 = vpop.f32.mrf.mxu1  ;;  %v1817_v58 = vpack.c.bf16 %v1605_v54, %v1605_v54  ;;  %v1819_v36 = vpack.c.bf16 %v1721_v57, %v1721_v57  ;;  %v900_v22 = vadd.f32 %v6863_v19, %v899_v12 }
 0x231   : > { %v1169_v48 = vadd.f32 %v6869_v35, %v1168_v25  ;;  %v2684_v7 = vpop.f32.mrf.mxu2  ;;  %v2853_v34 = vpop.f32.mrf.mxu3 }
 0x232   : > { %v7107_v60 = vadd.f32 %v2853_v34, %v2684_v7  ;;  %v2103_v1 = vunpack.c.l.b16 %v1818_v6  ;;  %v2104_v40 = vunpack.c.h.b16 %v1818_v6  ;;  %993 = vst [vmem:[%s6591_s18 + $0x160] sm:$0xff] %v900_v22  ;;  %5519 = vmatmul.msk.bf16.gmra.mxu0 %vm683_vm0, %v5927_v45  ;;  %v2102_v54 = vunpack.c.l.b16 %v1817_v58 }
 0x233   : > { %v1262_v21 = vmax.f32 %v1169_v48, 0.0  ;;  %5567 = vmatmul.msk.bf16.gmra.mxu1 %vm683_vm0, %v5927_v45  ;;  %v2105_v63 = vunpack.c.l.b16 %v1819_v36 }
 0x234   : > { %8828 = vst [vmem:[#allocation89_spill] sm:$0xff] %v7107_v60  ;;  %v7112_v12 = vpack.c.b16 %v2103_v1, %v2100_v17  ;;  %v7114_v38 = vpack.c.b16 %v2104_v40, %v2101_v28 }
 0x235   : > { %v7116_v4 = vpack.c.b16 %v2105_v63, %v2102_v54  ;;  %v1413_v34 = vrot.slane %v1262_v21, 7  ;;  %v1606_v48 = vrot.slane %v1262_v21, 1  ;;  %v5928_v54 = vld [vmem:[%s6539_s25 + $0xf8] sm:$0xff]  ;;  %s5213_s25 = sshll.u32 %s6591_s18, 4  ;;  %s5214_s25 = int_to_ptr.vmem [resolvable:$true] %s5213_s25 }
 0x236   : > { %8829 = vst [vmem:[#allocation90_spill] sm:$0xff] %v7112_v12  ;;  %2726 = vmatmul.bf16.gmra.mxu2 %v7112_v12  ;;  %2895 = vmatmul.bf16.gmra.mxu3 %v7114_v38 }
 0x237   : > { %8830 = vst [vmem:[#allocation91_spill] sm:$0xff] %v7114_v38  ;;  %v901_v33 = vpop.f32.mrf.mxu0  ;;  %v1529_v36 = vsel %vm1346_vm1, 0.0, %v1413_v34 }
 0x238   : > { %8831 = vst [vmem:[#allocation92_spill] sm:$0xff] %v7116_v4  ;;  %v1170_v57 = vpop.f32.mrf.mxu1  ;;  %v902_v6 = vadd.f32 %v6863_v19, %v901_v33  ;;  %v1820_v7 = vpack.c.bf16 %v1262_v21, %v1529_v36 }
 0x239   : > { %v1171_v45 = vadd.f32 %v6869_v35, %v1170_v57  ;;  %v2687_v25 = vpop.f32.mrf.mxu2  ;;  %v2856_v58 = vpop.f32.mrf.mxu3 }
 0x23a   : > { %v7123_v28 = vadd.f32 %v2856_v58, %v2687_v25  ;;  %994 = vst [vmem:[%s6591_s18 + $0x168] sm:$0xff] %v902_v6  ;;  %v2106_v36 = vunpack.c.l.b16 %v1820_v7 }
 0x23b   : > { %v1263_v22 = vmax.f32 %v1171_v45, 0.0 }
 0x23c   : > { %8832 = vst [vmem:[#allocation93_spill] sm:$0xff] %v7123_v28  ;;  %v2107_v28 = vunpack.c.h.b16 %v1820_v7 }
 0x23d   : > { %v1414_v17 = vrot.slane %v1263_v22, 7  ;;  %v1607_v1 = vrot.slane %v1263_v22, 1 }
 0x23f   : > { %v1415_v40 = vsel %vm1346_vm1, %v1413_v34, %v1414_v17  ;;  %v1608_v63 = vsel %vm1539_vm2, %v1606_v48, %v1607_v1  ;;  %v1722_v33 = vsel %vm1539_vm2, %v1607_v1, 0.0  ;;  %v904_v38 = vpop.f32.mrf.mxu0 }
 0x240   : > { %v1822_v57 = vpack.c.bf16 %v1263_v22, %v1415_v40  ;;  %v1173_v12 = vpop.f32.mrf.mxu1  ;;  %v1821_v4 = vpack.c.bf16 %v1608_v63, %v1608_v63  ;;  %v1823_v25 = vpack.c.bf16 %v1722_v33, %v1722_v33  ;;  %v905_v6 = vadd.f32 %v6863_v19, %v904_v38  ;;  %v5946_v33 = vld [vmem:[#allocation7 + $0x48] sm:$0xff] }
 0x241   : > { %v1174_v45 = vadd.f32 %v6869_v35, %v1173_v12  ;;  %v2689_v21 = vpop.f32.mrf.mxu2  ;;  %v2858_v58 = vpop.f32.mrf.mxu3  ;;  %3439 = vmatpush.bf16.msrb.mxu2 %v5946_v33  ;;  %v7157_v33 = vld [vmem:[%s8592_s8] ss:$0 sm:$0xff] }
 0x242   : > { %v7132_v34 = vadd.f32 %v2858_v58, %v2689_v21  ;;  %v2109_v17 = vunpack.c.l.b16 %v1822_v57  ;;  %v2110_v48 = vunpack.c.h.b16 %v1822_v57  ;;  %v2108_v60 = vunpack.c.l.b16 %v1821_v4  ;;  %995 = vst [vmem:[%s6591_s18 + $0x170] sm:$0xff] %v905_v6  ;;  %5520 = vmatmul.msk.bf16.gmra.mxu0 %vm683_vm0, %v5928_v54 }
 0x243   : > { %v1264_v1 = vmax.f32 %v1174_v45, 0.0  ;;  %5568 = vmatmul.msk.bf16.gmra.mxu1 %vm683_vm0, %v5928_v54  ;;  %v2111_v22 = vunpack.c.l.b16 %v1823_v25 }
 0x244   : > { %v7137_v40 = vpack.c.b16 %v2109_v17, %v2106_v36  ;;  %v7139_v12 = vpack.c.b16 %v2110_v48, %v2107_v28 }
 0x245   : > { %v7141_v38 = vpack.c.b16 %v2111_v22, %v2108_v60  ;;  %v1416_v7 = vrot.slane %v1264_v1, 7  ;;  %v1609_v21 = vrot.slane %v1264_v1, 1 }
 0x246   : > { %8833 = vst [vmem:[#allocation94_spill] sm:$0xff] %v7137_v40  ;;  %2731 = vmatmul.bf16.gmra.mxu2 %v7137_v40  ;;  %2900 = vmatmul.bf16.gmra.mxu3 %v7139_v12 }
 0x247   : > { %8834 = vst [vmem:[#allocation95_spill] sm:$0xff] %v7139_v12  ;;  %v906_v4 = vpop.f32.mrf.mxu0  ;;  %v1530_v45 = vsel %vm1346_vm1, 0.0, %v1416_v7 }
 0x248   : > { %8835 = vst [vmem:[#allocation96_spill] sm:$0xff] %v7141_v38  ;;  %v1175_v63 = vpop.f32.mrf.mxu1  ;;  %v907_v57 = vadd.f32 %v6863_v19, %v906_v4  ;;  %v1824_v58 = vpack.c.bf16 %v1264_v1, %v1530_v45 }
 0x249   : > { %v1176_v54 = vadd.f32 %v6869_v35, %v1175_v63  ;;  %v2692_v25 = vpop.f32.mrf.mxu2  ;;  %v2861_v6 = vpop.f32.mrf.mxu3 }
 0x24a   : > { %v7148_v28 = vadd.f32 %v2861_v6, %v2692_v25  ;;  %996 = vst [vmem:[%s6591_s18 + $0x178] sm:$0xff] %v907_v57  ;;  %v2112_v45 = vunpack.c.l.b16 %v1824_v58 }
 0x24b   : > { %v1265_v60 = vmax.f32 %v1176_v54, 0.0 }
 0x24c   : > { %8836 = vst [vmem:[#allocation97_spill] sm:$0xff] %v7148_v28 }
 0x24d   : > { %v1417_v36 = vrot.slane %v1265_v60, 7  ;;  %v1610_v17 = vrot.slane %v1265_v60, 1 }
 0x24f   : > { %v1418_v48 = vsel %vm1346_vm1, %v1416_v7, %v1417_v36  ;;  %v1611_v22 = vsel %vm1539_vm2, %v1609_v21, %v1610_v17  ;;  %v1723_v19 = vsel %vm1539_vm2, %v1610_v17, 0.0  ;;  %v909_v4 = vpop.f32.mrf.mxu0  ;;  %v7163_v7 = vld [vmem:[%s8586_s2] ss:$0 sm:$0xff] }
 0x250   : > { %v1826_v35 = vpack.c.bf16 %v1265_v60, %v1418_v48  ;;  %v1178_v63 = vpop.f32.mrf.mxu1  ;;  %v1825_v12 = vpack.c.bf16 %v1611_v22, %v1611_v22  ;;  %v1827_v25 = vpack.c.bf16 %v1723_v19, %v1723_v19  ;;  %v910_v1 = vadd.f32 %v7157_v33, %v909_v4 }
 0x251   : > { %v1179_v57 = vadd.f32 %v7163_v7, %v1178_v63  ;;  %v2694_v54 = vpop.f32.mrf.mxu2  ;;  %v2863_v6 = vpop.f32.mrf.mxu3  ;;  %v2113_v60 = vunpack.c.h.b16 %v1824_v58  ;;  %v8663_v19 = vmov 0  }
 0x252   : > { %v7166_v21 = vadd.f32 %v2863_v6, %v2694_v54  ;;  %v2115_v36 = vunpack.c.l.b16 %v1826_v35  ;;  %v2116_v17 = vunpack.c.h.b16 %v1826_v35  ;;  %v2114_v48 = vunpack.c.l.b16 %v1825_v12  ;;  %997 = vst [vmem:[%s6591_s18 + $0x180] sm:$0xff] %v910_v1  ;;  %2959 = vmatmul.bf16.vlgmr.msrb.gmra.mxu0 %v6613_v10 }
 0x253   : > { %v1266_v22 = vmax.f32 %v1179_v57, 0.0  ;;  %3272 = vmatmul.bf16.vlgmr.msrb.gmra.mxu1 %v8663_v19  ;;  %v2117_v4 = vunpack.c.l.b16 %v1827_v25 }
 0x254   : > { %8837 = vst [vmem:[#allocation98_spill] sm:$0xff] %v7166_v21  ;;  %v7171_v40 = vpack.c.b16 %v2115_v36, %v2112_v45  ;;  %v7173_v63 = vpack.c.b16 %v2116_v17, %v2113_v60  ;;  %v5956_v21 = vld [vmem:[#allocation7 + $0x98] sm:$0xff] }
 0x255   : > { %v7175_v38 = vpack.c.b16 %v2117_v4, %v2114_v48  ;;  %v1419_v58 = vrot.slane %v1266_v22, 7  ;;  %v1612_v36 = vrot.slane %v1266_v22, 1  ;;  %3606 = vmatpush.bf16.msrb.mxu3 %v5956_v21 }
 0x256   : > { %8838 = vst [vmem:[#allocation99_spill] sm:$0xff] %v7171_v40  ;;  %2736 = vmatmul.bf16.gmra.mxu2 %v7171_v40  ;;  %2905 = vmatmul.bf16.gmra.mxu3 %v7173_v63 }
 0x257   : > { %8839 = vst [vmem:[#allocation100_spill] sm:$0xff] %v7173_v63  ;;  %v911_v12 = vpop.f32.mrf.mxu0  ;;  %v1531_v25 = vsel %vm1346_vm1, 0.0, %v1419_v58 }
 0x258   : > { %8840 = vst [vmem:[#allocation101_spill] sm:$0xff] %v7175_v38  ;;  %v1180_v35 = vpop.f32.mrf.mxu1  ;;  %v912_v1 = vadd.f32 %v7157_v33, %v911_v12  ;;  %v1828_v17 = vpack.c.bf16 %v1266_v22, %v1531_v25 }
 0x259   : > { %v1181_v57 = vadd.f32 %v7163_v7, %v1180_v35  ;;  %v2697_v54 = vpop.f32.mrf.mxu2  ;;  %v2866_v6 = vpop.f32.mrf.mxu3 }
 0x25a   : > { %v7182_v45 = vadd.f32 %v2866_v6, %v2697_v54  ;;  %998 = vst [vmem:[%s6591_s18 + $0x188] sm:$0xff] %v912_v1  ;;  %v2118_v25 = vunpack.c.l.b16 %v1828_v17 }
 0x25b   : > { %v1267_v60 = vmax.f32 %v1181_v57, 0.0 }
 0x25c   : > { %8841 = vst [vmem:[#allocation102_spill] sm:$0xff] %v7182_v45  ;;  %v2119_v45 = vunpack.c.h.b16 %v1828_v17 }
 0x25d   : > { %v1420_v48 = vrot.slane %v1267_v60, 7  ;;  %v1613_v4 = vrot.slane %v1267_v60, 1 }
 0x25f   : > { %v1421_v19 = vsel %vm1346_vm1, %v1419_v58, %v1420_v48  ;;  %v1614_v63 = vsel %vm1539_vm2, %v1612_v36, %v1613_v4  ;;  %v1724_v12 = vsel %vm1539_vm2, %v1613_v4, 0.0  ;;  %v914_v35 = vpop.f32.mrf.mxu0 }
 0x260   : > { %v1830_v40 = vpack.c.bf16 %v1267_v60, %v1421_v19  ;;  %v1183_v38 = vpop.f32.mrf.mxu1  ;;  %v1829_v28 = vpack.c.bf16 %v1614_v63, %v1614_v63  ;;  %v1831_v54 = vpack.c.bf16 %v1724_v12, %v1724_v12  ;;  %v915_v1 = vadd.f32 %v7157_v33, %v914_v35 }
 0x261   : > { %v1184_v57 = vadd.f32 %v7163_v7, %v1183_v38  ;;  %v2699_v22 = vpop.f32.mrf.mxu2  ;;  %v2868_v6 = vpop.f32.mrf.mxu3 }
 0x262   : > { %v7190_v58 = vadd.f32 %v2868_v6, %v2699_v22  ;;  %v2121_v36 = vunpack.c.l.b16 %v1830_v40  ;;  %v2122_v48 = vunpack.c.h.b16 %v1830_v40  ;;  %v2120_v19 = vunpack.c.l.b16 %v1829_v28  ;;  %999 = vst [vmem:[%s6591_s18 + $0x190] sm:$0xff] %v915_v1  ;;  %2964 = vmatmul.bf16.gmra.mxu0 %v6634_v44 }
 0x263   : > { %v1268_v60 = vmax.f32 %v1184_v57, 0.0  ;;  %3277 = vmatmul.bf16.gmra.mxu1 %v6609_v8  ;;  %v2123_v63 = vunpack.c.l.b16 %v1831_v54 }
 0x264   : > { %v7195_v4 = vpack.c.b16 %v2121_v36, %v2118_v25  ;;  %v7197_v38 = vpack.c.b16 %v2122_v48, %v2119_v45 }
 0x265   : > { %v7199_v12 = vpack.c.b16 %v2123_v63, %v2120_v19  ;;  %v1422_v17 = vrot.slane %v1268_v60, 7  ;;  %v1615_v22 = vrot.slane %v1268_v60, 1 }
 0x266   : > { %8842 = vst [vmem:[#allocation103_spill] sm:$0xff] %v7195_v4  ;;  %2741 = vmatmul.bf16.gmra.mxu2 %v7195_v4  ;;  %2910 = vmatmul.bf16.gmra.mxu3 %v7197_v38 }
 0x267   : > { %8843 = vst [vmem:[#allocation104_spill] sm:$0xff] %v7197_v38  ;;  %v916_v40 = vpop.f32.mrf.mxu0  ;;  %v1532_v54 = vsel %vm1346_vm1, 0.0, %v1422_v17 }
 0x268   : > { %8844 = vst [vmem:[#allocation105_spill] sm:$0xff] %v7199_v12  ;;  %v1185_v28 = vpop.f32.mrf.mxu1  ;;  %v917_v21 = vadd.f32 %v7157_v33, %v916_v40  ;;  %v1832_v6 = vpack.c.bf16 %v1268_v60, %v1532_v54 }
 0x269   : > { %v1186_v35 = vadd.f32 %v7163_v7, %v1185_v28  ;;  %v2702_v8 = vpop.f32.mrf.mxu2  ;;  %v2871_v1 = vpop.f32.mrf.mxu3 }
 0x26a   : > { %v7206_v57 = vadd.f32 %v2871_v1, %v2702_v8  ;;  %1000 = vst [vmem:[%s6591_s18 + $0x198] sm:$0xff] %v917_v21  ;;  %v2124_v1 = vunpack.c.l.b16 %v1832_v6  ;;  %v2125_v54 = vunpack.c.h.b16 %v1832_v6 }
 0x26b   : > { %v1269_v45 = vmax.f32 %v1186_v35, 0.0 }
 0x26c   : > { %8845 = vst [vmem:[#allocation106_spill] sm:$0xff] %v7206_v57 }
 0x26d   : > { %v1423_v25 = vrot.slane %v1269_v45, 7  ;;  %v1616_v36 = vrot.slane %v1269_v45, 1 }
 0x26f   : > { %v1424_v48 = vsel %vm1346_vm1, %v1422_v17, %v1423_v25  ;;  %v1617_v19 = vsel %vm1539_vm2, %v1615_v22, %v1616_v36  ;;  %v1725_v63 = vsel %vm1539_vm2, %v1616_v36, 0.0  ;;  %v919_v28 = vpop.f32.mrf.mxu0 }
 0x270   : > { %v1834_v40 = vpack.c.bf16 %v1269_v45, %v1424_v48  ;;  %v1188_v38 = vpop.f32.mrf.mxu1  ;;  %v1833_v4 = vpack.c.bf16 %v1617_v19, %v1617_v19  ;;  %v1835_v12 = vpack.c.bf16 %v1725_v63, %v1725_v63  ;;  %v920_v8 = vadd.f32 %v7157_v33, %v919_v28 }
 0x271   : > { %v1189_v21 = vadd.f32 %v7163_v7, %v1188_v38  ;;  %v2704_v35 = vpop.f32.mrf.mxu2  ;;  %v2873_v60 = vpop.f32.mrf.mxu3 }
 0x272   : > { %v7214_v57 = vadd.f32 %v2873_v60, %v2704_v35  ;;  %v2127_v17 = vunpack.c.l.b16 %v1834_v40  ;;  %v2128_v22 = vunpack.c.h.b16 %v1834_v40  ;;  %v2126_v25 = vunpack.c.l.b16 %v1833_v4  ;;  %1001 = vst [vmem:[%s6591_s18 + $0x1a0] sm:$0xff] %v920_v8  ;;  %2969 = vmatmul.bf16.gmra.mxu0 %v6655_v15 }
 0x273   : > { %v1270_v36 = vmax.f32 %v1189_v21, 0.0  ;;  %3282 = vmatmul.bf16.gmra.mxu1 %v6630_v42  ;;  %v2129_v45 = vunpack.c.l.b16 %v1835_v12 }
 0x274   : > { %v7219_v48 = vpack.c.b16 %v2127_v17, %v2124_v1  ;;  %v7221_v38 = vpack.c.b16 %v2128_v22, %v2125_v54 }
 0x275   : > { %v7223_v19 = vpack.c.b16 %v2129_v45, %v2126_v25  ;;  %v1425_v6 = vrot.slane %v1270_v36, 7  ;;  %v1618_v1 = vrot.slane %v1270_v36, 1 }
 0x276   : > { %8846 = vst [vmem:[#allocation107_spill] sm:$0xff] %v7219_v48  ;;  %2746 = vmatmul.bf16.gmra.mxu2 %v7219_v48  ;;  %2915 = vmatmul.bf16.gmra.mxu3 %v7221_v38 }
 0x277   : > { %8847 = vst [vmem:[#allocation108_spill] sm:$0xff] %v7221_v38  ;;  %v921_v4 = vpop.f32.mrf.mxu0  ;;  %v1533_v12 = vsel %vm1346_vm1, 0.0, %v1425_v6 }
 0x278   : > { %8848 = vst [vmem:[#allocation109_spill] sm:$0xff] %v7223_v19  ;;  %v1190_v63 = vpop.f32.mrf.mxu1  ;;  %v922_v40 = vadd.f32 %v7157_v33, %v921_v4  ;;  %v1836_v54 = vpack.c.bf16 %v1270_v36, %v1533_v12 }
 0x279   : > { %v1191_v28 = vadd.f32 %v7163_v7, %v1190_v63  ;;  %v2707_v8 = vpop.f32.mrf.mxu2  ;;  %v2876_v21 = vpop.f32.mrf.mxu3 }
 0x27a   : > { %v7230_v35 = vadd.f32 %v2876_v21, %v2707_v8  ;;  %1002 = vst [vmem:[%s6591_s18 + $0x1a8] sm:$0xff] %v922_v40  ;;  %v2130_v21 = vunpack.c.l.b16 %v1836_v54  ;;  %v2131_v12 = vunpack.c.h.b16 %v1836_v54 }
 0x27b   : > { %v1271_v60 = vmax.f32 %v1191_v28, 0.0 }
 0x27c   : > { %8849 = vst [vmem:[#allocation110_spill] sm:$0xff] %v7230_v35 }
 0x27d   : > { %v1426_v17 = vrot.slane %v1271_v60, 7  ;;  %v1619_v22 = vrot.slane %v1271_v60, 1 }
 0x27f   : > { %v1427_v25 = vsel %vm1346_vm1, %v1425_v6, %v1426_v17  ;;  %v1620_v45 = vsel %vm1539_vm2, %v1618_v1, %v1619_v22  ;;  %v1726_v4 = vsel %vm1539_vm2, %v1619_v22, 0.0  ;;  %v924_v38 = vpop.f32.mrf.mxu0 }
 0x280   : > { %v1838_v63 = vpack.c.bf16 %v1271_v60, %v1427_v25  ;;  %v1193_v42 = vpop.f32.mrf.mxu1  ;;  %v1837_v48 = vpack.c.bf16 %v1620_v45, %v1620_v45  ;;  %v1839_v19 = vpack.c.bf16 %v1726_v4, %v1726_v4  ;;  %v925_v8 = vadd.f32 %v7157_v33, %v924_v38  ;;  %v5945_v4 = vld [vmem:[#allocation7 + $0x40] sm:$0xff] }
 0x281   : > { %v1194_v40 = vadd.f32 %v7163_v7, %v1193_v42  ;;  %v2709_v28 = vpop.f32.mrf.mxu2  ;;  %v2878_v36 = vpop.f32.mrf.mxu3  ;;  %3440 = vmatpush.bf16.msrb.mxu2 %v5945_v4 }
 0x282   : > { %v7238_v35 = vadd.f32 %v2878_v36, %v2709_v28  ;;  %v2133_v6 = vunpack.c.l.b16 %v1838_v63  ;;  %v2134_v1 = vunpack.c.h.b16 %v1838_v63  ;;  %v2132_v17 = vunpack.c.l.b16 %v1837_v48  ;;  %1003 = vst [vmem:[%s6591_s18 + $0x1b0] sm:$0xff] %v925_v8  ;;  %2974 = vmatmul.bf16.gmra.mxu0 %v6676_v55 }
 0x283   : > { %v1272_v22 = vmax.f32 %v1194_v40, 0.0  ;;  %3287 = vmatmul.bf16.gmra.mxu1 %v6651_v13  ;;  %v2135_v60 = vunpack.c.l.b16 %v1839_v19 }
 0x284   : > { %v7243_v25 = vpack.c.b16 %v2133_v6, %v2130_v21  ;;  %v7245_v42 = vpack.c.b16 %v2134_v1, %v2131_v12 }
 0x285   : > { %v7247_v38 = vpack.c.b16 %v2135_v60, %v2132_v17  ;;  %v1428_v54 = vrot.slane %v1272_v22, 7  ;;  %v1621_v12 = vrot.slane %v1272_v22, 1 }
 0x286   : > { %8850 = vst [vmem:[#allocation111_spill] sm:$0xff] %v7243_v25  ;;  %2751 = vmatmul.bf16.gmra.mxu2 %v7243_v25  ;;  %2920 = vmatmul.bf16.gmra.mxu3 %v7245_v42 }
 0x287   : > { %8851 = vst [vmem:[#allocation112_spill] sm:$0xff] %v7245_v42  ;;  %v926_v48 = vpop.f32.mrf.mxu0  ;;  %v1534_v28 = vsel %vm1346_vm1, 0.0, %v1428_v54 }
 0x288   : > { %8852 = vst [vmem:[#allocation113_spill] sm:$0xff] %v7247_v38  ;;  %v1195_v45 = vpop.f32.mrf.mxu1  ;;  %v927_v63 = vadd.f32 %v7157_v33, %v926_v48  ;;  %v1840_v6 = vpack.c.bf16 %v1272_v22, %v1534_v28 }
 0x289   : > { %v1196_v8 = vadd.f32 %v7163_v7, %v1195_v45  ;;  %v2712_v19 = vpop.f32.mrf.mxu2  ;;  %v2881_v40 = vpop.f32.mrf.mxu3 }
 0x28a   : > { %v7254_v36 = vadd.f32 %v2881_v40, %v2712_v19  ;;  %1004 = vst [vmem:[%s6591_s18 + $0x1b8] sm:$0xff] %v927_v63  ;;  %v2136_v40 = vunpack.c.l.b16 %v1840_v6  ;;  %v2137_v28 = vunpack.c.h.b16 %v1840_v6 }
 0x28b   : > { %v1273_v21 = vmax.f32 %v1196_v8, 0.0 }
 0x28c   : > { %8853 = vst [vmem:[#allocation114_spill] sm:$0xff] %v7254_v36 }
 0x28d   : > { %v1429_v1 = vrot.slane %v1273_v21, 7  ;;  %v1622_v17 = vrot.slane %v1273_v21, 1 }
 0x28f   : > { %v1430_v60 = vsel %vm1346_vm1, %v1428_v54, %v1429_v1  ;;  %v1623_v42 = vsel %vm1539_vm2, %v1621_v12, %v1622_v17  ;;  %v1727_v48 = vsel %vm1539_vm2, %v1622_v17, 0.0  ;;  %v929_v13 = vpop.f32.mrf.mxu0 }
 0x290   : > { %v1842_v45 = vpack.c.bf16 %v1273_v21, %v1430_v60  ;;  %v1198_v25 = vpop.f32.mrf.mxu1  ;;  %v1841_v38 = vpack.c.bf16 %v1623_v42, %v1623_v42  ;;  %v1843_v19 = vpack.c.bf16 %v1727_v48, %v1727_v48  ;;  %v930_v4 = vadd.f32 %v7157_v33, %v929_v13 }
 0x291   : > { %v1199_v63 = vadd.f32 %v7163_v7, %v1198_v25  ;;  %v2714_v8 = vpop.f32.mrf.mxu2  ;;  %v2883_v22 = vpop.f32.mrf.mxu3 }
 0x292   : > { %v7262_v36 = vadd.f32 %v2883_v22, %v2714_v8  ;;  %v2139_v54 = vunpack.c.l.b16 %v1842_v45  ;;  %v2140_v12 = vunpack.c.h.b16 %v1842_v45  ;;  %v2138_v1 = vunpack.c.l.b16 %v1841_v38  ;;  %1005 = vst [vmem:[%s6591_s18 + $0x1c0] sm:$0xff] %v930_v4  ;;  %2979 = vmatmul.bf16.gmra.mxu0 %v6697_v29 }
 0x293   : > { %v1274_v17 = vmax.f32 %v1199_v63, 0.0  ;;  %3292 = vmatmul.bf16.gmra.mxu1 %v6672_v53  ;;  %v2141_v42 = vunpack.c.l.b16 %v1843_v19 }
 0x294   : > { %v7267_v13 = vpack.c.b16 %v2139_v54, %v2136_v40  ;;  %v7269_v25 = vpack.c.b16 %v2140_v12, %v2137_v28 }
 0x295   : > { %v7271_v21 = vpack.c.b16 %v2141_v42, %v2138_v1  ;;  %v1431_v6 = vrot.slane %v1274_v17, 7  ;;  %v1624_v40 = vrot.slane %v1274_v17, 1 }
 0x296   : > { %8854 = vst [vmem:[#allocation115_spill] sm:$0xff] %v7267_v13  ;;  %2756 = vmatmul.bf16.gmra.mxu2 %v7267_v13  ;;  %2925 = vmatmul.bf16.gmra.mxu3 %v7269_v25  ;;  %v5955_v13 = vld [vmem:[#allocation7 + $0x90] sm:$0xff] }
 0x297   : > { %8855 = vst [vmem:[#allocation116_spill] sm:$0xff] %v7269_v25  ;;  %v931_v38 = vpop.f32.mrf.mxu0  ;;  %v1535_v19 = vsel %vm1346_vm1, 0.0, %v1431_v6  ;;  %3607 = vmatpush.bf16.msrb.mxu3 %v5955_v13 }
 0x298   : > { %8856 = vst [vmem:[#allocation117_spill] sm:$0xff] %v7271_v21  ;;  %v1200_v60 = vpop.f32.mrf.mxu1  ;;  %v932_v48 = vadd.f32 %v7157_v33, %v931_v38  ;;  %v1844_v28 = vpack.c.bf16 %v1274_v17, %v1535_v19 }
 0x299   : > { %v1201_v45 = vadd.f32 %v7163_v7, %v1200_v60  ;;  %v2717_v4 = vpop.f32.mrf.mxu2  ;;  %v2886_v63 = vpop.f32.mrf.mxu3 }
 0x29a   : > { %v7278_v8 = vadd.f32 %v2886_v63, %v2717_v4  ;;  %1006 = vst [vmem:[%s6591_s18 + $0x1c8] sm:$0xff] %v932_v48  ;;  %v2142_v19 = vunpack.c.l.b16 %v1844_v28 }
 0x29b   : > { %v1275_v22 = vmax.f32 %v1201_v45, 0.0 }
 0x29c   : > { %8857 = vst [vmem:[#allocation118_spill] sm:$0xff] %v7278_v8  ;;  %v2143_v8 = vunpack.c.h.b16 %v1844_v28 }
 0x29d   : > { %v1432_v54 = vrot.slane %v1275_v22, 7  ;;  %v1625_v12 = vrot.slane %v1275_v22, 1 }
 0x29f   : > { %v1433_v1 = vsel %vm1346_vm1, %v1431_v6, %v1432_v54  ;;  %v1626_v42 = vsel %vm1539_vm2, %v1624_v40, %v1625_v12  ;;  %v1728_v38 = vsel %vm1539_vm2, %v1625_v12, 0.0  ;;  %v934_v60 = vpop.f32.mrf.mxu0 }
 0x2a0   : > { %v1846_v25 = vpack.c.bf16 %v1275_v22, %v1433_v1  ;;  %v1203_v53 = vpop.f32.mrf.mxu1  ;;  %v1845_v21 = vpack.c.bf16 %v1626_v42, %v1626_v42  ;;  %v1847_v4 = vpack.c.bf16 %v1728_v38, %v1728_v38  ;;  %v935_v48 = vadd.f32 %v7157_v33, %v934_v60 }
 0x2a1   : > { %v1204_v45 = vadd.f32 %v7163_v7, %v1203_v53  ;;  %v2719_v17 = vpop.f32.mrf.mxu2  ;;  %v2888_v63 = vpop.f32.mrf.mxu3 }
 0x2a2   : > { %v7286_v6 = vadd.f32 %v2888_v63, %v2719_v17  ;;  %v2145_v40 = vunpack.c.l.b16 %v1846_v25  ;;  %v2146_v54 = vunpack.c.h.b16 %v1846_v25  ;;  %v2144_v22 = vunpack.c.l.b16 %v1845_v21  ;;  %1007 = vst [vmem:[%s6591_s18 + $0x1d0] sm:$0xff] %v935_v48  ;;  %2984 = vmatmul.bf16.gmra.mxu0 %v6718_v5 }
 0x2a3   : > { %v1276_v12 = vmax.f32 %v1204_v45, 0.0  ;;  %3297 = vmatmul.bf16.gmra.mxu1 %v6693_v27  ;;  %v2147_v1 = vunpack.c.l.b16 %v1847_v4 }
 0x2a4   : > { %v7291_v42 = vpack.c.b16 %v2145_v40, %v2142_v19  ;;  %v7293_v53 = vpack.c.b16 %v2146_v54, %v2143_v8 }
 0x2a5   : > { %v7295_v38 = vpack.c.b16 %v2147_v1, %v2144_v22  ;;  %v1434_v28 = vrot.slane %v1276_v12, 7  ;;  %v1627_v63 = vrot.slane %v1276_v12, 1 }
 0x2a6   : > { %8858 = vst [vmem:[#allocation119_spill] sm:$0xff] %v7291_v42  ;;  %2761 = vmatmul.bf16.gmra.mxu2 %v7291_v42  ;;  %2930 = vmatmul.bf16.gmra.mxu3 %v7293_v53 }
 0x2a7   : > { %8859 = vst [vmem:[#allocation120_spill] sm:$0xff] %v7293_v53  ;;  %v936_v13 = vpop.f32.mrf.mxu0  ;;  %v1536_v4 = vsel %vm1346_vm1, 0.0, %v1434_v28 }
 0x2a8   : > { %8860 = vst [vmem:[#allocation121_spill] sm:$0xff] %v7295_v38  ;;  %v1205_v25 = vpop.f32.mrf.mxu1  ;;  %v937_v21 = vadd.f32 %v7157_v33, %v936_v13  ;;  %v1848_v19 = vpack.c.bf16 %v1276_v12, %v1536_v4 }
 0x2a9   : > { %v1206_v60 = vadd.f32 %v7163_v7, %v1205_v25  ;;  %v2722_v48 = vpop.f32.mrf.mxu2  ;;  %v2891_v45 = vpop.f32.mrf.mxu3 }
 0x2aa   : > { %v7302_v17 = vadd.f32 %v2891_v45, %v2722_v48  ;;  %1008 = vst [vmem:[%s6591_s18 + $0x1d8] sm:$0xff] %v937_v21  ;;  %v2148_v45 = vunpack.c.l.b16 %v1848_v19  ;;  %v2149_v4 = vunpack.c.h.b16 %v1848_v19 }
 0x2ab   : > { %v1277_v8 = vmax.f32 %v1206_v60, 0.0 }
 0x2ac   : > { %8861 = vst [vmem:[#allocation122_spill] sm:$0xff] %v7302_v17 }
 0x2ad   : > { %v1435_v40 = vrot.slane %v1277_v8, 7  ;;  %v1628_v54 = vrot.slane %v1277_v8, 1 }
 0x2af   : > { %v1436_v22 = vsel %vm1346_vm1, %v1434_v28, %v1435_v40  ;;  %v1629_v1 = vsel %vm1539_vm2, %v1627_v63, %v1628_v54  ;;  %v1729_v13 = vsel %vm1539_vm2, %v1628_v54, 0.0  ;;  %v939_v53 = vpop.f32.mrf.mxu0 }
 0x2b0   : > { %v1850_v25 = vpack.c.bf16 %v1277_v8, %v1436_v22  ;;  %v1208_v27 = vpop.f32.mrf.mxu1  ;;  %v1849_v42 = vpack.c.bf16 %v1629_v1, %v1629_v1  ;;  %v1851_v38 = vpack.c.bf16 %v1729_v13, %v1729_v13  ;;  %v940_v48 = vadd.f32 %v7157_v33, %v939_v53 }
 0x2b1   : > { %v1209_v21 = vadd.f32 %v7163_v7, %v1208_v27  ;;  %v2724_v60 = vpop.f32.mrf.mxu2  ;;  %v2893_v12 = vpop.f32.mrf.mxu3 }
 0x2b2   : > { %v7310_v17 = vadd.f32 %v2893_v12, %v2724_v60  ;;  %v2151_v28 = vunpack.c.l.b16 %v1850_v25  ;;  %v2152_v63 = vunpack.c.h.b16 %v1850_v25  ;;  %v2150_v40 = vunpack.c.l.b16 %v1849_v42  ;;  %1009 = vst [vmem:[%s6591_s18 + $0x1e0] sm:$0xff] %v940_v48  ;;  %2989 = vmatmul.bf16.gmra.mxu0 %v6739_v51 }
 0x2b3   : > { %v1278_v54 = vmax.f32 %v1209_v21, 0.0  ;;  %3302 = vmatmul.bf16.gmra.mxu1 %v6714_v3  ;;  %v2153_v8 = vunpack.c.l.b16 %v1851_v38 }
 0x2b4   : > { %v7315_v53 = vpack.c.b16 %v2151_v28, %v2148_v45  ;;  %v7317_v27 = vpack.c.b16 %v2152_v63, %v2149_v4  ;;  %v5954_v45 = vld [vmem:[#allocation7 + $0x88] sm:$0xff] }
 0x2b5   : > { %v7319_v22 = vpack.c.b16 %v2153_v8, %v2150_v40  ;;  %v1437_v19 = vrot.slane %v1278_v54, 7  ;;  %v1630_v4 = vrot.slane %v1278_v54, 1  ;;  %3608 = vmatpush.bf16.msrb.mxu3 %v5954_v45 }
 0x2b6   : > { %8862 = vst [vmem:[#allocation123_spill] sm:$0xff] %v7315_v53  ;;  %2766 = vmatmul.bf16.gmra.mxu2 %v7315_v53  ;;  %2935 = vmatmul.bf16.gmra.mxu3 %v7317_v27 }
 0x2b7   : > { %8863 = vst [vmem:[#allocation124_spill] sm:$0xff] %v7317_v27  ;;  %v941_v42 = vpop.f32.mrf.mxu0  ;;  %v1537_v38 = vsel %vm1346_vm1, 0.0, %v1437_v19 }
 0x2b8   : > { %8864 = vst [vmem:[#allocation125_spill] sm:$0xff] %v7319_v22  ;;  %v1210_v1 = vpop.f32.mrf.mxu1  ;;  %v942_v13 = vadd.f32 %v7157_v33, %v941_v42  ;;  %v1852_v28 = vpack.c.bf16 %v1278_v54, %v1537_v38 }
 0x2b9   : > { %v1211_v25 = vadd.f32 %v7163_v7, %v1210_v1  ;;  %v2727_v48 = vpop.f32.mrf.mxu2  ;;  %v2896_v21 = vpop.f32.mrf.mxu3 }
 0x2ba   : > { %v7326_v60 = vadd.f32 %v2896_v21, %v2727_v48  ;;  %1010 = vst [vmem:[%s6591_s18 + $0x1e8] sm:$0xff] %v942_v13  ;;  %v2154_v22 = vunpack.c.l.b16 %v1852_v28  ;;  %v2155_v45 = vunpack.c.h.b16 %v1852_v28 }
 0x2bb   : > { %v1279_v12 = vmax.f32 %v1211_v25, 0.0 }
 0x2bc   : > { %8865 = vst [vmem:[#allocation126_spill] sm:$0xff] %v7326_v60 }
 0x2bd   : > { %v1438_v63 = vrot.slane %v1279_v12, 7  ;;  %v1631_v40 = vrot.slane %v1279_v12, 1 }
 0x2bf   : > { %v1439_v8 = vsel %vm1346_vm1, %v1437_v19, %v1438_v63  ;;  %v1632_v42 = vsel %vm1539_vm2, %v1630_v4, %v1631_v40  ;;  %v1730_v1 = vsel %vm1539_vm2, %v1631_v40, 0.0  ;;  %v944_v3 = vpop.f32.mrf.mxu0  ;;  %v5953_v63 = vld [vmem:[#allocation7 + $0x80] sm:$0xff] }
 0x2c0   : > { %v1854_v27 = vpack.c.bf16 %v1279_v12, %v1439_v8  ;;  %v1213_v53 = vpop.f32.mrf.mxu1  ;;  %v1853_v48 = vpack.c.bf16 %v1632_v42, %v1632_v42  ;;  %v1855_v21 = vpack.c.bf16 %v1730_v1, %v1730_v1  ;;  %v945_v13 = vadd.f32 %v7157_v33, %v944_v3  ;;  %3609 = vmatpush.bf16.msrb.mxu3 %v5953_v63 }
 0x2c1   : > { %v1214_v25 = vadd.f32 %v7163_v7, %v1213_v53  ;;  %v2729_v54 = vpop.f32.mrf.mxu2  ;;  %v2898_v38 = vpop.f32.mrf.mxu3 }
 0x2c2   : > { %v7334_v60 = vadd.f32 %v2898_v38, %v2729_v54  ;;  %v2157_v19 = vunpack.c.l.b16 %v1854_v27  ;;  %v2158_v4 = vunpack.c.h.b16 %v1854_v27  ;;  %v2156_v40 = vunpack.c.l.b16 %v1853_v48  ;;  %1011 = vst [vmem:[%s6591_s18 + $0x1f0] sm:$0xff] %v945_v13  ;;  %2994 = vmatmul.bf16.gmra.mxu0 %v6760_v39  ;;  %v6008_v27 = vld [vmem:[#allocation7 + $0x238] sm:$0xff] }
 0x2c3   : > { %v1280_v12 = vmax.f32 %v1214_v25, 0.0  ;;  %3307 = vmatmul.bf16.gmra.mxu1 %v6735_v49  ;;  %v2159_v8 = vunpack.c.l.b16 %v1855_v21  ;;  %4309 = vmatpush.bf16.msra.mxu2 %v6008_v27 }
 0x2c4   : > { %v7339_v3 = vpack.c.b16 %v2157_v19, %v2154_v22  ;;  %v7341_v53 = vpack.c.b16 %v2158_v4, %v2155_v45  ;;  %v5992_v19 = vld [vmem:[#allocation7 + $0x1b8] sm:$0xff] }
 0x2c5   : > { %v7343_v28 = vpack.c.b16 %v2159_v8, %v2156_v40  ;;  %v1440_v42 = vrot.slane %v1280_v12, 7  ;;  %v6000_v4 = vld [vmem:[#allocation7 + $0x1f8] sm:$0xff]  ;;  %v1633_v63 = vrot.slane %v1280_v12, 1  ;;  %3971 = vmatpush.bf16.msra.mxu0 %v5992_v19 }
 0x2c6   : > { %8866 = vst [vmem:[#allocation127_spill] sm:$0xff] %v7339_v3  ;;  %2771 = vmatmul.bf16.gmra.mxu2 %v7339_v3  ;;  %2940 = vmatmul.bf16.gmra.mxu3 %v7341_v53 }
 0x2c7   : > { %8867 = vst [vmem:[#allocation128_spill] sm:$0xff] %v7341_v53  ;;  %v946_v1 = vpop.f32.mrf.mxu0  ;;  %v1538_v54 = vsel %vm1346_vm1, 0.0, %v1440_v42  ;;  %4140 = vmatpush.bf16.msra.mxu1 %v6000_v4 }
 0x2c8   : > { %8868 = vst [vmem:[#allocation129_spill] sm:$0xff] %v7343_v28  ;;  %v1215_v48 = vpop.f32.mrf.mxu1  ;;  %v947_v13 = vadd.f32 %v7157_v33, %v946_v1  ;;  %v1856_v40 = vpack.c.bf16 %v1280_v12, %v1538_v54 }
 0x2c9   : > { %v1216_v22 = vadd.f32 %v7163_v7, %v1215_v48  ;;  %v2732_v21 = vpop.f32.mrf.mxu2  ;;  %v2901_v25 = vpop.f32.mrf.mxu3 }
 0x2ca   : > { %v7350_v38 = vadd.f32 %v2901_v25, %v2732_v21  ;;  %1012 = vst [vmem:[%s6591_s18 + $0x1f8] sm:$0xff] %v947_v13  ;;  %v2451_v12 = vunpack.c.l.b16 %v1856_v40  ;;  %v2452_v54 = vunpack.c.h.b16 %v1856_v40 }
 0x2cb   : > { %v1281_v45 = vmax.f32 %v1216_v22, 0.0 }
 0x2cd   : > { %v1441_v8 = vrot.slane %v1281_v45, 7  ;;  %v1634_v53 = vrot.slane %v1281_v45, 1 }
 0x2cf   : > { %v1442_v33 = vsel %vm1346_vm1, %v1440_v42, %v1441_v8  ;;  %v1635_v7 = vsel %vm1539_vm2, %v1633_v63, %v1634_v53  ;;  %v1731_v27 = vsel %vm1539_vm2, %v1634_v53, 0.0  ;;  %v2960_v48 = vpop.f32.mrf.mxu0 }
 0x2d0   : > { %v1858_v1 = vpack.c.bf16 %v1281_v45, %v1442_v33  ;;  %v3273_v21 = vpop.f32.mrf.mxu1  ;;  %v1857_v25 = vpack.c.bf16 %v1635_v7, %v1635_v7  ;;  %v1859_v13 = vpack.c.bf16 %v1731_v27, %v1731_v27  ;;  %v2961_v22 = vadd.f32 %v2960_v48, %v6788_v46 }
 0x2d1   : > { %v2734_v49 = vpop.f32.mrf.mxu2  ;;  %v2903_v3 = vpop.f32.mrf.mxu3 }
 0x2d2   : > { %v7357_v28 = vadd.f32 %v2903_v3, %v2734_v49  ;;  %v2454_v19 = vunpack.c.l.b16 %v1858_v1  ;;  %v2455_v4 = vunpack.c.h.b16 %v1858_v1  ;;  %v2453_v42 = vunpack.c.l.b16 %v1857_v25  ;;  %2999 = vmatmul.bf16.gmra.mxu0 %v6781_v26 }
 0x2d3   : > { %v7359_v8 = vadd.f32 %v3273_v21, %v2961_v22  ;;  %3312 = vmatmul.bf16.gmra.mxu1 %v6756_v37  ;;  %v2456_v53 = vunpack.c.l.b16 %v1859_v13  ;;  %v8885_v37 = vld [vmem:[#allocation51_spill] sm:$0xff] }
 0x2d4   : > { %v7363_v45 = vpack.c.b16 %v2454_v19, %v2451_v12  ;;  %v7365_v63 = vpack.c.b16 %v2455_v4, %v2452_v54 }
 0x2d5   : > { %v7367_v46 = vpack.c.b16 %v2456_v53, %v2453_v42 }
 0x2d6   : > { %8869 = vst [vmem:[#allocation130_spill] sm:$0xff] %v7363_v45  ;;  %2776 = vmatmul.bf16.gmra.mxu2 %v7363_v45  ;;  %2945 = vmatmul.bf16.gmra.mxu3 %v7365_v63 }
 0x2d7   : > { %8870 = vst [vmem:[#allocation131_spill] sm:$0xff] %v7365_v63  ;;  %v2962_v49 = vpop.f32.mrf.mxu0 }
 0x2d8   : > { %8871 = vst [vmem:[#allocation132_spill] sm:$0xff] %v7367_v46  ;;  %v3275_v3 = vpop.f32.mrf.mxu1  ;;  %v2963_v40 = vadd.f32 %v2962_v49, %v6797_v18  ;;  %v8872_v18 = vmov 0  }
 0x2d9   : > { %v2737_v33 = vpop.f32.mrf.mxu2  ;;  %v2906_v7 = vpop.f32.mrf.mxu3 }
 0x2da   : > { %v7372_v27 = vadd.f32 %v2906_v7, %v2737_v33  ;;  %v7374_v1 = vadd.f32 %v3275_v3, %v2963_v40 }
 0x2df   : > { %v2965_v48 = vpop.f32.mrf.mxu0 }
 0x2e0   : > { %v3278_v21 = vpop.f32.mrf.mxu1  ;;  %v2966_v25 = vadd.f32 %v2965_v48, %v6813_v56 }
 0x2e1   : > { %v2739_v13 = vpop.f32.mrf.mxu2  ;;  %v2908_v22 = vpop.f32.mrf.mxu3 }
 0x2e2   : > { %v7377_v12 = vadd.f32 %v2908_v22, %v2739_v13  ;;  %v7379_v54 = vadd.f32 %v3278_v21, %v2966_v25  ;;  %3004 = vmatmul.bf16.gmra.mxu0 %v6806_v32 }
 0x2e3   : > { %3317 = vmatmul.bf16.gmra.mxu1 %v6777_v24 }
 0x2e6   : > { %3441 = vmatmul.bf16.vlgmr.msrb.gmra.mxu2 %v8872_v18  ;;  %3610 = vmatmul.bf16.vlgmr.msrb.gmra.mxu3 %v8872_v18 }
 0x2e7   : > { %v2967_v19 = vpop.f32.mrf.mxu0 }
 0x2e8   : > { %v3280_v4 = vpop.f32.mrf.mxu1  ;;  %v2968_v42 = vadd.f32 %v2967_v19, %v6822_v23 }
 0x2e9   : > { %v2742_v53 = vpop.f32.mrf.mxu2  ;;  %v2911_v56 = vpop.f32.mrf.mxu3 }
 0x2ea   : > { %v7386_v49 = vadd.f32 %v2911_v56, %v2742_v53  ;;  %v7388_v3 = vadd.f32 %v3280_v4, %v2968_v42 }
 0x2ef   : > { %v2970_v40 = vpop.f32.mrf.mxu0 }
 0x2f0   : > { %v3283_v33 = vpop.f32.mrf.mxu1  ;;  %v2971_v7 = vadd.f32 %v2970_v40, %v6838_v2 }
 0x2f1   : > { %v2744_v48 = vpop.f32.mrf.mxu2  ;;  %v2913_v21 = vpop.f32.mrf.mxu3 }
 0x2f2   : > { %v7391_v25 = vadd.f32 %v2913_v21, %v2744_v48  ;;  %v7393_v13 = vadd.f32 %v3283_v33, %v2971_v7  ;;  %3009 = vmatmul.bf16.gmra.mxu0 %v6831_v52 }
 0x2f3   : > { %3322 = vmatmul.bf16.gmra.mxu1 %v6802_v30 }
 0x2f6   : > { %3446 = vmatmul.bf16.gmra.mxu2 %v6611_v9  ;;  %3615 = vmatmul.bf16.gmra.mxu3 %v6613_v10  ;;  %v6007_v10 = vld [vmem:[#allocation7 + $0x230] sm:$0xff] }
 0x2f7   : > { %v2972_v23 = vpop.f32.mrf.mxu0  ;;  %4310 = vmatpush.bf16.msra.mxu2 %v6007_v10 }
 0x2f8   : > { %v3285_v22 = vpop.f32.mrf.mxu1  ;;  %v2973_v19 = vadd.f32 %v2972_v23, %v6847_v0 }
 0x2f9   : > { %v2747_v4 = vpop.f32.mrf.mxu2  ;;  %v2916_v2 = vpop.f32.mrf.mxu3 }
 0x2fa   : > { %v7400_v42 = vadd.f32 %v2916_v2, %v2747_v4  ;;  %v7402_v53 = vadd.f32 %v3285_v22, %v2973_v19 }
 0x2ff   : > { %v2975_v56 = vpop.f32.mrf.mxu0 }
 0x300   : > { %v3288_v40 = vpop.f32.mrf.mxu1  ;;  %v2976_v33 = vadd.f32 %v2975_v56, %v6873_v59  ;;  %v5991_v56 = vld [vmem:[#allocation7 + $0x1b0] sm:$0xff] }
 0x301   : > { %v2749_v7 = vpop.f32.mrf.mxu2  ;;  %v2918_v48 = vpop.f32.mrf.mxu3  ;;  %3972 = vmatpush.bf16.msra.mxu0 %v5991_v56 }
 0x302   : > { %v7405_v21 = vadd.f32 %v2918_v48, %v2749_v7  ;;  %v7407_v9 = vadd.f32 %v3288_v40, %v2976_v33  ;;  %3014 = vmatmul.bf16.gmra.mxu0 %v6856_v11  ;;  %v5999_v40 = vld [vmem:[#allocation7 + $0x1f0] sm:$0xff] }
 0x303   : > { %3327 = vmatmul.bf16.gmra.mxu1 %v6827_v47 }
 0x304   : > { %8873 = vst [vmem:[#allocation133_spill] sm:$0xff] %v7405_v21  ;;  %4141 = vmatpush.bf16.msra.mxu1 %v5999_v40 }
 0x306   : > { %3451 = vmatmul.bf16.gmra.mxu2 %v6632_v43  ;;  %3620 = vmatmul.bf16.gmra.mxu3 %v6634_v44 }
 0x307   : > { %v2977_v0 = vpop.f32.mrf.mxu0 }
 0x308   : > { %v3290_v23 = vpop.f32.mrf.mxu1  ;;  %v2978_v59 = vadd.f32 %v2977_v0, %v6882_v62 }
 0x309   : > { %v2752_v22 = vpop.f32.mrf.mxu2  ;;  %v2921_v19 = vpop.f32.mrf.mxu3 }
 0x30a   : > { %v7414_v4 = vadd.f32 %v2921_v19, %v2752_v22  ;;  %v7416_v2 = vadd.f32 %v3290_v23, %v2978_v59 }
 0x30c   : > { %8874 = vst [vmem:[#allocation134_spill] sm:$0xff] %v7414_v4  ;;  %v8904_v4 = vld [vmem:[#allocation72_spill] sm:$0xff] }
 0x30f   : > { %v2980_v33 = vpop.f32.mrf.mxu0 }
 0x310   : > { %v3293_v7 = vpop.f32.mrf.mxu1  ;;  %v2981_v48 = vadd.f32 %v2980_v33, %v6898_v31 }
 0x311   : > { %v2754_v63 = vpop.f32.mrf.mxu2  ;;  %v2923_v45 = vpop.f32.mrf.mxu3 }
 0x312   : > { %v7419_v44 = vadd.f32 %v2923_v45, %v2754_v63  ;;  %v7421_v10 = vadd.f32 %v3293_v7, %v2981_v48  ;;  %3019 = vmatmul.bf16.gmra.mxu0 %v6891_v20 }
 0x313   : > { %3332 = vmatmul.bf16.gmra.mxu1 %v6852_v16 }
 0x314   : > { %8875 = vst [vmem:[#allocation135_spill] sm:$0xff] %v7419_v44 }
 0x316   : > { %3456 = vmatmul.bf16.gmra.mxu2 %v6653_v14  ;;  %3625 = vmatmul.bf16.gmra.mxu3 %v6655_v15  ;;  %v8878_v15 = vld [vmem:[#allocation48_spill] sm:$0xff]  ;;  %v8910_v14 = vld [vmem:[#allocation77_spill] sm:$0xff] }
 0x317   : > { %v2982_v62 = vpop.f32.mrf.mxu0 }
 0x318   : > { %v3295_v0 = vpop.f32.mrf.mxu1  ;;  %v2983_v23 = vadd.f32 %v2982_v62, %v6907_v61  ;;  %v8879_v61 = vld [vmem:[#allocation22_spill] sm:$0xff] }
 0x319   : > { %v2757_v59 = vpop.f32.mrf.mxu2  ;;  %v2926_v31 = vpop.f32.mrf.mxu3 }
 0x31a   : > { %v7428_v22 = vadd.f32 %v2926_v31, %v2757_v59  ;;  %v7430_v45 = vadd.f32 %v3295_v0, %v2983_v23  ;;  %v8880_v23 = vld [vmem:[#allocation54_spill] sm:$0xff] }
 0x31c   : > { %8876 = vst [vmem:[#allocation136_spill] sm:$0xff] %v7428_v22  ;;  %v8892_v22 = vld [vmem:[#allocation55_spill] sm:$0xff] }
 0x31f   : > { %v2985_v63 = vpop.f32.mrf.mxu0 }
 0x320   : > { %v3298_v19 = vpop.f32.mrf.mxu1  ;;  %v2986_v56 = vadd.f32 %v2985_v63, %v6923_v50 }
 0x321   : > { %v2759_v40 = vpop.f32.mrf.mxu2  ;;  %v2928_v33 = vpop.f32.mrf.mxu3 }
 0x322   : > { %v7433_v7 = vadd.f32 %v2928_v33, %v2759_v40  ;;  %v7435_v48 = vadd.f32 %v3298_v19, %v2986_v56  ;;  %3024 = vmatmul.bf16.gmra.mxu0 %v6916_v41  ;;  %v8882_v33 = vld [vmem:[#allocation58_spill] sm:$0xff] }
 0x323   : > { %3337 = vmatmul.bf16.gmra.mxu1 %v8878_v15 }
 0x324   : > { %8877 = vst [vmem:[#allocation137_spill] sm:$0xff] %v7433_v7 }
 0x326   : > { %3461 = vmatmul.bf16.gmra.mxu2 %v8879_v61  ;;  %3630 = vmatmul.bf16.gmra.mxu3 %v6676_v55  ;;  %v8884_v55 = vld [vmem:[#allocation57_spill] sm:$0xff] }
 0x327   : > { %v2987_v62 = vpop.f32.mrf.mxu0 }
 0x328   : > { %v3300_v0 = vpop.f32.mrf.mxu1  ;;  %v2988_v59 = vadd.f32 %v2987_v62, %v8880_v23  ;;  %v8886_v62 = vld [vmem:[#allocation25_spill] sm:$0xff] }
 0x329   : > { %v2762_v31 = vpop.f32.mrf.mxu2  ;;  %v2931_v50 = vpop.f32.mrf.mxu3 }
 0x32a   : > { %v7442_v63 = vadd.f32 %v2931_v50, %v2762_v31  ;;  %v7444_v40 = vadd.f32 %v3300_v0, %v2988_v59  ;;  %v8887_v59 = vld [vmem:[#allocation59_spill] sm:$0xff] }
 0x32c   : > { %8881 = vst [vmem:[#allocation54_spill] sm:$0xff] %v7442_v63 }
 0x32f   : > { %v2990_v19 = vpop.f32.mrf.mxu0 }
 0x330   : > { %v3303_v56 = vpop.f32.mrf.mxu1  ;;  %v2991_v16 = vadd.f32 %v2990_v19, %v8882_v33 }
 0x331   : > { %v2764_v47 = vpop.f32.mrf.mxu2  ;;  %v2933_v15 = vpop.f32.mrf.mxu3 }
 0x332   : > { %v7447_v30 = vadd.f32 %v2933_v15, %v2764_v47  ;;  %v7449_v24 = vadd.f32 %v3303_v56, %v2991_v16  ;;  %3029 = vmatmul.bf16.gmra.mxu0 %v8884_v55  ;;  %v8889_v56 = vld [vmem:[#allocation63_spill] sm:$0xff] }
 0x333   : > { %3342 = vmatmul.bf16.gmra.mxu1 %v8885_v37 }
 0x334   : > { %8883 = vst [vmem:[#allocation58_spill] sm:$0xff] %v7447_v30 }
 0x336   : > { %3466 = vmatmul.bf16.gmra.mxu2 %v8886_v62  ;;  %3635 = vmatmul.bf16.gmra.mxu3 %v6697_v29  ;;  %v8891_v29 = vld [vmem:[#allocation62_spill] sm:$0xff] }
 0x337   : > { %v2992_v0 = vpop.f32.mrf.mxu0 }
 0x338   : > { %v3305_v23 = vpop.f32.mrf.mxu1  ;;  %v2993_v31 = vadd.f32 %v2992_v0, %v8887_v59  ;;  %v8893_v0 = vld [vmem:[#allocation28_spill] sm:$0xff] }
 0x339   : > { %v2767_v50 = vpop.f32.mrf.mxu2  ;;  %v2936_v19 = vpop.f32.mrf.mxu3 }
 0x33a   : > { %v7456_v33 = vadd.f32 %v2936_v19, %v2767_v50  ;;  %v7458_v15 = vadd.f32 %v3305_v23, %v2993_v31  ;;  %v6006_v23 = vld [vmem:[#allocation7 + $0x228] sm:$0xff]  ;;  %v8894_v50 = vld [vmem:[#allocation64_spill] sm:$0xff] }
 0x33b   : > { %4311 = vmatpush.bf16.msra.mxu2 %v6006_v23 }
 0x33c   : > { %8888 = vst [vmem:[#allocation59_spill] sm:$0xff] %v7456_v33 }
 0x33f   : > { %v2995_v47 = vpop.f32.mrf.mxu0 }
 0x340   : > { %v3308_v16 = vpop.f32.mrf.mxu1  ;;  %v2996_v30 = vadd.f32 %v2995_v47, %v8889_v56 }
 0x341   : > { %v2769_v63 = vpop.f32.mrf.mxu2  ;;  %v2938_v37 = vpop.f32.mrf.mxu3 }
 0x342   : > { %v7461_v7 = vadd.f32 %v2938_v37, %v2769_v63  ;;  %v7463_v62 = vadd.f32 %v3308_v16, %v2996_v30  ;;  %3034 = vmatmul.bf16.gmra.mxu0 %v8891_v29  ;;  %v5990_v63 = vld [vmem:[#allocation7 + $0x1a8] sm:$0xff] }
 0x343   : > { %3347 = vmatmul.bf16.gmra.mxu1 %v8892_v22  ;;  %v5998_v16 = vld [vmem:[#allocation7 + $0x1e8] sm:$0xff]  ;;  %3973 = vmatpush.bf16.msra.mxu0 %v5990_v63 }
 0x344   : > { %8890 = vst [vmem:[#allocation63_spill] sm:$0xff] %v7461_v7  ;;  %4142 = vmatpush.bf16.msra.mxu1 %v5998_v16  ;;  %v8896_v7 = vld [vmem:[#allocation68_spill] sm:$0xff]  ;;  %v8902_v16 = vld [vmem:[#allocation73_spill] sm:$0xff] }
 0x346   : > { %3471 = vmatmul.bf16.gmra.mxu2 %v8893_v0  ;;  %3640 = vmatmul.bf16.gmra.mxu3 %v6718_v5 }
 0x347   : > { %v2997_v59 = vpop.f32.mrf.mxu0 }
 0x348   : > { %v3310_v31 = vpop.f32.mrf.mxu1  ;;  %v2998_v19 = vadd.f32 %v2997_v59, %v8894_v50  ;;  %v8898_v59 = vld [vmem:[#allocation67_spill] sm:$0xff] }
 0x349   : > { %v2772_v47 = vpop.f32.mrf.mxu2  ;;  %v2941_v56 = vpop.f32.mrf.mxu3 }
 0x34a   : > { %v7470_v37 = vadd.f32 %v2941_v56, %v2772_v47  ;;  %v7472_v30 = vadd.f32 %v3310_v31, %v2998_v19  ;;  %v8899_v31 = vld [vmem:[#allocation31_spill] sm:$0xff]  ;;  %v8900_v47 = vld [vmem:[#allocation69_spill] sm:$0xff] }
 0x34c   : > { %8895 = vst [vmem:[#allocation64_spill] sm:$0xff] %v7470_v37 }
 0x34f   : > { %v3000_v29 = vpop.f32.mrf.mxu0 }
 0x350   : > { %v3313_v22 = vpop.f32.mrf.mxu1  ;;  %v3001_v5 = vadd.f32 %v3000_v29, %v8896_v7 }
 0x351   : > { %v2774_v33 = vpop.f32.mrf.mxu2  ;;  %v2943_v0 = vpop.f32.mrf.mxu3 }
 0x352   : > { %v7475_v44 = vadd.f32 %v2943_v0, %v2774_v33  ;;  %v7477_v23 = vadd.f32 %v3313_v22, %v3001_v5  ;;  %3039 = vmatmul.bf16.gmra.mxu0 %v8898_v59  ;;  %v6016_v5 = vld [vmem:[#allocation8 + $0x38] sm:$0xff] }
 0x353   : > { %3352 = vmatmul.bf16.gmra.mxu1 %v8872_v18  ;;  %4774 = vmatpush.bf16.msra.mxu3 %v6016_v5 }
 0x354   : > { %8897 = vst [vmem:[#allocation68_spill] sm:$0xff] %v7475_v44 }
 0x356   : > { %3476 = vmatmul.bf16.gmra.mxu2 %v8899_v31  ;;  %3645 = vmatmul.bf16.gmra.mxu3 %v6739_v51 }
 0x357   : > { %v3002_v50 = vpop.f32.mrf.mxu0 }
 0x358   : > { %v3315_v19 = vpop.f32.mrf.mxu1  ;;  %v3003_v56 = vadd.f32 %v3002_v50, %v8900_v47  ;;  %v8905_v50 = vld [vmem:[#allocation65_spill] sm:$0xff]  ;;  %v8906_v47 = vld [vmem:[#allocation34_spill] sm:$0xff] }
 0x359   : > { %v2777_v63 = vpop.f32.mrf.mxu2  ;;  %v2946_v29 = vpop.f32.mrf.mxu3 }
 0x35a   : > { %v7484_v7 = vadd.f32 %v2946_v29, %v2777_v63  ;;  %v7486_v33 = vadd.f32 %v3315_v19, %v3003_v56  ;;  %v8907_v63 = vld [vmem:[#allocation74_spill] sm:$0xff] }
 0x35c   : > { %8901 = vst [vmem:[#allocation67_spill] sm:$0xff] %v7484_v7 }
 0x35f   : > { %v3005_v22 = vpop.f32.mrf.mxu0 }
 0x360   : > { %v3318_v0 = vpop.f32.mrf.mxu1  ;;  %v3006_v44 = vadd.f32 %v3005_v22, %v8902_v16 }
 0x361   : > { %v2779_v37 = vpop.f32.mrf.mxu2  ;;  %v2948_v31 = vpop.f32.mrf.mxu3 }
 0x362   : > { %v7489_v61 = vadd.f32 %v2948_v31, %v2779_v37  ;;  %v7491_v51 = vadd.f32 %v3318_v0, %v3006_v44  ;;  %3044 = vmatmul.bf16.gmra.mxu0 %v8904_v4 }
 0x363   : > { %3357 = vmatmul.bf16.gmra.mxu1 %v8905_v50 }
 0x364   : > { %8903 = vst [vmem:[#allocation69_spill] sm:$0xff] %v7489_v61  ;;  %v8909_v61 = vld [vmem:[#allocation78_spill] sm:$0xff] }
 0x366   : > { %3481 = vmatmul.bf16.gmra.mxu2 %v8906_v47  ;;  %3650 = vmatmul.bf16.gmra.mxu3 %v6760_v39 }
 0x367   : > { %v3007_v19 = vpop.f32.mrf.mxu0 }
 0x368   : > { %v3320_v56 = vpop.f32.mrf.mxu1  ;;  %v3008_v29 = vadd.f32 %v3007_v19, %v8907_v63  ;;  %v8911_v19 = vld [vmem:[#allocation70_spill] sm:$0xff] }
 0x369   : > { %v3442_v5 = vpop.f32.mrf.mxu2  ;;  %v3611_v22 = vpop.f32.mrf.mxu3 }
 0x36a   : > { %v3443_v16 = vadd.f32 %v3442_v5, %v7359_v8  ;;  %v7499_v37 = vadd.f32 %v3320_v56, %v3008_v29  ;;  %v8913_v8 = vld [vmem:[#allocation37_spill] sm:$0xff]  ;;  %v8914_v5 = vld [vmem:[#allocation79_spill] sm:$0xff] }
 0x36c   : > { %v7501_v44 = vadd.f32 %v3611_v22, %v3443_v16 }
 0x36e   : > { %8908 = vst [vmem:[#allocation73_spill] sm:$0xff] %v7501_v44 }
 0x36f   : > { %v3010_v31 = vpop.f32.mrf.mxu0 }
 0x370   : > { %v3323_v0 = vpop.f32.mrf.mxu1  ;;  %v3011_v50 = vadd.f32 %v3010_v31, %v8909_v61 }
 0x371   : > { %v3444_v7 = vpop.f32.mrf.mxu2  ;;  %v3613_v47 = vpop.f32.mrf.mxu3 }
 0x372   : > { %v3445_v39 = vadd.f32 %v3444_v7, %v7374_v1  ;;  %v7505_v21 = vadd.f32 %v3323_v0, %v3011_v50  ;;  %3049 = vmatmul.bf16.gmra.mxu0 %v8910_v14 }
 0x373   : > { %3362 = vmatmul.bf16.gmra.mxu1 %v8911_v19 }
 0x374   : > { %v7509_v63 = vadd.f32 %v3613_v47, %v3445_v39  ;;  %v8916_v39 = vld [vmem:[#allocation83_spill] sm:$0xff] }
 0x376   : > { %8912 = vst [vmem:[#allocation65_spill] sm:$0xff] %v7509_v63  ;;  %3486 = vmatmul.bf16.gmra.mxu2 %v8913_v8  ;;  %3655 = vmatmul.bf16.gmra.mxu3 %v6781_v26  ;;  %v8917_v8 = vld [vmem:[#allocation82_spill] sm:$0xff] }
 0x377   : > { %v3012_v56 = vpop.f32.mrf.mxu0 }
 0x378   : > { %v3325_v29 = vpop.f32.mrf.mxu1  ;;  %v3013_v61 = vadd.f32 %v3012_v56, %v8914_v5  ;;  %v8918_v56 = vld [vmem:[#allocation75_spill] sm:$0xff] }
 0x379   : > { %v3447_v22 = vpop.f32.mrf.mxu2  ;;  %v3616_v16 = vpop.f32.mrf.mxu3 }
 0x37a   : > { %v3448_v1 = vadd.f32 %v3447_v22, %v7379_v54  ;;  %v7515_v7 = vadd.f32 %v3325_v29, %v3013_v61  ;;  %v8920_v54 = vld [vmem:[#allocation40_spill] sm:$0xff] }
 0x37b   : > { %v6005_v29 = vld [vmem:[#allocation7 + $0x220] sm:$0xff] }
 0x37c   : > { %v7517_v31 = vadd.f32 %v3616_v16, %v3448_v1  ;;  %4312 = vmatpush.bf16.msra.mxu2 %v6005_v29  ;;  %v8921_v16 = vld [vmem:[#allocation84_spill] sm:$0xff] }
 0x37e   : > { %8915 = vst [vmem:[#allocation74_spill] sm:$0xff] %v7517_v31  ;;  %v8923_v31 = vld [vmem:[#allocation88_spill] sm:$0xff] }
 0x37f   : > { %v3015_v0 = vpop.f32.mrf.mxu0 }
 0x380   : > { %v3328_v50 = vpop.f32.mrf.mxu1  ;;  %v3016_v47 = vadd.f32 %v3015_v0, %v8916_v39 }
 0x381   : > { %v3449_v63 = vpop.f32.mrf.mxu2  ;;  %v3618_v44 = vpop.f32.mrf.mxu3 }
 0x382   : > { %v3450_v26 = vadd.f32 %v3449_v63, %v7388_v3  ;;  %v7521_v19 = vadd.f32 %v3328_v50, %v3016_v47  ;;  %3054 = vmatmul.bf16.gmra.mxu0 %v8917_v8 }
 0x383   : > { %3367 = vmatmul.bf16.gmra.mxu1 %v8918_v56 }
 0x384   : > { %v7525_v5 = vadd.f32 %v3618_v44, %v3450_v26  ;;  %v5989_v26 = vld [vmem:[#allocation7 + $0x1a0] sm:$0xff] }
 0x385   : > { %v5997_v44 = vld [vmem:[#allocation7 + $0x1e0] sm:$0xff]  ;;  %3974 = vmatpush.bf16.msra.mxu0 %v5989_v26 }
 0x386   : > { %8919 = vst [vmem:[#allocation78_spill] sm:$0xff] %v7525_v5  ;;  %3491 = vmatmul.bf16.gmra.mxu2 %v8920_v54  ;;  %3660 = vmatmul.bf16.gmra.mxu3 %v6806_v32  ;;  %v8924_v54 = vld [vmem:[#allocation87_spill] sm:$0xff] }
 0x387   : > { %v3017_v61 = vpop.f32.mrf.mxu0  ;;  %4143 = vmatpush.bf16.msra.mxu1 %v5997_v44 }
 0x388   : > { %v3330_v22 = vpop.f32.mrf.mxu1  ;;  %v3018_v1 = vadd.f32 %v3017_v61, %v8921_v16 }
 0x389   : > { %v3452_v0 = vpop.f32.mrf.mxu2  ;;  %v3621_v3 = vpop.f32.mrf.mxu3 }
 0x38a   : > { %v3453_v63 = vadd.f32 %v3452_v0, %v7393_v13  ;;  %v7531_v50 = vadd.f32 %v3330_v22, %v3018_v1  ;;  %v8925_v13 = vld [vmem:[#allocation80_spill] sm:$0xff]  ;;  %v8927_v1 = vld [vmem:[#allocation43_spill] sm:$0xff] }
 0x38c   : > { %v7533_v39 = vadd.f32 %v3621_v3, %v3453_v63  ;;  %v8928_v63 = vld [vmem:[#allocation89_spill] sm:$0xff] }
 0x38e   : > { %8922 = vst [vmem:[#allocation79_spill] sm:$0xff] %v7533_v39 }
 0x38f   : > { %v3020_v47 = vpop.f32.mrf.mxu0 }
 0x390   : > { %v3333_v5 = vpop.f32.mrf.mxu1  ;;  %v3021_v32 = vadd.f32 %v3020_v47, %v8923_v31 }
 0x391   : > { %v3454_v56 = vpop.f32.mrf.mxu2  ;;  %v3623_v29 = vpop.f32.mrf.mxu3 }
 0x392   : > { %v3455_v61 = vadd.f32 %v3454_v56, %v7402_v53  ;;  %v7537_v16 = vadd.f32 %v3333_v5, %v3021_v32  ;;  %3059 = vmatmul.bf16.gmra.mxu0 %v8924_v54  ;;  %v6015_v5 = vld [vmem:[#allocation8 + $0x30] sm:$0xff] }
 0x393   : > { %3372 = vmatmul.bf16.gmra.mxu1 %v8925_v13  ;;  %4775 = vmatpush.bf16.msra.mxu3 %v6015_v5 }
 0x394   : > { %v7541_v22 = vadd.f32 %v3623_v29, %v3455_v61  ;;  %v8930_v61 = vld [vmem:[#allocation93_spill] sm:$0xff] }
 0x396   : > { %8926 = vst [vmem:[#allocation83_spill] sm:$0xff] %v7541_v22  ;;  %3496 = vmatmul.bf16.gmra.mxu2 %v8927_v1  ;;  %3665 = vmatmul.bf16.gmra.mxu3 %v6831_v52 }
 0x397   : > { %v3022_v0 = vpop.f32.mrf.mxu0 }
 0x398   : > { %v3335_v3 = vpop.f32.mrf.mxu1  ;;  %v3023_v31 = vadd.f32 %v3022_v0, %v8928_v63  ;;  %v8931_v0 = vld [vmem:[#allocation92_spill] sm:$0xff]  ;;  %v8932_v63 = vld [vmem:[#allocation85_spill] sm:$0xff] }
 0x399   : > { %v3457_v26 = vpop.f32.mrf.mxu2  ;;  %v3626_v44 = vpop.f32.mrf.mxu3 }
 0x39a   : > { %v3458_v53 = vadd.f32 %v3457_v26, %v7407_v9  ;;  %v7547_v32 = vadd.f32 %v3335_v3, %v3023_v31  ;;  %v8934_v3 = vld [vmem:[#allocation46_spill] sm:$0xff] }
 0x39c   : > { %v7549_v56 = vadd.f32 %v3626_v44, %v3458_v53 }
 0x39e   : > { %8929 = vst [vmem:[#allocation84_spill] sm:$0xff] %v7549_v56 }
 0x39f   : > { %v3025_v47 = vpop.f32.mrf.mxu0 }
 0x3a0   : > { %v3338_v29 = vpop.f32.mrf.mxu1  ;;  %v3026_v22 = vadd.f32 %v3025_v47, %v8930_v61 }
 0x3a1   : > { %v3459_v39 = vpop.f32.mrf.mxu2  ;;  %v3628_v52 = vpop.f32.mrf.mxu3 }
 0x3a2   : > { %v3460_v13 = vadd.f32 %v3459_v39, %v7416_v2  ;;  %v7553_v1 = vadd.f32 %v3338_v29, %v3026_v22  ;;  %3064 = vmatmul.bf16.gmra.mxu0 %v8931_v0 }
 0x3a3   : > { %3377 = vmatmul.bf16.gmra.mxu1 %v8932_v63  ;;  %v8937_v63 = vld [vmem:[#allocation96_spill] sm:$0xff] }
 0x3a4   : > { %v7557_v9 = vadd.f32 %v3628_v52, %v3460_v13  ;;  %v8936_v52 = vld [vmem:[#allocation97_spill] sm:$0xff] }
 0x3a6   : > { %8933 = vst [vmem:[#allocation88_spill] sm:$0xff] %v7557_v9  ;;  %3501 = vmatmul.bf16.gmra.mxu2 %v8934_v3  ;;  %3670 = vmatmul.bf16.gmra.mxu3 %v6856_v11 }
 0x3a7   : > { %v3027_v31 = vpop.f32.mrf.mxu0 }
 0x3a8   : > { %v3340_v26 = vpop.f32.mrf.mxu1  ;;  %v3028_v44 = vadd.f32 %v3027_v31, %v7132_v34  ;;  %v8938_v34 = vld [vmem:[#allocation90_spill] sm:$0xff] }
 0x3a9   : > { %v3462_v53 = vpop.f32.mrf.mxu2  ;;  %v3631_v5 = vpop.f32.mrf.mxu3 }
 0x3aa   : > { %v3463_v2 = vadd.f32 %v3462_v53, %v7421_v10  ;;  %v7563_v39 = vadd.f32 %v3340_v26, %v3028_v44  ;;  %v8940_v10 = vld [vmem:[#allocation49_spill] sm:$0xff]  ;;  %v8941_v53 = vld [vmem:[#allocation98_spill] sm:$0xff] }
 0x3ac   : > { %v7565_v22 = vadd.f32 %v3631_v5, %v3463_v2 }
 0x3ae   : > { %8935 = vst [vmem:[#allocation87_spill] sm:$0xff] %v7565_v22 }
 0x3af   : > { %v3030_v47 = vpop.f32.mrf.mxu0 }
 0x3b0   : > { %v3343_v29 = vpop.f32.mrf.mxu1  ;;  %v3031_v13 = vadd.f32 %v3030_v47, %v8936_v52 }
 0x3b1   : > { %v3464_v61 = vpop.f32.mrf.mxu2  ;;  %v3633_v9 = vpop.f32.mrf.mxu3 }
 0x3b2   : > { %v3465_v56 = vadd.f32 %v3464_v61, %v7430_v45  ;;  %v7569_v11 = vadd.f32 %v3343_v29, %v3031_v13  ;;  %3069 = vmatmul.bf16.gmra.mxu0 %v8937_v63 }
 0x3b3   : > { %3382 = vmatmul.bf16.gmra.mxu1 %v8938_v34 }
 0x3b4   : > { %v7573_v31 = vadd.f32 %v3633_v9, %v3465_v56  ;;  %v8943_v56 = vld [vmem:[#allocation102_spill] sm:$0xff] }
 0x3b6   : > { %8939 = vst [vmem:[#allocation89_spill] sm:$0xff] %v7573_v31  ;;  %3506 = vmatmul.bf16.gmra.mxu2 %v8940_v10  ;;  %3675 = vmatmul.bf16.gmra.mxu3 %v6891_v20  ;;  %v8944_v10 = vld [vmem:[#allocation101_spill] sm:$0xff] }
 0x3b7   : > { %v3032_v26 = vpop.f32.mrf.mxu0 }
 0x3b8   : > { %v3345_v44 = vpop.f32.mrf.mxu1  ;;  %v3033_v5 = vadd.f32 %v3032_v26, %v8941_v53  ;;  %v8945_v26 = vld [vmem:[#allocation94_spill] sm:$0xff] }
 0x3b9   : > { %v3467_v2 = vpop.f32.mrf.mxu2  ;;  %v3636_v47 = vpop.f32.mrf.mxu3 }
 0x3ba   : > { %v3468_v45 = vadd.f32 %v3467_v2, %v7435_v48  ;;  %v7579_v29 = vadd.f32 %v3345_v44, %v3033_v5  ;;  %v8947_v48 = vld [vmem:[#allocation52_spill] sm:$0xff]  ;;  %v6004_v44 = vld [vmem:[#allocation7 + $0x218] sm:$0xff] }
 0x3bb   : > { %4313 = vmatpush.bf16.msra.mxu2 %v6004_v44 }
 0x3bc   : > { %v7581_v52 = vadd.f32 %v3636_v47, %v3468_v45 }
 0x3be   : > { %8942 = vst [vmem:[#allocation93_spill] sm:$0xff] %v7581_v52 }
 0x3bf   : > { %v3035_v13 = vpop.f32.mrf.mxu0 }
 0x3c0   : > { %v3348_v61 = vpop.f32.mrf.mxu1  ;;  %v3036_v9 = vadd.f32 %v3035_v13, %v8943_v56 }
 0x3c1   : > { %v3469_v31 = vpop.f32.mrf.mxu2  ;;  %v3638_v22 = vpop.f32.mrf.mxu3 }
 0x3c2   : > { %v3470_v20 = vadd.f32 %v3469_v31, %v7444_v40  ;;  %v7585_v34 = vadd.f32 %v3348_v61, %v3036_v9  ;;  %3074 = vmatmul.bf16.gmra.mxu0 %v8944_v10 }
 0x3c3   : > { %3387 = vmatmul.bf16.gmra.mxu1 %v8945_v26  ;;  %v8950_v26 = vld [vmem:[#allocation105_spill] sm:$0xff] }
 0x3c4   : > { %v7589_v53 = vadd.f32 %v3638_v22, %v3470_v20  ;;  %v5988_v20 = vld [vmem:[#allocation7 + $0x198] sm:$0xff] }
 0x3c5   : > { %v5996_v22 = vld [vmem:[#allocation7 + $0x1d8] sm:$0xff]  ;;  %3975 = vmatpush.bf16.msra.mxu0 %v5988_v20 }
 0x3c6   : > { %8946 = vst [vmem:[#allocation92_spill] sm:$0xff] %v7589_v53  ;;  %3511 = vmatmul.bf16.gmra.mxu2 %v8947_v48  ;;  %3680 = vmatmul.bf16.gmra.mxu3 %v6916_v41  ;;  %v8949_v53 = vld [vmem:[#allocation106_spill] sm:$0xff] }
 0x3c7   : > { %v3037_v5 = vpop.f32.mrf.mxu0  ;;  %4144 = vmatpush.bf16.msra.mxu1 %v5996_v22  ;;  %v6014_v22 = vld [vmem:[#allocation8 + $0x28] sm:$0xff] }
 0x3c8   : > { %v3350_v2 = vpop.f32.mrf.mxu1  ;;  %v3038_v47 = vadd.f32 %v3037_v5, %v7190_v58  ;;  %4776 = vmatpush.bf16.msra.mxu3 %v6014_v22 }
 0x3c9   : > { %v3472_v45 = vpop.f32.mrf.mxu2  ;;  %v3641_v40 = vpop.f32.mrf.mxu3 }
 0x3ca   : > { %v3473_v31 = vadd.f32 %v3472_v45, %v7449_v24  ;;  %v7595_v13 = vadd.f32 %v3350_v2, %v3038_v47  ;;  %v8951_v24 = vld [vmem:[#allocation99_spill] sm:$0xff]  ;;  %v8953_v47 = vld [vmem:[#allocation56_spill] sm:$0xff] }
 0x3cc   : > { %v7597_v61 = vadd.f32 %v3641_v40, %v3473_v31 }
 0x3ce   : > { %8948 = vst [vmem:[#allocation46_spill] sm:$0xff] %v7597_v61 }
 0x3cf   : > { %v3040_v56 = vpop.f32.mrf.mxu0 }
 0x3d0   : > { %v3353_v9 = vpop.f32.mrf.mxu1  ;;  %v3041_v52 = vadd.f32 %v3040_v56, %v8949_v53 }
 0x3d1   : > { %v3474_v41 = vpop.f32.mrf.mxu2  ;;  %v3643_v44 = vpop.f32.mrf.mxu3 }
 0x3d2   : > { %v3475_v58 = vadd.f32 %v3474_v41, %v7458_v15  ;;  %v7601_v5 = vadd.f32 %v3353_v9, %v3041_v52  ;;  %3079 = vmatmul.bf16.gmra.mxu0 %v8950_v26 }
 0x3d3   : > { %3392 = vmatmul.bf16.gmra.mxu1 %v8951_v24 }
 0x3d4   : > { %v7605_v2 = vadd.f32 %v3643_v44, %v3475_v58  ;;  %v8955_v44 = vld [vmem:[#allocation110_spill] sm:$0xff] }
 0x3d6   : > { %8952 = vst [vmem:[#allocation97_spill] sm:$0xff] %v7605_v2  ;;  %3516 = vmatmul.bf16.gmra.mxu2 %v8953_v47  ;;  %3685 = vmatmul.bf16.gmra.mxu3 %v8884_v55 }
 0x3d7   : > { %v3042_v45 = vpop.f32.mrf.mxu0 }
 0x3d8   : > { %v3355_v40 = vpop.f32.mrf.mxu1  ;;  %v3043_v53 = vadd.f32 %v3042_v45, %v7214_v57  ;;  %v8956_v57 = vld [vmem:[#allocation109_spill] sm:$0xff]  ;;  %v8957_v45 = vld [vmem:[#allocation103_spill] sm:$0xff] }
 0x3d9   : > { %v3477_v31 = vpop.f32.mrf.mxu2  ;;  %v3646_v20 = vpop.f32.mrf.mxu3 }
 0x3da   : > { %v3478_v41 = vadd.f32 %v3477_v31, %v7463_v62  ;;  %v7611_v15 = vadd.f32 %v3355_v40, %v3043_v53 }
 0x3dc   : > { %v7613_v52 = vadd.f32 %v3646_v20, %v3478_v41 }
 0x3de   : > { %8954 = vst [vmem:[#allocation96_spill] sm:$0xff] %v7613_v52 }
 0x3df   : > { %v3045_v56 = vpop.f32.mrf.mxu0 }
 0x3e0   : > { %v3358_v9 = vpop.f32.mrf.mxu1  ;;  %v3046_v58 = vadd.f32 %v3045_v56, %v8955_v44 }
 0x3e1   : > { %v3479_v2 = vpop.f32.mrf.mxu2  ;;  %v3648_v61 = vpop.f32.mrf.mxu3 }
 0x3e2   : > { %v3480_v55 = vadd.f32 %v3479_v2, %v7472_v30  ;;  %v7617_v24 = vadd.f32 %v3358_v9, %v3046_v58  ;;  %3084 = vmatmul.bf16.gmra.mxu0 %v8956_v57 }
 0x3e3   : > { %3397 = vmatmul.bf16.gmra.mxu1 %v8957_v45  ;;  %v8961_v45 = vld [vmem:[#allocation113_spill] sm:$0xff] }
 0x3e4   : > { %v7621_v62 = vadd.f32 %v3648_v61, %v3480_v55  ;;  %v8960_v55 = vld [vmem:[#allocation114_spill] sm:$0xff] }
 0x3e6   : > { %8958 = vst [vmem:[#allocation98_spill] sm:$0xff] %v7621_v62  ;;  %3521 = vmatmul.bf16.gmra.mxu2 %v8872_v18  ;;  %3690 = vmatmul.bf16.gmra.mxu3 %v8872_v18 }
 0x3e7   : > { %v3047_v40 = vpop.f32.mrf.mxu0 }
 0x3e8   : > { %v3360_v53 = vpop.f32.mrf.mxu1  ;;  %v3048_v31 = vadd.f32 %v3047_v40, %v7238_v35  ;;  %v8962_v35 = vld [vmem:[#allocation107_spill] sm:$0xff] }
 0x3e9   : > { %v3482_v20 = vpop.f32.mrf.mxu2  ;;  %v3651_v41 = vpop.f32.mrf.mxu3 }
 0x3ea   : > { %v3483_v30 = vadd.f32 %v3482_v20, %v7477_v23  ;;  %v7627_v2 = vadd.f32 %v3360_v53, %v3048_v31  ;;  %v8964_v23 = vld [vmem:[#allocation66_spill] sm:$0xff] }
 0x3ec   : > { %v7629_v22 = vadd.f32 %v3651_v41, %v3483_v30 }
 0x3ee   : > { %8959 = vst [vmem:[#allocation102_spill] sm:$0xff] %v7629_v22  ;;  %v8967_v22 = vld [vmem:[#allocation117_spill] sm:$0xff] }
 0x3ef   : > { %v3050_v56 = vpop.f32.mrf.mxu0 }
 0x3f0   : > { %v3363_v9 = vpop.f32.mrf.mxu1  ;;  %v3051_v61 = vadd.f32 %v3050_v56, %v8960_v55 }
 0x3f1   : > { %v3484_v44 = vpop.f32.mrf.mxu2  ;;  %v3653_v58 = vpop.f32.mrf.mxu3 }
 0x3f2   : > { %v3485_v62 = vadd.f32 %v3484_v44, %v7486_v33  ;;  %v7633_v52 = vadd.f32 %v3363_v9, %v3051_v61  ;;  %3089 = vmatmul.bf16.gmra.mxu0 %v8961_v45 }
 0x3f3   : > { %3402 = vmatmul.bf16.gmra.mxu1 %v8962_v35 }
 0x3f4   : > { %v7637_v40 = vadd.f32 %v3653_v58, %v3485_v62  ;;  %v8966_v62 = vld [vmem:[#allocation118_spill] sm:$0xff] }
 0x3f6   : > { %8963 = vst [vmem:[#allocation101_spill] sm:$0xff] %v7637_v40  ;;  %3526 = vmatmul.bf16.gmra.mxu2 %v8964_v23  ;;  %3695 = vmatmul.bf16.gmra.mxu3 %v8898_v59 }
 0x3f7   : > { %v3052_v53 = vpop.f32.mrf.mxu0 }
 0x3f8   : > { %v3365_v31 = vpop.f32.mrf.mxu1  ;;  %v3053_v20 = vadd.f32 %v3052_v53, %v7262_v36  ;;  %v8968_v36 = vld [vmem:[#allocation111_spill] sm:$0xff] }
 0x3f9   : > { %v3487_v41 = vpop.f32.mrf.mxu2  ;;  %v3656_v30 = vpop.f32.mrf.mxu3 }
 0x3fa   : > { %v3488_v33 = vadd.f32 %v3487_v41, %v7491_v51  ;;  %v7643_v56 = vadd.f32 %v3365_v31, %v3053_v20  ;;  %v8970_v51 = vld [vmem:[#allocation71_spill] sm:$0xff]  ;;  %v6003_v31 = vld [vmem:[#allocation7 + $0x210] sm:$0xff] }
 0x3fb   : > { %4314 = vmatpush.bf16.msra.mxu2 %v6003_v31 }
 0x3fc   : > { %v7645_v9 = vadd.f32 %v3656_v30, %v3488_v33 }
 0x3fe   : > { %8965 = vst [vmem:[#allocation52_spill] sm:$0xff] %v7645_v9 }
 0x3ff   : > { %v3055_v55 = vpop.f32.mrf.mxu0 }
 0x400   : > { %v3368_v61 = vpop.f32.mrf.mxu1  ;;  %v3056_v44 = vadd.f32 %v3055_v55, %v8966_v62 }
 0x401   : > { %v3489_v58 = vpop.f32.mrf.mxu2  ;;  %v3658_v23 = vpop.f32.mrf.mxu3 }
 0x402   : > { %v3490_v59 = vadd.f32 %v3489_v58, %v7499_v37  ;;  %v7649_v40 = vadd.f32 %v3368_v61, %v3056_v44  ;;  %3094 = vmatmul.bf16.gmra.mxu0 %v8967_v22  ;;  %v5987_v44 = vld [vmem:[#allocation7 + $0x190] sm:$0xff] }
 0x403   : > { %3407 = vmatmul.bf16.gmra.mxu1 %v8968_v36  ;;  %v5995_v58 = vld [vmem:[#allocation7 + $0x1d0] sm:$0xff]  ;;  %3976 = vmatpush.bf16.msra.mxu0 %v5987_v44  ;;  %v8973_v36 = vld [vmem:[#allocation121_spill] sm:$0xff] }
 0x404   : > { %v7653_v53 = vadd.f32 %v3658_v23, %v3490_v59  ;;  %4145 = vmatpush.bf16.msra.mxu1 %v5995_v58  ;;  %v6013_v58 = vld [vmem:[#allocation8 + $0x20] sm:$0xff] }
 0x405   : > { %4777 = vmatpush.bf16.msra.mxu3 %v6013_v58 }
 0x406   : > { %8969 = vst [vmem:[#allocation106_spill] sm:$0xff] %v7653_v53  ;;  %3531 = vmatmul.bf16.gmra.mxu2 %v8970_v51  ;;  %3700 = vmatmul.bf16.gmra.mxu3 %v8904_v4  ;;  %v8972_v53 = vld [vmem:[#allocation122_spill] sm:$0xff] }
 0x407   : > { %v3057_v20 = vpop.f32.mrf.mxu0 }
 0x408   : > { %v3370_v41 = vpop.f32.mrf.mxu1  ;;  %v3058_v30 = vadd.f32 %v3057_v20, %v7286_v6 }
 0x409   : > { %v3492_v33 = vpop.f32.mrf.mxu2  ;;  %v3661_v37 = vpop.f32.mrf.mxu3 }
 0x40a   : > { %v3493_v55 = vadd.f32 %v3492_v33, %v7505_v21  ;;  %v7659_v61 = vadd.f32 %v3370_v41, %v3058_v30  ;;  %v8974_v21 = vld [vmem:[#allocation115_spill] sm:$0xff]  ;;  %v8976_v30 = vld [vmem:[#allocation76_spill] sm:$0xff] }
 0x40c   : > { %v7661_v62 = vadd.f32 %v3661_v37, %v3493_v55 }
 0x40e   : > { %8971 = vst [vmem:[#allocation56_spill] sm:$0xff] %v7661_v62 }
 0x40f   : > { %v3060_v23 = vpop.f32.mrf.mxu0 }
 0x410   : > { %v3373_v59 = vpop.f32.mrf.mxu1  ;;  %v3061_v9 = vadd.f32 %v3060_v23, %v8972_v53 }
 0x411   : > { %v3494_v4 = vpop.f32.mrf.mxu2  ;;  %v3663_v31 = vpop.f32.mrf.mxu3 }
 0x412   : > { %v3495_v6 = vadd.f32 %v3494_v4, %v7515_v7  ;;  %v7665_v20 = vadd.f32 %v3373_v59, %v3061_v9  ;;  %3099 = vmatmul.bf16.gmra.mxu0 %v8973_v36 }
 0x413   : > { %3412 = vmatmul.bf16.gmra.mxu1 %v8974_v21 }
 0x414   : > { %v7669_v41 = vadd.f32 %v3663_v31, %v3495_v6  ;;  %v8978_v31 = vld [vmem:[#allocation126_spill] sm:$0xff] }
 0x416   : > { %8975 = vst [vmem:[#allocation110_spill] sm:$0xff] %v7669_v41  ;;  %3536 = vmatmul.bf16.gmra.mxu2 %v8976_v30  ;;  %3705 = vmatmul.bf16.gmra.mxu3 %v8910_v14 }
 0x417   : > { %v3062_v33 = vpop.f32.mrf.mxu0 }
 0x418   : > { %v3375_v37 = vpop.f32.mrf.mxu1  ;;  %v3063_v53 = vadd.f32 %v3062_v33, %v7310_v17  ;;  %v8979_v17 = vld [vmem:[#allocation125_spill] sm:$0xff]  ;;  %v8980_v33 = vld [vmem:[#allocation119_spill] sm:$0xff] }
 0x419   : > { %v3497_v55 = vpop.f32.mrf.mxu2  ;;  %v3666_v44 = vpop.f32.mrf.mxu3 }
 0x41a   : > { %v3498_v4 = vadd.f32 %v3497_v55, %v7521_v19  ;;  %v7675_v7 = vadd.f32 %v3375_v37, %v3063_v53  ;;  %v8982_v37 = vld [vmem:[#allocation81_spill] sm:$0xff] }
 0x41c   : > { %v7677_v9 = vadd.f32 %v3666_v44, %v3498_v4 }
 0x41e   : > { %8977 = vst [vmem:[#allocation114_spill] sm:$0xff] %v7677_v9 }
 0x41f   : > { %v3065_v23 = vpop.f32.mrf.mxu0 }
 0x420   : > { %v3378_v59 = vpop.f32.mrf.mxu1  ;;  %v3066_v6 = vadd.f32 %v3065_v23, %v8978_v31  ;;  %v5986_v23 = vld [vmem:[#allocation7 + $0x188] sm:$0xff] }
 0x421   : > { %v3499_v41 = vpop.f32.mrf.mxu2  ;;  %v3668_v62 = vpop.f32.mrf.mxu3  ;;  %3977 = vmatpush.bf16.msra.mxu0 %v5986_v23 }
 0x422   : > { %v3500_v14 = vadd.f32 %v3499_v41, %v7531_v50  ;;  %v7681_v21 = vadd.f32 %v3378_v59, %v3066_v6  ;;  %3104 = vmatmul.bf16.gmra.mxu0 %v8979_v17  ;;  %v5994_v59 = vld [vmem:[#allocation7 + $0x1c8] sm:$0xff] }
 0x423   : > { %3417 = vmatmul.bf16.gmra.mxu1 %v8980_v33 }
 0x424   : > { %v7685_v19 = vadd.f32 %v3668_v62, %v3500_v14  ;;  %4146 = vmatpush.bf16.msra.mxu1 %v5994_v59  ;;  %v5985_v14 = vld [vmem:[#allocation7 + $0x180] sm:$0xff] }
 0x425   : > { %v5993_v62 = vld [vmem:[#allocation7 + $0x1c0] sm:$0xff]  ;;  %3978 = vmatpush.bf16.msra.mxu0 %v5985_v14 }
 0x426   : > { %8981 = vst [vmem:[#allocation107_spill] sm:$0xff] %v7685_v19  ;;  %3541 = vmatmul.bf16.gmra.mxu2 %v8982_v37  ;;  %3710 = vmatmul.bf16.gmra.mxu3 %v8917_v8 }
 0x427   : > { %v3067_v53 = vpop.f32.mrf.mxu0 }
 0x428   : > { %v3380_v55 = vpop.f32.mrf.mxu1  ;;  %v3068_v44 = vadd.f32 %v3067_v53, %v7334_v60  ;;  %4147 = vmatpush.bf16.msra.mxu1 %v5993_v62 }
 0x429   : > { %v3502_v4 = vpop.f32.mrf.mxu2  ;;  %v3671_v58 = vpop.f32.mrf.mxu3 }
 0x42a   : > { %v3503_v50 = vadd.f32 %v3502_v4, %v7537_v16  ;;  %v7691_v41 = vadd.f32 %v3380_v55, %v3068_v44  ;;  %v8984_v55 = vld [vmem:[#allocation129_spill] sm:$0xff]  ;;  %v8985_v44 = vld [vmem:[#allocation123_spill] sm:$0xff] }
 0x42c   : > { %v7693_v31 = vadd.f32 %v3671_v58, %v3503_v50  ;;  %v8987_v58 = vld [vmem:[#allocation86_spill] sm:$0xff] }
 0x42e   : > { %8983 = vst [vmem:[#allocation66_spill] sm:$0xff] %v7693_v31 }
 0x42f   : > { %v3070_v6 = vpop.f32.mrf.mxu0 }
 0x430   : > { %v3383_v19 = vpop.f32.mrf.mxu1  ;;  %v3071_v9 = vadd.f32 %v3070_v6, %v7350_v38 }
 0x431   : > { %v3504_v8 = vpop.f32.mrf.mxu2  ;;  %v3673_v60 = vpop.f32.mrf.mxu3 }
 0x432   : > { %v3505_v16 = vadd.f32 %v3504_v8, %v7547_v32  ;;  %v7697_v53 = vadd.f32 %v3383_v19, %v3071_v9  ;;  %3109 = vmatmul.bf16.gmra.mxu0 %v8984_v55 }
 0x433   : > { %3422 = vmatmul.bf16.gmra.mxu1 %v8985_v44 }
 0x434   : > { %v7701_v4 = vadd.f32 %v3673_v60, %v3505_v16 }
 0x436   : > { %8986 = vst [vmem:[#allocation118_spill] sm:$0xff] %v7701_v4  ;;  %3546 = vmatmul.bf16.gmra.mxu2 %v8987_v58  ;;  %3715 = vmatmul.bf16.gmra.mxu3 %v8924_v54 }
 0x437   : > { %v3072_v50 = vpop.f32.mrf.mxu0 }
 0x438   : > { %v3385_v38 = vpop.f32.mrf.mxu1  ;;  %v3073_v23 = vadd.f32 %v3072_v50, %v7357_v28  ;;  %v8989_v28 = vld [vmem:[#allocation127_spill] sm:$0xff] }
 0x439   : > { %v3507_v59 = vpop.f32.mrf.mxu2  ;;  %v3676_v14 = vpop.f32.mrf.mxu3 }
 0x43a   : > { %v3508_v8 = vadd.f32 %v3507_v59, %v7553_v1  ;;  %v7707_v32 = vadd.f32 %v3385_v38, %v3073_v23  ;;  %v8991_v1 = vld [vmem:[#allocation91_spill] sm:$0xff]  ;;  %v6002_v38 = vld [vmem:[#allocation7 + $0x208] sm:$0xff] }
 0x43b   : > { %4315 = vmatpush.bf16.msra.mxu2 %v6002_v38  ;;  %v8992_v38 = vld [vmem:[#allocation16_spill] sm:$0xff] }
 0x43c   : > { %v7709_v9 = vadd.f32 %v3676_v14, %v3508_v8 }
 0x43e   : > { %8988 = vst [vmem:[#allocation117_spill] sm:$0xff] %v7709_v9 }
 0x43f   : > { %v3075_v19 = vpop.f32.mrf.mxu0 }
 0x440   : > { %v3388_v62 = vpop.f32.mrf.mxu1  ;;  %v3076_v6 = vadd.f32 %v3075_v19, %v7372_v27 }
 0x441   : > { %v3509_v60 = vpop.f32.mrf.mxu2  ;;  %v3678_v16 = vpop.f32.mrf.mxu3 }
 0x442   : > { %v3510_v4 = vadd.f32 %v3509_v60, %v7563_v39  ;;  %v7713_v31 = vadd.f32 %v3388_v62, %v3076_v6  ;;  %3114 = vmatmul.bf16.gmra.mxu0 %v7367_v46 }
 0x443   : > { %3427 = vmatmul.bf16.gmra.mxu1 %v8989_v28 }
 0x444   : > { %v7717_v50 = vadd.f32 %v3678_v16, %v3510_v4 }
 0x446   : > { %8990 = vst [vmem:[#allocation71_spill] sm:$0xff] %v7717_v50  ;;  %3551 = vmatmul.bf16.gmra.mxu2 %v8991_v1  ;;  %3720 = vmatmul.bf16.gmra.mxu3 %v8931_v0 }
 0x447   : > { %v3077_v23 = vpop.f32.mrf.mxu0 }
 0x448   : > { %v3390_v59 = vpop.f32.mrf.mxu1  ;;  %v3078_v27 = vadd.f32 %v3077_v23, %v7377_v12 }
 0x449   : > { %v3512_v14 = vpop.f32.mrf.mxu2  ;;  %v3681_v39 = vpop.f32.mrf.mxu3 }
 0x44a   : > { %v3513_v8 = vadd.f32 %v3512_v14, %v7569_v11  ;;  %v7723_v19 = vadd.f32 %v3390_v59, %v3078_v27  ;;  %v8994_v11 = vld [vmem:[#allocation95_spill] sm:$0xff] }
 0x44c   : > { %v7725_v62 = vadd.f32 %v3681_v39, %v3513_v8 }
 0x44f   : > { %v3080_v4 = vpop.f32.mrf.mxu0 }
 0x450   : > { %v3393_v6 = vpop.f32.mrf.mxu1  ;;  %v3081_v60 = vadd.f32 %v3080_v4, %v7386_v49  ;;  %v6012_v4 = vld [vmem:[#allocation8 + $0x18] sm:$0xff] }
 0x451   : > { %v3514_v16 = vpop.f32.mrf.mxu2  ;;  %v3683_v46 = vpop.f32.mrf.mxu3  ;;  %4778 = vmatpush.bf16.msra.mxu3 %v6012_v4 }
 0x452   : > { %v3515_v50 = vadd.f32 %v3514_v16, %v7579_v29  ;;  %v7729_v9 = vadd.f32 %v3393_v6, %v3081_v60  ;;  %3979 = vmatmul.bf16.vlgmr.msra.gmra.mxu0 %v8992_v38 }
 0x453   : > { %4148 = vmatmul.bf16.vlgmr.msra.gmra.mxu1 %v6632_v43 }
 0x454   : > { %v7733_v12 = vadd.f32 %v3683_v46, %v3515_v50 }
 0x456   : > { %8993 = vst [vmem:[#allocation122_spill] sm:$0xff] %v7733_v12  ;;  %3556 = vmatmul.bf16.gmra.mxu2 %v8994_v11  ;;  %3725 = vmatmul.bf16.gmra.mxu3 %v8937_v63  ;;  %v9003_v12 = vld [vmem:[#allocation21_spill] sm:$0xff] }
 0x457   : > { %v3082_v23 = vpop.f32.mrf.mxu0 }
 0x458   : > { %v3395_v59 = vpop.f32.mrf.mxu1  ;;  %v3083_v49 = vadd.f32 %v3082_v23, %v7391_v25  ;;  %v8996_v25 = vld [vmem:[#allocation18_spill] sm:$0xff]  ;;  %v8997_v23 = vld [vmem:[#allocation19_spill] sm:$0xff] }
 0x459   : > { %v3517_v27 = vpop.f32.mrf.mxu2  ;;  %v3686_v14 = vpop.f32.mrf.mxu3 }
 0x45a   : > { %v3518_v29 = vadd.f32 %v3517_v27, %v7585_v34  ;;  %v7739_v39 = vadd.f32 %v3395_v59, %v3083_v49  ;;  %v8999_v59 = vld [vmem:[#allocation100_spill] sm:$0xff] }
 0x45c   : > { %v7741_v8 = vadd.f32 %v3686_v14, %v3518_v29  ;;  %v9000_v14 = vld [vmem:[#allocation133_spill] sm:$0xff] }
 0x45e   : > { %8995 = vst [vmem:[#allocation76_spill] sm:$0xff] %v7741_v8 }
 0x45f   : > { %v3085_v43 = vpop.f32.mrf.mxu0 }
 0x460   : > { %v3398_v46 = vpop.f32.mrf.mxu1  ;;  %v3086_v50 = vadd.f32 %v3085_v43, %v7400_v42 }
 0x461   : > { %v3519_v6 = vpop.f32.mrf.mxu2  ;;  %v3688_v60 = vpop.f32.mrf.mxu3 }
 0x462   : > { %v3520_v16 = vadd.f32 %v3519_v6, %v7595_v13  ;;  %v7745_v38 = vadd.f32 %v3398_v46, %v3086_v50  ;;  %3984 = vmatmul.bf16.gmra.mxu0 %v8996_v25 }
 0x463   : > { %4153 = vmatmul.bf16.gmra.mxu1 %v8997_v23 }
 0x464   : > { %v7749_v34 = vadd.f32 %v3688_v60, %v3520_v16  ;;  %v9002_v60 = vld [vmem:[#allocation134_spill] sm:$0xff] }
 0x466   : > { %8998 = vst [vmem:[#allocation126_spill] sm:$0xff] %v7749_v34  ;;  %3561 = vmatmul.bf16.gmra.mxu2 %v8999_v59  ;;  %3730 = vmatmul.bf16.gmra.mxu3 %v8944_v10 }
 0x467   : > { %v3087_v49 = vpop.f32.mrf.mxu0 }
 0x468   : > { %v3400_v27 = vpop.f32.mrf.mxu1  ;;  %v3088_v42 = vadd.f32 %v3087_v49, %v9000_v14  ;;  %v9004_v49 = vld [vmem:[#allocation22_spill] sm:$0xff] }
 0x469   : > { %v3522_v29 = vpop.f32.mrf.mxu2  ;;  %v3691_v4 = vpop.f32.mrf.mxu3 }
 0x46a   : > { %v3523_v13 = vadd.f32 %v3522_v29, %v7601_v5  ;;  %v7755_v43 = vadd.f32 %v3400_v27, %v3088_v42  ;;  %v9006_v5 = vld [vmem:[#allocation104_spill] sm:$0xff]  ;;  %v9007_v29 = vld [vmem:[#allocation135_spill] sm:$0xff] }
 0x46c   : > { %v7757_v46 = vadd.f32 %v3691_v4, %v3523_v13 }
 0x46e   : > { %9001 = vst [vmem:[#allocation125_spill] sm:$0xff] %v7757_v46 }
 0x46f   : > { %v3090_v50 = vpop.f32.mrf.mxu0 }
 0x470   : > { %v3403_v6 = vpop.f32.mrf.mxu1  ;;  %v3091_v16 = vadd.f32 %v3090_v50, %v9002_v60 }
 0x471   : > { %v3524_v25 = vpop.f32.mrf.mxu2  ;;  %v3693_v23 = vpop.f32.mrf.mxu3 }
 0x472   : > { %v3525_v34 = vadd.f32 %v3524_v25, %v7611_v15  ;;  %v7761_v8 = vadd.f32 %v3403_v6, %v3091_v16  ;;  %3989 = vmatmul.bf16.gmra.mxu0 %v9003_v12 }
 0x473   : > { %4158 = vmatmul.bf16.gmra.mxu1 %v9004_v49 }
 0x474   : > { %v7765_v14 = vadd.f32 %v3693_v23, %v3525_v34  ;;  %v9009_v34 = vld [vmem:[#allocation136_spill] sm:$0xff] }
 0x476   : > { %9005 = vst [vmem:[#allocation119_spill] sm:$0xff] %v7765_v14  ;;  %3566 = vmatmul.bf16.gmra.mxu2 %v9006_v5  ;;  %3735 = vmatmul.bf16.gmra.mxu3 %v8950_v26  ;;  %v9010_v26 = vld [vmem:[#allocation24_spill] sm:$0xff] }
 0x477   : > { %v3092_v27 = vpop.f32.mrf.mxu0 }
 0x478   : > { %v3405_v42 = vpop.f32.mrf.mxu1  ;;  %v3093_v4 = vadd.f32 %v3092_v27, %v9007_v29  ;;  %v9011_v27 = vld [vmem:[#allocation25_spill] sm:$0xff] }
 0x479   : > { %v3527_v13 = vpop.f32.mrf.mxu2  ;;  %v3696_v50 = vpop.f32.mrf.mxu3 }
 0x47a   : > { %v3528_v15 = vadd.f32 %v3527_v13, %v7617_v24  ;;  %v7771_v6 = vadd.f32 %v3405_v42, %v3093_v4  ;;  %v9013_v24 = vld [vmem:[#allocation108_spill] sm:$0xff] }
 0x47b   : > { %v6001_v42 = vld [vmem:[#allocation7 + $0x200] sm:$0xff] }
 0x47c   : > { %v7773_v60 = vadd.f32 %v3696_v50, %v3528_v15  ;;  %4316 = vmatpush.bf16.msra.mxu2 %v6001_v42  ;;  %v9014_v50 = vld [vmem:[#allocation137_spill] sm:$0xff]  ;;  %v9017_v42 = vld [vmem:[#allocation27_spill] sm:$0xff] }
 0x47e   : > { %9008 = vst [vmem:[#allocation81_spill] sm:$0xff] %v7773_v60 }
 0x47f   : > { %v3095_v12 = vpop.f32.mrf.mxu0 }
 0x480   : > { %v3408_v16 = vpop.f32.mrf.mxu1  ;;  %v3096_v25 = vadd.f32 %v3095_v12, %v9009_v34 }
 0x481   : > { %v3529_v23 = vpop.f32.mrf.mxu2  ;;  %v3698_v49 = vpop.f32.mrf.mxu3 }
 0x482   : > { %v3530_v14 = vadd.f32 %v3529_v23, %v7627_v2  ;;  %v7777_v46 = vadd.f32 %v3408_v16, %v3096_v25  ;;  %3994 = vmatmul.bf16.gmra.mxu0 %v9010_v26  ;;  %v9016_v23 = vld [vmem:[#allocation54_spill] sm:$0xff] }
 0x483   : > { %4163 = vmatmul.bf16.gmra.mxu1 %v9011_v27 }
 0x484   : > { %v7781_v29 = vadd.f32 %v3698_v49, %v3530_v14 }
 0x486   : > { %9012 = vst [vmem:[#allocation129_spill] sm:$0xff] %v7781_v29  ;;  %3571 = vmatmul.bf16.gmra.mxu2 %v9013_v24  ;;  %3740 = vmatmul.bf16.gmra.mxu3 %v8956_v57 }
 0x487   : > { %v3097_v4 = vpop.f32.mrf.mxu0 }
 0x488   : > { %v3410_v13 = vpop.f32.mrf.mxu1  ;;  %v3098_v15 = vadd.f32 %v3097_v4, %v9014_v50  ;;  %v9018_v4 = vld [vmem:[#allocation28_spill] sm:$0xff] }
 0x489   : > { %v3532_v12 = vpop.f32.mrf.mxu2  ;;  %v3701_v2 = vpop.f32.mrf.mxu3 }
 0x48a   : > { %v3533_v16 = vadd.f32 %v3532_v12, %v7633_v52  ;;  %v7787_v34 = vadd.f32 %v3410_v13, %v3098_v15  ;;  %v9020_v52 = vld [vmem:[#allocation112_spill] sm:$0xff]  ;;  %v9021_v12 = vld [vmem:[#allocation58_spill] sm:$0xff] }
 0x48c   : > { %v7789_v26 = vadd.f32 %v3701_v2, %v3533_v16 }
 0x48e   : > { %9015 = vst [vmem:[#allocation123_spill] sm:$0xff] %v7789_v26 }
 0x48f   : > { %v3100_v14 = vpop.f32.mrf.mxu0 }
 0x490   : > { %v3413_v25 = vpop.f32.mrf.mxu1  ;;  %v3101_v49 = vadd.f32 %v3100_v14, %v9016_v23 }
 0x491   : > { %v3534_v27 = vpop.f32.mrf.mxu2  ;;  %v3703_v29 = vpop.f32.mrf.mxu3 }
 0x492   : > { %v3535_v60 = vadd.f32 %v3534_v27, %v7643_v56  ;;  %v7793_v57 = vadd.f32 %v3413_v25, %v3101_v49  ;;  %3999 = vmatmul.bf16.gmra.mxu0 %v9017_v42  ;;  %v6011_v49 = vld [vmem:[#allocation8 + $0x10] sm:$0xff]  ;;  %v9023_v27 = vld [vmem:[#allocation59_spill] sm:$0xff] }
 0x493   : > { %4168 = vmatmul.bf16.gmra.mxu1 %v9018_v4  ;;  %4779 = vmatpush.bf16.msra.mxu3 %v6011_v49 }
 0x494   : > { %v7797_v50 = vadd.f32 %v3703_v29, %v3535_v60 }
 0x496   : > { %9019 = vst [vmem:[#allocation86_spill] sm:$0xff] %v7797_v50  ;;  %3576 = vmatmul.bf16.gmra.mxu2 %v9020_v52  ;;  %3745 = vmatmul.bf16.gmra.mxu3 %v8961_v45 }
 0x497   : > { %v3102_v13 = vpop.f32.mrf.mxu0 }
 0x498   : > { %v3415_v15 = vpop.f32.mrf.mxu1  ;;  %v3103_v2 = vadd.f32 %v3102_v13, %v9021_v12  ;;  %v9024_v13 = vld [vmem:[#allocation30_spill] sm:$0xff]  ;;  %v9025_v12 = vld [vmem:[#allocation31_spill] sm:$0xff] }
 0x499   : > { %v3537_v16 = vpop.f32.mrf.mxu2  ;;  %v3706_v14 = vpop.f32.mrf.mxu3 }
 0x49a   : > { %v3538_v56 = vadd.f32 %v3537_v16, %v7649_v40  ;;  %v7803_v25 = vadd.f32 %v3415_v15, %v3103_v2  ;;  %v9027_v15 = vld [vmem:[#allocation116_spill] sm:$0xff] }
 0x49c   : > { %v7805_v23 = vadd.f32 %v3706_v14, %v3538_v56  ;;  %v9028_v14 = vld [vmem:[#allocation63_spill] sm:$0xff] }
 0x49e   : > { %9022 = vst [vmem:[#allocation127_spill] sm:$0xff] %v7805_v23 }
 0x49f   : > { %v3105_v60 = vpop.f32.mrf.mxu0 }
 0x4a0   : > { %v3418_v29 = vpop.f32.mrf.mxu1  ;;  %v3106_v42 = vadd.f32 %v3105_v60, %v9023_v27 }
 0x4a1   : > { %v3539_v4 = vpop.f32.mrf.mxu2  ;;  %v3708_v50 = vpop.f32.mrf.mxu3 }
 0x4a2   : > { %v3540_v26 = vadd.f32 %v3539_v4, %v7659_v61  ;;  %v7809_v45 = vadd.f32 %v3418_v29, %v3106_v42  ;;  %4004 = vmatmul.bf16.gmra.mxu0 %v9024_v13 }
 0x4a3   : > { %4173 = vmatmul.bf16.gmra.mxu1 %v9025_v12 }
 0x4a4   : > { %v7813_v40 = vadd.f32 %v3708_v50, %v3540_v26  ;;  %v9030_v26 = vld [vmem:[#allocation64_spill] sm:$0xff] }
 0x4a6   : > { %9026 = vst [vmem:[#allocation91_spill] sm:$0xff] %v7813_v40  ;;  %3581 = vmatmul.bf16.gmra.mxu2 %v9027_v15  ;;  %3750 = vmatmul.bf16.gmra.mxu3 %v8967_v22 }
 0x4a7   : > { %v3107_v2 = vpop.f32.mrf.mxu0 }
 0x4a8   : > { %v3420_v16 = vpop.f32.mrf.mxu1  ;;  %v3108_v56 = vadd.f32 %v3107_v2, %v9028_v14  ;;  %v9033_v2 = vld [vmem:[#allocation33_spill] sm:$0xff]  ;;  %v9034_v14 = vld [vmem:[#allocation34_spill] sm:$0xff] }
 0x4a9   : > { %v3542_v49 = vpop.f32.mrf.mxu2  ;;  %v3711_v60 = vpop.f32.mrf.mxu3 }
 0x4aa   : > { %v3543_v61 = vadd.f32 %v3542_v49, %v7665_v20  ;;  %v7819_v29 = vadd.f32 %v3420_v16, %v3108_v56  ;;  %v9035_v20 = vld [vmem:[#allocation120_spill] sm:$0xff] }
 0x4ab   : > { %v9036_v49 = vld [vmem:[#allocation68_spill] sm:$0xff] }
 0x4ac   : > { %v7821_v27 = vadd.f32 %v3711_v60, %v3543_v61 }
 0x4ae   : > { %9029 = vst [vmem:[#allocation16_spill] sm:$0xff] %v7821_v27 }
 0x4af   : > { %v3110_v42 = vpop.f32.mrf.mxu0 }
 0x4b0   : > { %v3423_v4 = vpop.f32.mrf.mxu1  ;;  %v3111_v50 = vadd.f32 %v3110_v42, %v9030_v26 }
 0x4b1   : > { %v3544_v13 = vpop.f32.mrf.mxu2  ;;  %v7824_v12 = vpop.f32.mrf.mxu3 }
 0x4b2   : > { %9031 = vst [vmem:[#allocation95_spill] sm:$0xff] %v7824_v12  ;;  %v7827_v40 = vadd.f32 %v3544_v13, %v7675_v7  ;;  %v7829_v23 = vadd.f32 %v3423_v4, %v3111_v50  ;;  %4009 = vmatmul.bf16.gmra.mxu0 %v9033_v2  ;;  %v9038_v2 = vld [vmem:[#allocation67_spill] sm:$0xff] }
 0x4b3   : > { %4178 = vmatmul.bf16.gmra.mxu1 %v9034_v14 }
 0x4b4   : > { %9032 = vst [vmem:[#allocation18_spill] sm:$0xff] %v7827_v40 }
 0x4b6   : > { %3586 = vmatmul.bf16.gmra.mxu2 %v9035_v20  ;;  %3755 = vmatmul.bf16.gmra.mxu3 %v8973_v36 }
 0x4b7   : > { %v3112_v16 = vpop.f32.mrf.mxu0 }
 0x4b8   : > { %v3425_v56 = vpop.f32.mrf.mxu1  ;;  %v3113_v60 = vadd.f32 %v3112_v16, %v9036_v49  ;;  %v9041_v16 = vld [vmem:[#allocation36_spill] sm:$0xff]  ;;  %v9042_v49 = vld [vmem:[#allocation37_spill] sm:$0xff] }
 0x4b9   : > { %v3547_v61 = vpop.f32.mrf.mxu2  ;;  %v3716_v42 = vpop.f32.mrf.mxu3 }
 0x4ba   : > { %v3548_v26 = vadd.f32 %v3547_v61, %v7681_v21  ;;  %v7837_v7 = vadd.f32 %v3425_v56, %v3113_v60  ;;  %v9043_v21 = vld [vmem:[#allocation124_spill] sm:$0xff]  ;;  %v9044_v61 = vld [vmem:[#allocation69_spill] sm:$0xff] }
 0x4bc   : > { %v7839_v4 = vadd.f32 %v3716_v42, %v3548_v26 }
 0x4be   : > { %9037 = vst [vmem:[#allocation19_spill] sm:$0xff] %v7839_v4  ;;  %v9048_v4 = vld [vmem:[#allocation39_spill] sm:$0xff] }
 0x4bf   : > { %v3115_v50 = vpop.f32.mrf.mxu0 }
 0x4c0   : > { %v3428_v13 = vpop.f32.mrf.mxu1  ;;  %v3116_v14 = vadd.f32 %v3115_v50, %v9038_v2 }
 0x4c1   : > { %v3549_v12 = vpop.f32.mrf.mxu2  ;;  %v7842_v40 = vpop.f32.mrf.mxu3 }
 0x4c2   : > { %9039 = vst [vmem:[#allocation100_spill] sm:$0xff] %v7842_v40  ;;  %v7845_v27 = vadd.f32 %v3549_v12, %v7691_v41  ;;  %v7847_v36 = vadd.f32 %v3428_v13, %v3116_v14  ;;  %4014 = vmatmul.bf16.gmra.mxu0 %v9041_v16 }
 0x4c3   : > { %4183 = vmatmul.bf16.gmra.mxu1 %v9042_v49 }
 0x4c4   : > { %9040 = vst [vmem:[#allocation133_spill] sm:$0xff] %v7845_v27 }
 0x4c6   : > { %3591 = vmatmul.bf16.gmra.mxu2 %v9043_v21  ;;  %3760 = vmatmul.bf16.gmra.mxu3 %v8979_v17 }
 0x4c7   : > { %v3117_v56 = vpop.f32.mrf.mxu0 }
 0x4c8   : > { %v3430_v60 = vpop.f32.mrf.mxu1  ;;  %v3118_v42 = vadd.f32 %v3117_v56, %v9044_v61  ;;  %v9049_v56 = vld [vmem:[#allocation40_spill] sm:$0xff] }
 0x4c9   : > { %v3552_v26 = vpop.f32.mrf.mxu2  ;;  %v3721_v50 = vpop.f32.mrf.mxu3  ;;  %v9050_v61 = vld [vmem:[#allocation128_spill] sm:$0xff] }
 0x4ca   : > { %v3553_v2 = vadd.f32 %v3552_v26, %v7697_v53  ;;  %v7855_v41 = vadd.f32 %v3430_v60, %v3118_v42 }
 0x4cc   : > { %v7857_v12 = vadd.f32 %v3721_v50, %v3553_v2 }
 0x4ce   : > { %9045 = vst [vmem:[#allocation134_spill] sm:$0xff] %v7857_v12  ;;  %v9055_v12 = vld [vmem:[#allocation17_spill] sm:$0xff] }
 0x4cf   : > { %v3980_v13 = vpop.f32.mrf.mxu0 }
 0x4d0   : > { %v4149_v14 = vpop.f32.mrf.mxu1 }
 0x4d1   : > { %v7859_v16 = vadd.f32 %v4149_v14, %v3980_v13  ;;  %v3554_v49 = vpop.f32.mrf.mxu2  ;;  %v7861_v40 = vpop.f32.mrf.mxu3 }
 0x4d2   : > { %9046 = vst [vmem:[#allocation21_spill] sm:$0xff] %v7861_v40  ;;  %v7864_v27 = vadd.f32 %v3554_v49, %v7707_v32  ;;  %4019 = vmatmul.bf16.gmra.mxu0 %v9048_v4  ;;  %v6010_v32 = vld [vmem:[#allocation8 + $0x8] sm:$0xff] }
 0x4d3   : > { %4188 = vmatmul.bf16.gmra.mxu1 %v9049_v56  ;;  %4780 = vmatpush.bf16.msra.mxu3 %v6010_v32 }
 0x4d4   : > { %9047 = vst [vmem:[#allocation22_spill] sm:$0xff] %v7864_v27 }
 0x4d6   : > { %3596 = vmatmul.bf16.gmra.mxu2 %v9050_v61  ;;  %3765 = vmatmul.bf16.gmra.mxu3 %v8984_v55 }
 0x4d7   : > { %v3982_v53 = vpop.f32.mrf.mxu0 }
 0x4d8   : > { %v4151_v60 = vpop.f32.mrf.mxu1 }
 0x4d9   : > { %v7870_v42 = vadd.f32 %v4151_v60, %v3982_v53  ;;  %v3557_v26 = vpop.f32.mrf.mxu2  ;;  %v3726_v50 = vpop.f32.mrf.mxu3  ;;  %v9053_v53 = vld [vmem:[#allocation42_spill] sm:$0xff]  ;;  %v9054_v60 = vld [vmem:[#allocation43_spill] sm:$0xff] }
 0x4da   : > { %v3558_v2 = vadd.f32 %v3557_v26, %v7713_v31 }
 0x4dc   : > { %v7873_v13 = vadd.f32 %v3726_v50, %v3558_v2 }
 0x4de   : > { %9051 = vst [vmem:[#allocation104_spill] sm:$0xff] %v7873_v13 }
 0x4df   : > { %v3985_v14 = vpop.f32.mrf.mxu0 }
 0x4e0   : > { %v4154_v4 = vpop.f32.mrf.mxu1 }
 0x4e1   : > { %v7875_v49 = vadd.f32 %v4154_v4, %v3985_v14  ;;  %v3559_v56 = vpop.f32.mrf.mxu2  ;;  %v7877_v40 = vpop.f32.mrf.mxu3 }
 0x4e2   : > { %9052 = vst [vmem:[#allocation135_spill] sm:$0xff] %v7877_v40  ;;  %v7880_v27 = vadd.f32 %v3559_v56, %v7723_v19  ;;  %4024 = vmatmul.bf16.gmra.mxu0 %v9053_v53 }
 0x4e3   : > { %4193 = vmatmul.bf16.gmra.mxu1 %v9054_v60 }
 0x4e6   : > { %4317 = vmatmul.bf16.vlgmr.msra.gmra.mxu2 %v9055_v12  ;;  %v9059_v12 = vld [vmem:[#allocation45_spill] sm:$0xff] }
 0x4e7   : > { %v3987_v31 = vpop.f32.mrf.mxu0 }
 0x4e8   : > { %v4156_v26 = vpop.f32.mrf.mxu1 }
 0x4e9   : > { %v7885_v50 = vadd.f32 %v4156_v26, %v3987_v31  ;;  %v3562_v2 = vpop.f32.mrf.mxu2  ;;  %v3731_v32 = vpop.f32.mrf.mxu3  ;;  %v9060_v31 = vld [vmem:[#allocation20_spill] sm:$0xff] }
 0x4ea   : > { %v3563_v14 = vadd.f32 %v3562_v2, %v7729_v9 }
 0x4ec   : > { %v7888_v4 = vadd.f32 %v3731_v32, %v3563_v14 }
 0x4ee   : > { %9056 = vst [vmem:[#allocation136_spill] sm:$0xff] %v7888_v4 }
 0x4ef   : > { %v3990_v40 = vpop.f32.mrf.mxu0 }
 0x4f0   : > { %v4159_v13 = vpop.f32.mrf.mxu1 }
 0x4f1   : > { %v7890_v19 = vadd.f32 %v4159_v13, %v3990_v40  ;;  %v3564_v56 = vpop.f32.mrf.mxu2  ;;  %v7892_v53 = vpop.f32.mrf.mxu3 }
 0x4f2   : > { %9057 = vst [vmem:[#allocation24_spill] sm:$0xff] %v7892_v53  ;;  %v7895_v60 = vadd.f32 %v3564_v56, %v7739_v39  ;;  %4029 = vmatmul.bf16.gmra.mxu0 %v9059_v12 }
 0x4f3   : > { %4198 = vmatmul.bf16.gmra.mxu1 %v8934_v3 }
 0x4f4   : > { %9058 = vst [vmem:[#allocation25_spill] sm:$0xff] %v7895_v60 }
 0x4f6   : > { %4322 = vmatmul.bf16.gmra.mxu2 %v9060_v31  ;;  %v9064_v31 = vld [vmem:[#allocation48_spill] sm:$0xff] }
 0x4f7   : > { %v3992_v26 = vpop.f32.mrf.mxu0 }
 0x4f8   : > { %v4161_v9 = vpop.f32.mrf.mxu1 }
 0x4f9   : > { %v7900_v2 = vadd.f32 %v4161_v9, %v3992_v26  ;;  %v3567_v32 = vpop.f32.mrf.mxu2  ;;  %v3736_v14 = vpop.f32.mrf.mxu3  ;;  %v9065_v26 = vld [vmem:[#allocation49_spill] sm:$0xff]  ;;  %v9066_v9 = vld [vmem:[#allocation23_spill] sm:$0xff] }
 0x4fa   : > { %v3568_v40 = vadd.f32 %v3567_v32, %v7745_v38 }
 0x4fc   : > { %v7903_v13 = vadd.f32 %v3736_v14, %v3568_v40 }
 0x4fe   : > { %9061 = vst [vmem:[#allocation108_spill] sm:$0xff] %v7903_v13 }
 0x4ff   : > { %v3995_v53 = vpop.f32.mrf.mxu0 }
 0x500   : > { %v4164_v4 = vpop.f32.mrf.mxu1 }
 0x501   : > { %v7905_v39 = vadd.f32 %v4164_v4, %v3995_v53  ;;  %v3569_v56 = vpop.f32.mrf.mxu2  ;;  %v7907_v12 = vpop.f32.mrf.mxu3 }
 0x502   : > { %9062 = vst [vmem:[#allocation137_spill] sm:$0xff] %v7907_v12  ;;  %v7910_v3 = vadd.f32 %v3569_v56, %v7755_v43  ;;  %4034 = vmatmul.bf16.gmra.mxu0 %v9064_v31 }
 0x503   : > { %4203 = vmatmul.bf16.gmra.mxu1 %v9065_v26 }
 0x504   : > { %9063 = vst [vmem:[#allocation54_spill] sm:$0xff] %v7910_v3 }
 0x506   : > { %4327 = vmatmul.bf16.gmra.mxu2 %v9066_v9  ;;  %v9070_v9 = vld [vmem:[#allocation51_spill] sm:$0xff] }
 0x507   : > { %v3997_v60 = vpop.f32.mrf.mxu0 }
 0x508   : > { %v4166_v38 = vpop.f32.mrf.mxu1 }
 0x509   : > { %v7915_v32 = vadd.f32 %v4166_v38, %v3997_v60  ;;  %v3572_v14 = vpop.f32.mrf.mxu2  ;;  %v3741_v40 = vpop.f32.mrf.mxu3  ;;  %v9071_v60 = vld [vmem:[#allocation26_spill] sm:$0xff] }
 0x50a   : > { %v3573_v4 = vadd.f32 %v3572_v14, %v7761_v8 }
 0x50c   : > { %v7918_v53 = vadd.f32 %v3741_v40, %v3573_v4 }
 0x50e   : > { %9067 = vst [vmem:[#allocation27_spill] sm:$0xff] %v7918_v53 }
 0x50f   : > { %v4000_v12 = vpop.f32.mrf.mxu0 }
 0x510   : > { %v4169_v13 = vpop.f32.mrf.mxu1 }
 0x511   : > { %v7920_v43 = vadd.f32 %v4169_v13, %v4000_v12  ;;  %v3574_v56 = vpop.f32.mrf.mxu2  ;;  %v7922_v31 = vpop.f32.mrf.mxu3 }
 0x512   : > { %9068 = vst [vmem:[#allocation28_spill] sm:$0xff] %v7922_v31  ;;  %v7925_v26 = vadd.f32 %v3574_v56, %v7771_v6  ;;  %4039 = vmatmul.bf16.gmra.mxu0 %v9070_v9  ;;  %v6009_v31 = vld [vmem:[#allocation8] sm:$0xff] }
 0x513   : > { %4208 = vmatmul.bf16.gmra.mxu1 %v8947_v48  ;;  %4781 = vmatpush.bf16.msra.mxu3 %v6009_v31 }
 0x514   : > { %9069 = vst [vmem:[#allocation112_spill] sm:$0xff] %v7925_v26 }
 0x516   : > { %4332 = vmatmul.bf16.gmra.mxu2 %v9071_v60 }
 0x517   : > { %v4002_v38 = vpop.f32.mrf.mxu0 }
 0x518   : > { %v4171_v8 = vpop.f32.mrf.mxu1 }
 0x519   : > { %v7930_v14 = vadd.f32 %v4171_v8, %v4002_v38  ;;  %v3577_v40 = vpop.f32.mrf.mxu2  ;;  %v3746_v4 = vpop.f32.mrf.mxu3  ;;  %v9075_v38 = vld [vmem:[#allocation55_spill] sm:$0xff]  ;;  %v9076_v8 = vld [vmem:[#allocation29_spill] sm:$0xff] }
 0x51a   : > { %v3578_v13 = vadd.f32 %v3577_v40, %v7777_v46 }
 0x51c   : > { %v7933_v12 = vadd.f32 %v3746_v4, %v3578_v13 }
 0x51e   : > { %9072 = vst [vmem:[#allocation58_spill] sm:$0xff] %v7933_v12 }
 0x51f   : > { %v4005_v6 = vpop.f32.mrf.mxu0 }
 0x520   : > { %v4174_v56 = vpop.f32.mrf.mxu1 }
 0x521   : > { %v7935_v26 = vadd.f32 %v4174_v56, %v4005_v6  ;;  %v3579_v9 = vpop.f32.mrf.mxu2  ;;  %v7937_v48 = vpop.f32.mrf.mxu3 }
 0x522   : > { %9073 = vst [vmem:[#allocation59_spill] sm:$0xff] %v7937_v48  ;;  %v7940_v60 = vadd.f32 %v3579_v9, %v7787_v34  ;;  %4044 = vmatmul.bf16.gmra.mxu0 %v9075_v38 }
 0x523   : > { %4213 = vmatmul.bf16.gmra.mxu1 %v8953_v47 }
 0x524   : > { %9074 = vst [vmem:[#allocation30_spill] sm:$0xff] %v7940_v60 }
 0x526   : > { %4337 = vmatmul.bf16.gmra.mxu2 %v9076_v8  ;;  %v9080_v8 = vld [vmem:[#allocation60_spill] sm:$0xff] }
 0x527   : > { %v4007_v46 = vpop.f32.mrf.mxu0 }
 0x528   : > { %v4176_v40 = vpop.f32.mrf.mxu1 }
 0x529   : > { %v7945_v4 = vadd.f32 %v4176_v40, %v4007_v46  ;;  %v3582_v31 = vpop.f32.mrf.mxu2  ;;  %v3751_v13 = vpop.f32.mrf.mxu3  ;;  %v9081_v46 = vld [vmem:[#allocation61_spill] sm:$0xff]  ;;  %v9082_v40 = vld [vmem:[#allocation32_spill] sm:$0xff] }
 0x52a   : > { %v3583_v6 = vadd.f32 %v3582_v31, %v7793_v57 }
 0x52c   : > { %v7948_v56 = vadd.f32 %v3751_v13, %v3583_v6 }
 0x52e   : > { %9077 = vst [vmem:[#allocation31_spill] sm:$0xff] %v7948_v56 }
 0x52f   : > { %v4010_v48 = vpop.f32.mrf.mxu0 }
 0x530   : > { %v4179_v12 = vpop.f32.mrf.mxu1 }
 0x531   : > { %v7950_v34 = vadd.f32 %v4179_v12, %v4010_v48  ;;  %v3584_v9 = vpop.f32.mrf.mxu2  ;;  %v7952_v38 = vpop.f32.mrf.mxu3  ;;  %v3821_v48 = vunpack.c.l.b16 %v8872_v18 }
 0x532   : > { %9078 = vst [vmem:[#allocation116_spill] sm:$0xff] %v7952_v38  ;;  %v7955_v47 = vadd.f32 %v3584_v9, %v7803_v25  ;;  %4049 = vmatmul.bf16.gmra.mxu0 %v9080_v8  ;;  %v3822_v38 = vunpack.c.h.b16 %v8872_v18  ;;  %v9086_v18 = vld [vmem:[#allocation35_spill] sm:$0xff] }
 0x533   : > { %4218 = vmatmul.bf16.gmra.mxu1 %v9081_v46  ;;  %v7967_v9 = vpack.c.b16 %v3821_v48, %v3821_v48 }
 0x534   : > { %9079 = vst [vmem:[#allocation63_spill] sm:$0xff] %v7955_v47  ;;  %v7969_v8 = vpack.c.b16 %v3822_v38, %v3822_v38 }
 0x536   : > { %4342 = vmatmul.bf16.gmra.mxu2 %v9082_v40 }
 0x537   : > { %v4012_v60 = vpop.f32.mrf.mxu0 }
 0x538   : > { %v4181_v57 = vpop.f32.mrf.mxu1 }
 0x539   : > { %v7960_v31 = vadd.f32 %v4181_v57, %v4012_v60  ;;  %v3587_v13 = vpop.f32.mrf.mxu2  ;;  %v3756_v6 = vpop.f32.mrf.mxu3 }
 0x53a   : > { %v3588_v12 = vadd.f32 %v3587_v13, %v7809_v45 }
 0x53c   : > { %v7965_v25 = vadd.f32 %v3756_v6, %v3588_v12 }
 0x53e   : > { %9083 = vst [vmem:[#allocation64_spill] sm:$0xff] %v7965_v25 }
 0x53f   : > { %v4015_v46 = vpop.f32.mrf.mxu0 }
 0x540   : > { %v4184_v40 = vpop.f32.mrf.mxu1 }
 0x541   : > { %v7971_v47 = vadd.f32 %v4184_v40, %v4015_v46  ;;  %v3589_v60 = vpop.f32.mrf.mxu2  ;;  %v7973_v57 = vpop.f32.mrf.mxu3 }
 0x542   : > { %9084 = vst [vmem:[#allocation33_spill] sm:$0xff] %v7973_v57  ;;  %v7976_v56 = vadd.f32 %v3589_v60, %v7819_v29  ;;  %4054 = vmatmul.bf16.gmra.mxu0 %v7967_v9 }
 0x543   : > { %4223 = vmatmul.bf16.gmra.mxu1 %v7969_v8 }
 0x544   : > { %9085 = vst [vmem:[#allocation34_spill] sm:$0xff] %v7976_v56 }
 0x546   : > { %4347 = vmatmul.bf16.gmra.mxu2 %v9086_v18  ;;  %v9090_v18 = vld [vmem:[#allocation70_spill] sm:$0xff] }
 0x547   : > { %v4017_v45 = vpop.f32.mrf.mxu0 }
 0x548   : > { %v4186_v13 = vpop.f32.mrf.mxu1 }
 0x549   : > { %v7981_v38 = vadd.f32 %v4186_v13, %v4017_v45  ;;  %v3592_v6 = vpop.f32.mrf.mxu2  ;;  %v3761_v12 = vpop.f32.mrf.mxu3  ;;  %v9091_v45 = vld [vmem:[#allocation38_spill] sm:$0xff] }
 0x54a   : > { %v3593_v48 = vadd.f32 %v3592_v6, %v7829_v23 }
 0x54c   : > { %v7984_v46 = vadd.f32 %v3761_v12, %v3593_v48 }
 0x54e   : > { %9087 = vst [vmem:[#allocation120_spill] sm:$0xff] %v7984_v46 }
 0x54f   : > { %v4020_v40 = vpop.f32.mrf.mxu0 }
 0x550   : > { %v4189_v57 = vpop.f32.mrf.mxu1 }
 0x551   : > { %v7986_v29 = vadd.f32 %v4189_v57, %v4020_v40  ;;  %v3594_v60 = vpop.f32.mrf.mxu2  ;;  %v7988_v56 = vpop.f32.mrf.mxu3 }
 0x552   : > { %9088 = vst [vmem:[#allocation68_spill] sm:$0xff] %v7988_v56  ;;  %v7991_v25 = vadd.f32 %v3594_v60, %v7837_v7  ;;  %4059 = vmatmul.bf16.gmra.mxu0 %v9090_v18 }
 0x553   : > { %4228 = vmatmul.bf16.gmra.mxu1 %v8970_v51  ;;  %v9094_v51 = vld [vmem:[#allocation75_spill] sm:$0xff] }
 0x554   : > { %9089 = vst [vmem:[#allocation67_spill] sm:$0xff] %v7991_v25 }
 0x556   : > { %4352 = vmatmul.bf16.gmra.mxu2 %v9091_v45  ;;  %v9095_v45 = vld [vmem:[#allocation41_spill] sm:$0xff] }
 0x557   : > { %v4022_v13 = vpop.f32.mrf.mxu0 }
 0x558   : > { %v4191_v23 = vpop.f32.mrf.mxu1 }
 0x559   : > { %v7996_v6 = vadd.f32 %v4191_v23, %v4022_v13  ;;  %v3597_v12 = vpop.f32.mrf.mxu2  ;;  %v3766_v48 = vpop.f32.mrf.mxu3 }
 0x55a   : > { %v3598_v57 = vadd.f32 %v3597_v12, %v7847_v36 }
 0x55c   : > { %v7999_v40 = vadd.f32 %v3766_v48, %v3598_v57  ;;  %v9096_v48 = vld [vmem:[#allocation73_spill] sm:$0xff] }
 0x55e   : > { %9092 = vst [vmem:[#allocation36_spill] sm:$0xff] %v7999_v40 }
 0x55f   : > { %v4025_v56 = vpop.f32.mrf.mxu0 }
 0x560   : > { %v4194_v46 = vpop.f32.mrf.mxu1 }
 0x561   : > { %v8001_v7 = vadd.f32 %v4194_v46, %v4025_v56  ;;  %v3599_v60 = vpop.f32.mrf.mxu2 }
 0x562   : > { %v8004_v18 = vadd.f32 %v3599_v60, %v7855_v41  ;;  %4064 = vmatmul.bf16.gmra.mxu0 %v9094_v51  ;;  %v8016_v41 = vld [vmem:[%s8588_s4] ss:$0 sm:$0xff] }
 0x563   : > { %4233 = vmatmul.bf16.gmra.mxu1 %v8976_v30 }
 0x564   : > { %9093 = vst [vmem:[#allocation37_spill] sm:$0xff] %v8004_v18  ;;  %v9097_v18 = vld [vmem:[#allocation80_spill] sm:$0xff] }
 0x566   : > { %4357 = vmatmul.bf16.gmra.mxu2 %v9095_v45 }
 0x567   : > { %v4027_v13 = vpop.f32.mrf.mxu0 }
 0x568   : > { %v4196_v23 = vpop.f32.mrf.mxu1 }
 0x569   : > { %v8009_v36 = vadd.f32 %v4196_v23, %v4027_v13  ;;  %v4318_v12 = vpop.f32.mrf.mxu2  ;;  %v9098_v13 = vld [vmem:[#allocation65_spill] sm:$0xff] }
 0x56a   : > { %v4319_v57 = vadd.f32 %v4318_v12, %v7859_v16 }
 0x56c   : > { %v4478_v56 = vadd.f32 %v4319_v57, %v9096_v48  ;;  %v9099_v57 = vld [vmem:[#allocation44_spill] sm:$0xff] }
 0x56e   : > { %v4546_v16 = vadd.f32 %v8016_v41, %v4478_v56 }
 0x56f   : > { %v4030_v46 = vpop.f32.mrf.mxu0 }
 0x570   : > { %v4199_v60 = vpop.f32.mrf.mxu1  ;;  %v4610_v48 = vmax.f32 %v4546_v16, 0.0  ;;  %v9101_v16 = vld [vmem:[#allocation85_spill] sm:$0xff] }
 0x571   : > { %v8018_v51 = vadd.f32 %v4199_v60, %v4030_v46  ;;  %v4320_v30 = vpop.f32.mrf.mxu2 }
 0x572   : > { %v4321_v45 = vadd.f32 %v4320_v30, %v7870_v42  ;;  %4069 = vmatmul.bf16.gmra.mxu0 %v9097_v18  ;;  %v9100_v30 = vld [vmem:[#allocation74_spill] sm:$0xff] }
 0x573   : > { %4238 = vmatmul.bf16.gmra.mxu1 %v8982_v37 }
 0x574   : > { %v4479_v23 = vadd.f32 %v4321_v45, %v9098_v13 }
 0x576   : > { %v4547_v12 = vadd.f32 %v8016_v41, %v4479_v23  ;;  %4362 = vmatmul.bf16.gmra.mxu2 %v9099_v57 }
 0x577   : > { %v4032_v25 = vpop.f32.mrf.mxu0 }
 0x578   : > { %v4611_v40 = vmax.f32 %v4547_v12, 0.0  ;;  %v4201_v46 = vpop.f32.mrf.mxu1  ;;  %v9102_v12 = vld [vmem:[#allocation78_spill] sm:$0xff] }
 0x579   : > { %v8027_v60 = vadd.f32 %v4201_v46, %v4032_v25  ;;  %v4323_v53 = vpop.f32.mrf.mxu2 }
 0x57a   : > { %v4674_v42 = vpack.c.bf16 %v4611_v40, %v4610_v48  ;;  %v4324_v18 = vadd.f32 %v4323_v53, %v7875_v49  ;;  %v9103_v53 = vld [vmem:[#allocation47_spill] sm:$0xff] }
 0x57c   : > { %v4480_v37 = vadd.f32 %v4324_v18, %v9100_v30  ;;  %4782 = vmatmul.bf16.vlgmr.msra.gmra.mxu3 %v4674_v42 }
 0x57e   : > { %v4548_v25 = vadd.f32 %v8016_v41, %v4480_v37 }
 0x57f   : > { %v4035_v56 = vpop.f32.mrf.mxu0 }
 0x580   : > { %v4204_v3 = vpop.f32.mrf.mxu1  ;;  %v4612_v57 = vmax.f32 %v4548_v25, 0.0  ;;  %v9105_v25 = vld [vmem:[#allocation90_spill] sm:$0xff] }
 0x581   : > { %v8031_v45 = vadd.f32 %v4204_v3, %v4035_v56  ;;  %v4325_v13 = vpop.f32.mrf.mxu2  ;;  %v9104_v56 = vld [vmem:[#allocation79_spill] sm:$0xff] }
 0x582   : > { %v4326_v23 = vadd.f32 %v4325_v13, %v7885_v50  ;;  %4074 = vmatmul.bf16.gmra.mxu0 %v9101_v16 }
 0x583   : > { %4243 = vmatmul.bf16.gmra.mxu1 %v8987_v58 }
 0x584   : > { %v4481_v40 = vadd.f32 %v4326_v23, %v9102_v12 }
 0x586   : > { %v4549_v49 = vadd.f32 %v8016_v41, %v4481_v40  ;;  %4367 = vmatmul.bf16.gmra.mxu2 %v9103_v53 }
 0x587   : > { %v4037_v48 = vpop.f32.mrf.mxu0 }
 0x588   : > { %v4206_v46 = vpop.f32.mrf.mxu1  ;;  %v4613_v3 = vmax.f32 %v4549_v49, 0.0  ;;  %v9106_v49 = vld [vmem:[#allocation83_spill] sm:$0xff] }
 0x589   : > { %v8040_v42 = vadd.f32 %v4206_v46, %v4037_v48  ;;  %v4328_v18 = vpop.f32.mrf.mxu2 }
 0x58a   : > { %v4329_v50 = vadd.f32 %v4328_v18, %v7890_v19  ;;  %v4675_v30 = vpack.c.bf16 %v4613_v3, %v4612_v57  ;;  %v9107_v57 = vld [vmem:[#allocation50_spill] sm:$0xff] }
 0x58c   : > { %v4482_v58 = vadd.f32 %v4329_v50, %v9104_v56  ;;  %4787 = vmatmul.bf16.gmra.mxu3 %v4675_v30 }
 0x58e   : > { %v4550_v40 = vadd.f32 %v8016_v41, %v4482_v58 }
 0x58f   : > { %v4040_v37 = vpop.f32.mrf.mxu0 }
 0x590   : > { %v4209_v13 = vpop.f32.mrf.mxu1  ;;  %v4614_v48 = vmax.f32 %v4550_v40, 0.0  ;;  %v9109_v40 = vld [vmem:[#allocation94_spill] sm:$0xff] }
 0x591   : > { %v8044_v23 = vadd.f32 %v4209_v13, %v4040_v37  ;;  %v4330_v16 = vpop.f32.mrf.mxu2  ;;  %v9108_v37 = vld [vmem:[#allocation84_spill] sm:$0xff] }
 0x592   : > { %v4331_v12 = vadd.f32 %v4330_v16, %v7900_v2  ;;  %4079 = vmatmul.bf16.gmra.mxu0 %v9105_v25 }
 0x593   : > { %4248 = vmatmul.bf16.gmra.mxu1 %v8991_v1 }
 0x594   : > { %v4483_v53 = vadd.f32 %v4331_v12, %v9106_v49 }
 0x596   : > { %v4551_v19 = vadd.f32 %v8016_v41, %v4483_v53  ;;  %4372 = vmatmul.bf16.gmra.mxu2 %v9107_v57  ;;  %v9110_v53 = vld [vmem:[#allocation88_spill] sm:$0xff]  ;;  %v9111_v57 = vld [vmem:[#allocation53_spill] sm:$0xff] }
 0x597   : > { %v4042_v46 = vpop.f32.mrf.mxu0 }
 0x598   : > { %v4211_v3 = vpop.f32.mrf.mxu1  ;;  %v4615_v18 = vmax.f32 %v4551_v19, 0.0 }
 0x599   : > { %v8053_v50 = vadd.f32 %v4211_v3, %v4042_v46  ;;  %v4333_v30 = vpop.f32.mrf.mxu2 }
 0x59a   : > { %v4334_v2 = vadd.f32 %v4333_v30, %v7905_v39  ;;  %v4676_v56 = vpack.c.bf16 %v4615_v18, %v4614_v48 }
 0x59c   : > { %v4484_v1 = vadd.f32 %v4334_v2, %v9108_v37  ;;  %4792 = vmatmul.bf16.gmra.mxu3 %v4676_v56  ;;  %v9112_v37 = vld [vmem:[#allocation87_spill] sm:$0xff] }
 0x59e   : > { %v4552_v49 = vadd.f32 %v8016_v41, %v4484_v1 }
 0x59f   : > { %v4045_v58 = vpop.f32.mrf.mxu0 }
 0x5a0   : > { %v4214_v13 = vpop.f32.mrf.mxu1  ;;  %v4616_v48 = vmax.f32 %v4552_v49, 0.0 }
 0x5a1   : > { %v8057_v16 = vadd.f32 %v4214_v13, %v4045_v58  ;;  %v4335_v12 = vpop.f32.mrf.mxu2 }
 0x5a2   : > { %v4336_v25 = vadd.f32 %v4335_v12, %v7915_v32  ;;  %4084 = vmatmul.bf16.gmra.mxu0 %v9109_v40  ;;  %v9113_v40 = vld [vmem:[#allocation99_spill] sm:$0xff] }
 0x5a3   : > { %4253 = vmatmul.bf16.gmra.mxu1 %v8994_v11 }
 0x5a4   : > { %v4485_v19 = vadd.f32 %v4336_v25, %v9110_v53  ;;  %v9114_v53 = vld [vmem:[#allocation89_spill] sm:$0xff] }
 0x5a6   : > { %v4553_v39 = vadd.f32 %v8016_v41, %v4485_v19  ;;  %4377 = vmatmul.bf16.gmra.mxu2 %v9111_v57 }
 0x5a7   : > { %v4047_v46 = vpop.f32.mrf.mxu0 }
 0x5a8   : > { %v4216_v3 = vpop.f32.mrf.mxu1  ;;  %v4617_v18 = vmax.f32 %v4553_v39, 0.0  ;;  %v9115_v39 = vld [vmem:[#allocation57_spill] sm:$0xff] }
 0x5a9   : > { %v8066_v30 = vadd.f32 %v4216_v3, %v4047_v46  ;;  %v4338_v2 = vpop.f32.mrf.mxu2 }
 0x5aa   : > { %v4339_v32 = vadd.f32 %v4338_v2, %v7920_v43  ;;  %v4677_v56 = vpack.c.bf16 %v4617_v18, %v4616_v48 }
 0x5ac   : > { %v4486_v11 = vadd.f32 %v4339_v32, %v9112_v37  ;;  %4797 = vmatmul.bf16.gmra.mxu3 %v4677_v56  ;;  %v9116_v56 = vld [vmem:[#allocation93_spill] sm:$0xff] }
 0x5ae   : > { %v4554_v49 = vadd.f32 %v8016_v41, %v4486_v11 }
 0x5af   : > { %v4050_v1 = vpop.f32.mrf.mxu0 }
 0x5b0   : > { %v4219_v58 = vpop.f32.mrf.mxu1  ;;  %v4618_v57 = vmax.f32 %v4554_v49, 0.0  ;;  %v9118_v49 = vld [vmem:[#allocation92_spill] sm:$0xff] }
 0x5b1   : > { %v8070_v13 = vadd.f32 %v4219_v58, %v4050_v1  ;;  %v4340_v12 = vpop.f32.mrf.mxu2 }
 0x5b2   : > { %v4341_v25 = vadd.f32 %v4340_v12, %v7930_v14  ;;  %4089 = vmatmul.bf16.gmra.mxu0 %v9113_v40 }
 0x5b3   : > { %4258 = vmatmul.bf16.gmra.mxu1 %v8999_v59 }
 0x5b4   : > { %v4487_v19 = vadd.f32 %v4341_v25, %v9114_v53  ;;  %v9117_v25 = vld [vmem:[#allocation103_spill] sm:$0xff] }
 0x5b6   : > { %v4555_v43 = vadd.f32 %v8016_v41, %v4487_v19  ;;  %4382 = vmatmul.bf16.gmra.mxu2 %v9115_v39  ;;  %v9119_v19 = vld [vmem:[#allocation62_spill] sm:$0xff] }
 0x5b7   : > { %v4052_v48 = vpop.f32.mrf.mxu0 }
 0x5b8   : > { %v4221_v46 = vpop.f32.mrf.mxu1  ;;  %v4619_v3 = vmax.f32 %v4555_v43, 0.0 }
 0x5b9   : > { %v8079_v18 = vadd.f32 %v4221_v46, %v4052_v48  ;;  %v4343_v2 = vpop.f32.mrf.mxu2 }
 0x5ba   : > { %v4344_v14 = vadd.f32 %v4343_v2, %v7935_v26  ;;  %v4678_v32 = vpack.c.bf16 %v4619_v3, %v4618_v57 }
 0x5bc   : > { %v4488_v59 = vadd.f32 %v4344_v14, %v9116_v56  ;;  %4802 = vmatmul.bf16.gmra.mxu3 %v4678_v32  ;;  %v9120_v14 = vld [vmem:[#allocation46_spill] sm:$0xff] }
 0x5be   : > { %v4556_v40 = vadd.f32 %v8016_v41, %v4488_v59 }
 0x5bf   : > { %v4055_v37 = vpop.f32.mrf.mxu0 }
 0x5c0   : > { %v4224_v11 = vpop.f32.mrf.mxu1  ;;  %v4620_v43 = vmax.f32 %v4556_v40, 0.0 }
 0x5c1   : > { %v8083_v1 = vadd.f32 %v4224_v11, %v4055_v37  ;;  %v4345_v58 = vpop.f32.mrf.mxu2 }
 0x5c2   : > { %v4346_v12 = vadd.f32 %v4345_v58, %v7945_v4  ;;  %4094 = vmatmul.bf16.gmra.mxu0 %v9117_v25 }
 0x5c3   : > { %4263 = vmatmul.bf16.gmra.mxu1 %v9006_v5 }
 0x5c4   : > { %v4489_v53 = vadd.f32 %v4346_v12, %v9118_v49  ;;  %v9121_v12 = vld [vmem:[#allocation97_spill] sm:$0xff] }
 0x5c6   : > { %v4557_v26 = vadd.f32 %v8016_v41, %v4489_v53  ;;  %4387 = vmatmul.bf16.gmra.mxu2 %v9119_v19 }
 0x5c7   : > { %v4057_v39 = vpop.f32.mrf.mxu0 }
 0x5c8   : > { %v4226_v57 = vpop.f32.mrf.mxu1  ;;  %v4621_v48 = vmax.f32 %v4557_v26, 0.0 }
 0x5c9   : > { %v8092_v46 = vadd.f32 %v4226_v57, %v4057_v39  ;;  %v4348_v3 = vpop.f32.mrf.mxu2  ;;  %v9122_v39 = vld [vmem:[#allocation96_spill] sm:$0xff] }
 0x5ca   : > { %v4349_v4 = vadd.f32 %v4348_v3, %v7950_v34  ;;  %v4679_v2 = vpack.c.bf16 %v4621_v48, %v4620_v43 }
 0x5cc   : > { %v4490_v5 = vadd.f32 %v4349_v4, %v9120_v14  ;;  %4807 = vmatmul.bf16.gmra.mxu3 %v4679_v2  ;;  %v9123_v14 = vld [vmem:[#allocation111_spill] sm:$0xff] }
 0x5ce   : > { %v4558_v58 = vadd.f32 %v8016_v41, %v4490_v5 }
 0x5cf   : > { %v4060_v32 = vpop.f32.mrf.mxu0 }
 0x5d0   : > { %v4229_v56 = vpop.f32.mrf.mxu1  ;;  %v4622_v40 = vmax.f32 %v4558_v58, 0.0 }
 0x5d1   : > { %v8096_v59 = vadd.f32 %v4229_v56, %v4060_v32  ;;  %v4350_v37 = vpop.f32.mrf.mxu2  ;;  %v9124_v32 = vld [vmem:[#allocation98_spill] sm:$0xff] }
 0x5d2   : > { %v4351_v11 = vadd.f32 %v4350_v37, %v7960_v31  ;;  %4099 = vmatmul.bf16.gmra.mxu0 %v8962_v35  ;;  %v9125_v37 = vld [vmem:[#allocation72_spill] sm:$0xff] }
 0x5d3   : > { %4268 = vmatmul.bf16.gmra.mxu1 %v9013_v24 }
 0x5d4   : > { %v4491_v25 = vadd.f32 %v4351_v11, %v9121_v12 }
 0x5d6   : > { %v4559_v34 = vadd.f32 %v8016_v41, %v4491_v25  ;;  %4392 = vmatmul.bf16.gmra.mxu2 %v7967_v9 }
 0x5d7   : > { %v4062_v49 = vpop.f32.mrf.mxu0 }
 0x5d8   : > { %v4231_v53 = vpop.f32.mrf.mxu1  ;;  %v4623_v26 = vmax.f32 %v4559_v34, 0.0 }
 0x5d9   : > { %v8105_v19 = vadd.f32 %v4231_v53, %v4062_v49  ;;  %v4353_v43 = vpop.f32.mrf.mxu2  ;;  %v9126_v53 = vld [vmem:[#allocation102_spill] sm:$0xff] }
 0x5da   : > { %v4354_v31 = vadd.f32 %v4353_v43, %v7971_v47  ;;  %v4680_v35 = vpack.c.bf16 %v4623_v26, %v4622_v40 }
 0x5dc   : > { %v4492_v24 = vadd.f32 %v4354_v31, %v9122_v39  ;;  %4812 = vmatmul.bf16.gmra.mxu3 %v4680_v35 }
 0x5de   : > { %v4560_v5 = vadd.f32 %v8016_v41, %v4492_v24  ;;  %v9127_v24 = vld [vmem:[#allocation115_spill] sm:$0xff] }
 0x5df   : > { %v4065_v57 = vpop.f32.mrf.mxu0 }
 0x5e0   : > { %v4234_v48 = vpop.f32.mrf.mxu1  ;;  %v4624_v11 = vmax.f32 %v4560_v5, 0.0 }
 0x5e1   : > { %v8109_v3 = vadd.f32 %v4234_v48, %v4065_v57  ;;  %v4355_v4 = vpop.f32.mrf.mxu2  ;;  %v9128_v48 = vld [vmem:[#allocation101_spill] sm:$0xff] }
 0x5e2   : > { %v4356_v2 = vadd.f32 %v4355_v4, %v7981_v38  ;;  %4104 = vmatmul.bf16.gmra.mxu0 %v9123_v14  ;;  %v8131_v14 = vpop.f32.mrf.mxu3 }
 0x5e3   : > { %4273 = vmatmul.bf16.gmra.mxu1 %v9020_v52 }
 0x5e4   : > { %v4493_v56 = vadd.f32 %v4356_v2, %v9124_v32  ;;  %v9129_v2 = vld [vmem:[#allocation77_spill] sm:$0xff] }
 0x5e6   : > { %v4561_v47 = vadd.f32 %v8016_v41, %v4493_v56  ;;  %4397 = vmatmul.bf16.gmra.mxu2 %v9125_v37 }
 0x5e7   : > { %v4067_v58 = vpop.f32.mrf.mxu0 }
 0x5e8   : > { %v4236_v12 = vpop.f32.mrf.mxu1  ;;  %v4625_v25 = vmax.f32 %v4561_v47, 0.0 }
 0x5e9   : > { %v8118_v34 = vadd.f32 %v4236_v12, %v4067_v58  ;;  %v4358_v40 = vpop.f32.mrf.mxu2  ;;  %v9130_v58 = vld [vmem:[#allocation52_spill] sm:$0xff] }
 0x5ea   : > { %v4359_v38 = vadd.f32 %v4358_v40, %v7986_v29  ;;  %v4681_v49 = vpack.c.bf16 %v4625_v25, %v4624_v11  ;;  %v8140_v25 = vld [vmem:[%s8590_s6] ss:$0 sm:$0xff] }
 0x5ec   : > { %v4494_v52 = vadd.f32 %v4359_v38, %v9126_v53  ;;  %4817 = vmatmul.bf16.gmra.mxu3 %v4681_v49 }
 0x5ee   : > { %v4562_v57 = vadd.f32 %v8016_v41, %v4494_v52  ;;  %v4943_v52 = vld [vmem:[%s6591_s18] sm:$0xff] }
 0x5ef   : > { %v4070_v26 = vpop.f32.mrf.mxu0 }
 0x5f0   : > { %v4239_v43 = vpop.f32.mrf.mxu1  ;;  %v4626_v5 = vmax.f32 %v4562_v57, 0.0  ;;  %v9131_v57 = vld [vmem:[#allocation106_spill] sm:$0xff] }
 0x5f1   : > { %v8122_v31 = vadd.f32 %v4239_v43, %v4070_v26  ;;  %v4360_v35 = vpop.f32.mrf.mxu2 }
 0x5f2   : > { %v4361_v39 = vadd.f32 %v4360_v35, %v7996_v6  ;;  %4109 = vmatmul.bf16.gmra.mxu0 %v9127_v24 }
 0x5f3   : > { %4278 = vmatmul.bf16.gmra.mxu1 %v9027_v15 }
 0x5f4   : > { %v4495_v4 = vadd.f32 %v4361_v39, %v9128_v48 }
 0x5f6   : > { %v4563_v29 = vadd.f32 %v8016_v41, %v4495_v4  ;;  %4402 = vmatmul.bf16.gmra.mxu2 %v9129_v2 }
 0x5f7   : > { %v4072_v32 = vpop.f32.mrf.mxu0 }
 0x5f8   : > { %v4241_v56 = vpop.f32.mrf.mxu1  ;;  %v4627_v47 = vmax.f32 %v4563_v29, 0.0  ;;  %v9132_v29 = vld [vmem:[#allocation82_spill] sm:$0xff] }
 0x5f9   : > { %v8133_v6 = vadd.f32 %v4241_v56, %v4072_v32  ;;  %v4363_v37 = vpop.f32.mrf.mxu2 }
 0x5fa   : > { %v4364_v15 = vadd.f32 %v4363_v37, %v8001_v7  ;;  %v4682_v11 = vpack.c.bf16 %v4627_v47, %v4626_v5 }
 0x5fc   : > { %v4496_v12 = vadd.f32 %v4364_v15, %v9130_v58  ;;  %4822 = vmatmul.bf16.gmra.mxu3 %v4682_v11 }
 0x5fe   : > { %v4564_v39 = vadd.f32 %v8016_v41, %v4496_v12 }
 0x5ff   : > { %v4783_v40 = vpop.f32.mrf.mxu3  ;;  %v4075_v49 = vpop.f32.mrf.mxu0 }
 0x600   : > { %v4784_v38 = vadd.f32 %v8140_v25, %v4783_v40  ;;  %v4244_v53 = vpop.f32.mrf.mxu1  ;;  %v4628_v5 = vmax.f32 %v4564_v39, 0.0  ;;  %v9133_v40 = vld [vmem:[#allocation56_spill] sm:$0xff] }
 0x601   : > { %v8144_v26 = vadd.f32 %v4244_v53, %v4075_v49  ;;  %v4365_v43 = vpop.f32.mrf.mxu2 }
 0x602   : > { %v5007_v7 = vadd.f32 %v4943_v52, %v4784_v38  ;;  %v4366_v35 = vadd.f32 %v4365_v43, %v8009_v36  ;;  %4114 = vmatmul.bf16.gmra.mxu0 %v8980_v33  ;;  %v4945_v52 = vld [vmem:[%s6591_s18 + $0x10] sm:$0xff] }
 0x603   : > { %4283 = vmatmul.bf16.gmra.mxu1 %v9035_v20  ;;  %v4944_v20 = vld [vmem:[%s6591_s18 + $0x8] sm:$0xff] }
 0x604   : > { %v5071_v24 = vmax.f32 %v5007_v7, 0.0  ;;  %v4497_v48 = vadd.f32 %v4366_v35, %v9131_v57 }
 0x606   : > { %5135 = vst [vmem:[%s6591_s18] sm:$0xff] %v5071_v24  ;;  %v4565_v4 = vadd.f32 %v8016_v41, %v4497_v48  ;;  %4407 = vmatmul.bf16.gmra.mxu2 %v9132_v29  ;;  %v9134_v24 = vld [vmem:[#allocation110_spill] sm:$0xff] }
 0x607   : > { %v4785_v2 = vpop.f32.mrf.mxu3  ;;  %v4077_v36 = vpop.f32.mrf.mxu0 }
 0x608   : > { %v4786_v32 = vadd.f32 %v8140_v25, %v4785_v2  ;;  %v4246_v33 = vpop.f32.mrf.mxu1  ;;  %v4629_v56 = vmax.f32 %v4565_v4, 0.0 }
 0x609   : > { %v8156_v47 = vadd.f32 %v4246_v33, %v4077_v36  ;;  %v4368_v37 = vpop.f32.mrf.mxu2 }
 0x60a   : > { %v5008_v15 = vadd.f32 %v4944_v20, %v4786_v32  ;;  %v4369_v11 = vadd.f32 %v4368_v37, %v8018_v51  ;;  %v4683_v58 = vpack.c.bf16 %v4629_v56, %v4628_v5  ;;  %v9135_v56 = vld [vmem:[#allocation114_spill] sm:$0xff] }
 0x60c   : > { %v5072_v12 = vmax.f32 %v5008_v15, 0.0  ;;  %v4498_v38 = vadd.f32 %v4369_v11, %v9133_v40  ;;  %4827 = vmatmul.bf16.gmra.mxu3 %v4683_v58  ;;  %v4947_v15 = vld [vmem:[%s6591_s18 + $0x20] sm:$0xff] }
 0x60e   : > { %5136 = vst [vmem:[%s6591_s18 + $0x8] sm:$0xff] %v5072_v12  ;;  %v4566_v51 = vadd.f32 %v8016_v41, %v4498_v38  ;;  %v9136_v38 = vld [vmem:[#allocation107_spill] sm:$0xff] }
 0x60f   : > { %v4788_v49 = vpop.f32.mrf.mxu3 }
 0x610   : > { %v4789_v53 = vadd.f32 %v8140_v25, %v4788_v49  ;;  %v4630_v29 = vmax.f32 %v4566_v51, 0.0 }
 0x611   : > { %v4370_v43 = vpop.f32.mrf.mxu2 }
 0x612   : > { %v5009_v7 = vadd.f32 %v4945_v52, %v4789_v53  ;;  %v4371_v35 = vadd.f32 %v4370_v43, %v8027_v60  ;;  %4119 = vmatmul.bf16.gmra.mxu0 %v8985_v44  ;;  %v4946_v44 = vld [vmem:[%s6591_s18 + $0x18] sm:$0xff] }
 0x613   : > { %4288 = vmatmul.bf16.gmra.mxu1 %v9043_v21 }
 0x614   : > { %v5073_v39 = vmax.f32 %v5009_v7, 0.0  ;;  %v4499_v57 = vadd.f32 %v4371_v35, %v9134_v24 }
 0x616   : > { %5137 = vst [vmem:[%s6591_s18 + $0x10] sm:$0xff] %v5073_v39  ;;  %v4567_v48 = vadd.f32 %v8016_v41, %v4499_v57  ;;  %4412 = vmatmul.bf16.gmra.mxu2 %v8924_v54  ;;  %v9137_v57 = vld [vmem:[#allocation66_spill] sm:$0xff] }
 0x617   : > { %v4790_v4 = vpop.f32.mrf.mxu3 }
 0x618   : > { %v4791_v60 = vadd.f32 %v8140_v25, %v4790_v4  ;;  %v4631_v2 = vmax.f32 %v4567_v48, 0.0 }
 0x619   : > { %v4373_v5 = vpop.f32.mrf.mxu2 }
 0x61a   : > { %v5010_v21 = vadd.f32 %v4946_v44, %v4791_v60  ;;  %v4374_v32 = vadd.f32 %v4373_v5, %v8031_v45  ;;  %v4684_v36 = vpack.c.bf16 %v4631_v2, %v4630_v29  ;;  %v4949_v29 = vld [vmem:[%s6591_s18 + $0x30] sm:$0xff] }
 0x61b   : > { %v9138_v5 = vld [vmem:[#allocation130_spill] sm:$0xff] }
 0x61c   : > { %v5074_v33 = vmax.f32 %v5010_v21, 0.0  ;;  %v4500_v20 = vadd.f32 %v4374_v32, %v9135_v56  ;;  %4832 = vmatmul.bf16.gmra.mxu3 %v4684_v36  ;;  %v9139_v21 = vld [vmem:[#allocation131_spill] sm:$0xff]  ;;  %v9140_v36 = vld [vmem:[#allocation118_spill] sm:$0xff] }
 0x61e   : > { %5138 = vst [vmem:[%s6591_s18 + $0x18] sm:$0xff] %v5074_v33  ;;  %v4568_v45 = vadd.f32 %v8016_v41, %v4500_v20 }
 0x61f   : > { %v4793_v37 = vpop.f32.mrf.mxu3 }
 0x620   : > { %v4794_v54 = vadd.f32 %v8140_v25, %v4793_v37  ;;  %v4632_v43 = vmax.f32 %v4568_v45, 0.0 }
 0x621   : > { %v4375_v11 = vpop.f32.mrf.mxu2 }
 0x622   : > { %v5011_v58 = vadd.f32 %v4947_v15, %v4794_v54  ;;  %v4376_v12 = vadd.f32 %v4375_v11, %v8040_v42  ;;  %4124 = vmatmul.bf16.gmra.mxu0 %v8989_v28  ;;  %v4948_v28 = vld [vmem:[%s6591_s18 + $0x28] sm:$0xff]  ;;  %v4950_v15 = vld [vmem:[%s6591_s18 + $0x38] sm:$0xff] }
 0x623   : > { %4293 = vmatmul.bf16.gmra.mxu1 %v9050_v61 }
 0x624   : > { %v5075_v40 = vmax.f32 %v5011_v58, 0.0  ;;  %v4501_v49 = vadd.f32 %v4376_v12, %v9136_v38  ;;  %v9141_v38 = vld [vmem:[#allocation117_spill] sm:$0xff] }
 0x626   : > { %5139 = vst [vmem:[%s6591_s18 + $0x20] sm:$0xff] %v5075_v40  ;;  %v4569_v53 = vadd.f32 %v8016_v41, %v4501_v49  ;;  %4417 = vmatmul.bf16.gmra.mxu2 %v8931_v0 }
 0x627   : > { %v4795_v52 = vpop.f32.mrf.mxu3 }
 0x628   : > { %v4796_v42 = vadd.f32 %v8140_v25, %v4795_v52  ;;  %v4633_v7 = vmax.f32 %v4569_v53, 0.0  ;;  %v4951_v52 = vld [vmem:[%s6591_s18 + $0x40] sm:$0xff] }
 0x629   : > { %v4378_v35 = vpop.f32.mrf.mxu2 }
 0x62a   : > { %v5012_v61 = vadd.f32 %v4948_v28, %v4796_v42  ;;  %v4379_v51 = vadd.f32 %v4378_v35, %v8044_v23  ;;  %v4685_v39 = vpack.c.bf16 %v4633_v7, %v4632_v43  ;;  %v9142_v35 = vld [vmem:[#allocation71_spill] sm:$0xff] }
 0x62c   : > { %v5076_v24 = vmax.f32 %v5012_v61, 0.0  ;;  %v4502_v48 = vadd.f32 %v4379_v51, %v9137_v57  ;;  %4837 = vmatmul.bf16.gmra.mxu3 %v4685_v39 }
 0x62e   : > { %5140 = vst [vmem:[%s6591_s18 + $0x28] sm:$0xff] %v5076_v24  ;;  %v4570_v23 = vadd.f32 %v8016_v41, %v4502_v48  ;;  %v4952_v48 = vld [vmem:[%s6591_s18 + $0x48] sm:$0xff] }
 0x62f   : > { %v4798_v4 = vpop.f32.mrf.mxu3 }
 0x630   : > { %v4799_v0 = vadd.f32 %v8140_v25, %v4798_v4  ;;  %v4634_v37 = vmax.f32 %v4570_v23, 0.0 }
 0x631   : > { %v4380_v60 = vpop.f32.mrf.mxu2 }
 0x632   : > { %v5013_v2 = vadd.f32 %v4949_v29, %v4799_v0  ;;  %v4381_v44 = vadd.f32 %v4380_v60, %v8053_v50  ;;  %4129 = vmatmul.bf16.gmra.mxu0 %v9138_v5  ;;  %v4953_v5 = vld [vmem:[%s6591_s18 + $0x50] sm:$0xff] }
 0x633   : > { %4298 = vmatmul.bf16.gmra.mxu1 %v9139_v21 }
 0x634   : > { %v5077_v32 = vmax.f32 %v5013_v2, 0.0  ;;  %v4503_v33 = vadd.f32 %v4381_v44, %v9140_v36 }
 0x636   : > { %5141 = vst [vmem:[%s6591_s18 + $0x30] sm:$0xff] %v5077_v32  ;;  %v4571_v56 = vadd.f32 %v8016_v41, %v4503_v33  ;;  %4422 = vmatmul.bf16.gmra.mxu2 %v8937_v63 }
 0x637   : > { %v4800_v20 = vpop.f32.mrf.mxu3 }
 0x638   : > { %v4801_v50 = vadd.f32 %v8140_v25, %v4800_v20  ;;  %v4635_v54 = vmax.f32 %v4571_v56, 0.0  ;;  %v9143_v56 = vld [vmem:[#allocation122_spill] sm:$0xff]  ;;  %v9144_v20 = vld [vmem:[#allocation105_spill] sm:$0xff] }
 0x639   : > { %v4383_v11 = vpop.f32.mrf.mxu2 }
 0x63a   : > { %v5014_v58 = vadd.f32 %v4950_v15, %v4801_v50  ;;  %v4384_v12 = vadd.f32 %v4383_v11, %v8057_v16  ;;  %v4686_v45 = vpack.c.bf16 %v4635_v54, %v4634_v37  ;;  %v4954_v11 = vld [vmem:[%s6591_s18 + $0x58] sm:$0xff] }
 0x63c   : > { %v5078_v40 = vmax.f32 %v5014_v58, 0.0  ;;  %v4504_v49 = vadd.f32 %v4384_v12, %v9141_v38  ;;  %4842 = vmatmul.bf16.gmra.mxu3 %v4686_v45  ;;  %v9145_v38 = vld [vmem:[#allocation76_spill] sm:$0xff] }
 0x63e   : > { %5142 = vst [vmem:[%s6591_s18 + $0x38] sm:$0xff] %v5078_v40  ;;  %v4572_v16 = vadd.f32 %v8016_v41, %v4504_v49 }
 0x63f   : > { %v4803_v53 = vpop.f32.mrf.mxu3 }
 0x640   : > { %v4804_v63 = vadd.f32 %v8140_v25, %v4803_v53  ;;  %v4636_v24 = vmax.f32 %v4572_v16, 0.0 }
 0x641   : > { %v4385_v43 = vpop.f32.mrf.mxu2 }
 0x642   : > { %v5015_v42 = vadd.f32 %v4951_v52, %v4804_v63  ;;  %v4386_v7 = vadd.f32 %v4385_v43, %v8066_v30  ;;  %4134 = vmatmul.bf16.gmra.mxu0 %v7967_v9  ;;  %v4955_v52 = vld [vmem:[%s6591_s18 + $0x60] sm:$0xff] }
 0x643   : > { %4303 = vmatmul.bf16.gmra.mxu1 %v7969_v8 }
 0x644   : > { %v5079_v28 = vmax.f32 %v5015_v42, 0.0  ;;  %v4505_v61 = vadd.f32 %v4386_v7, %v9142_v35  ;;  %v9146_v35 = vld [vmem:[#allocation126_spill] sm:$0xff] }
 0x646   : > { %5143 = vst [vmem:[%s6591_s18 + $0x40] sm:$0xff] %v5079_v28  ;;  %v4573_v51 = vadd.f32 %v8016_v41, %v4505_v61  ;;  %4427 = vmatmul.bf16.gmra.mxu2 %v8944_v10 }
 0x647   : > { %v4805_v39 = vpop.f32.mrf.mxu3 }
 0x648   : > { %v4806_v30 = vadd.f32 %v8140_v25, %v4805_v39  ;;  %v4637_v57 = vmax.f32 %v4573_v51, 0.0  ;;  %v9147_v51 = vld [vmem:[#allocation109_spill] sm:$0xff] }
 0x649   : > { %v4388_v4 = vpop.f32.mrf.mxu2 }
 0x64a   : > { %v5016_v8 = vadd.f32 %v4952_v48, %v4806_v30  ;;  %v4389_v0 = vadd.f32 %v4388_v4, %v8070_v13  ;;  %v4687_v29 = vpack.c.bf16 %v4637_v57, %v4636_v24  ;;  %v4956_v48 = vld [vmem:[%s6591_s18 + $0x68] sm:$0xff] }
 0x64c   : > { %v5080_v60 = vmax.f32 %v5016_v8, 0.0  ;;  %v4506_v2 = vadd.f32 %v4389_v0, %v7725_v62  ;;  %4847 = vmatmul.bf16.gmra.mxu3 %v4687_v29 }
 0x64e   : > { %5144 = vst [vmem:[%s6591_s18 + $0x48] sm:$0xff] %v5080_v60  ;;  %v4574_v36 = vadd.f32 %v8016_v41, %v4506_v2  ;;  %v9148_v60 = vld [vmem:[#allocation125_spill] sm:$0xff] }
 0x64f   : > { %v4808_v44 = vpop.f32.mrf.mxu3 }
 0x650   : > { %v4809_v10 = vadd.f32 %v8140_v25, %v4808_v44  ;;  %v4638_v50 = vmax.f32 %v4574_v36, 0.0 }
 0x651   : > { %v4390_v21 = vpop.f32.mrf.mxu2 }
 0x652   : > { %v5017_v23 = vadd.f32 %v4953_v5, %v4809_v10  ;;  %v4391_v32 = vadd.f32 %v4390_v21, %v8079_v18  ;;  %v4957_v5 = vld [vmem:[%s6591_s18 + $0x70] sm:$0xff] }
 0x654   : > { %v5081_v33 = vmax.f32 %v5017_v23, 0.0  ;;  %v4507_v13 = vadd.f32 %v4391_v32, %v9143_v56  ;;  %v9149_v56 = vld [vmem:[#allocation119_spill] sm:$0xff] }
 0x656   : > { %5145 = vst [vmem:[%s6591_s18 + $0x50] sm:$0xff] %v5081_v33  ;;  %v4575_v62 = vadd.f32 %v8016_v41, %v4507_v13  ;;  %4432 = vmatmul.bf16.gmra.mxu2 %v9144_v20 }
 0x657   : > { %v4810_v37 = vpop.f32.mrf.mxu3 }
 0x658   : > { %v4811_v54 = vadd.f32 %v8140_v25, %v4810_v37  ;;  %v4639_v15 = vmax.f32 %v4575_v62, 0.0  ;;  %v9150_v62 = vld [vmem:[#allocation113_spill] sm:$0xff]  ;;  %v8255_v37 = vpop.f32.mrf.mxu0 }
 0x659   : > { %v4393_v58 = vpop.f32.mrf.mxu2 }
 0x65a   : > { %v5018_v18 = vadd.f32 %v4954_v11, %v4811_v54  ;;  %v4394_v12 = vadd.f32 %v4393_v58, %v8083_v1  ;;  %v4688_v45 = vpack.c.bf16 %v4639_v15, %v4638_v50  ;;  %v4958_v11 = vld [vmem:[%s6591_s18 + $0x78] sm:$0xff] }
 0x65c   : > { %v5082_v40 = vmax.f32 %v5018_v18, 0.0  ;;  %v4508_v49 = vadd.f32 %v4394_v12, %v9145_v38  ;;  %4852 = vmatmul.bf16.gmra.mxu3 %v4688_v45  ;;  %v9151_v38 = vld [vmem:[#allocation81_spill] sm:$0xff] }
 0x65e   : > { %5146 = vst [vmem:[%s6591_s18 + $0x58] sm:$0xff] %v5082_v40  ;;  %v4576_v16 = vadd.f32 %v8016_v41, %v4508_v49 }
 0x65f   : > { %v4813_v53 = vpop.f32.mrf.mxu3 }
 0x660   : > { %v4814_v63 = vadd.f32 %v8140_v25, %v4813_v53  ;;  %v4640_v24 = vmax.f32 %v4576_v16, 0.0 }
 0x661   : > { %v4395_v43 = vpop.f32.mrf.mxu2 }
 0x662   : > { %v5019_v42 = vadd.f32 %v4955_v52, %v4814_v63  ;;  %v4396_v7 = vadd.f32 %v4395_v43, %v8092_v46  ;;  %v4959_v52 = vld [vmem:[%s6591_s18 + $0x80] sm:$0xff] }
 0x664   : > { %v5083_v28 = vmax.f32 %v5019_v42, 0.0  ;;  %v4509_v1 = vadd.f32 %v4396_v7, %v9146_v35  ;;  %v8266_v42 = vpop.f32.mrf.mxu0 }
 0x666   : > { %5147 = vst [vmem:[%s6591_s18 + $0x60] sm:$0xff] %v5083_v28  ;;  %v4577_v61 = vadd.f32 %v8016_v41, %v4509_v1  ;;  %4437 = vmatmul.bf16.gmra.mxu2 %v9147_v51  ;;  %v9152_v1 = vld [vmem:[#allocation129_spill] sm:$0xff] }
 0x667   : > { %v4815_v39 = vpop.f32.mrf.mxu3 }
 0x668   : > { %v4816_v30 = vadd.f32 %v8140_v25, %v4815_v39  ;;  %v4641_v57 = vmax.f32 %v4577_v61, 0.0 }
 0x669   : > { %v4398_v4 = vpop.f32.mrf.mxu2 }
 0x66a   : > { %v5020_v46 = vadd.f32 %v4956_v48, %v4816_v30  ;;  %v4399_v8 = vadd.f32 %v4398_v4, %v8096_v59  ;;  %v4689_v0 = vpack.c.bf16 %v4641_v57, %v4640_v24 }
 0x66c   : > { %v5084_v29 = vmax.f32 %v5020_v46, 0.0  ;;  %v4510_v2 = vadd.f32 %v4399_v8, %v9148_v60  ;;  %4857 = vmatmul.bf16.gmra.mxu3 %v4689_v0  ;;  %v8279_v0 = vpop.f32.mrf.mxu0  ;;  %v9153_v60 = vld [vmem:[#allocation123_spill] sm:$0xff] }
 0x66e   : > { %5148 = vst [vmem:[%s6591_s18 + $0x68] sm:$0xff] %v5084_v29  ;;  %v4578_v36 = vadd.f32 %v8016_v41, %v4510_v2 }
 0x66f   : > { %v4818_v44 = vpop.f32.mrf.mxu3 }
 0x670   : > { %v4819_v10 = vadd.f32 %v8140_v25, %v4818_v44  ;;  %v4642_v50 = vmax.f32 %v4578_v36, 0.0 }
 0x671   : > { %v4400_v21 = vpop.f32.mrf.mxu2 }
 0x672   : > { %v5021_v23 = vadd.f32 %v4957_v5, %v4819_v10  ;;  %v4401_v32 = vadd.f32 %v4400_v21, %v8105_v19  ;;  %v8258_v19 = vpop.f32.mrf.mxu1  ;;  %v4961_v5 = vld [vmem:[%s6591_s18 + $0x90] sm:$0xff] }
 0x674   : > { %v5085_v33 = vmax.f32 %v5021_v23, 0.0  ;;  %v4511_v59 = vadd.f32 %v4401_v32, %v9149_v56 }
 0x676   : > { %5149 = vst [vmem:[%s6591_s18 + $0x70] sm:$0xff] %v5085_v33  ;;  %v4579_v13 = vadd.f32 %v8016_v41, %v4511_v59  ;;  %4442 = vmatmul.bf16.gmra.mxu2 %v9150_v62  ;;  %v9154_v33 = vld [vmem:[#allocation86_spill] sm:$0xff]  ;;  %v8290_v59 = vpop.f32.mrf.mxu0  ;;  %v9155_v62 = vld [vmem:[#allocation121_spill] sm:$0xff] }
 0x677   : > { %v4820_v20 = vpop.f32.mrf.mxu3 }
 0x678   : > { %v4821_v54 = vadd.f32 %v8140_v25, %v4820_v20  ;;  %v4643_v15 = vmax.f32 %v4579_v13, 0.0 }
 0x679   : > { %v4403_v58 = vpop.f32.mrf.mxu2 }
 0x67a   : > { %v5022_v18 = vadd.f32 %v4958_v11, %v4821_v54  ;;  %v4404_v12 = vadd.f32 %v4403_v58, %v8109_v3  ;;  %v4690_v45 = vpack.c.bf16 %v4643_v15, %v4642_v50  ;;  %v8269_v28 = vpop.f32.mrf.mxu1  ;;  %v4962_v11 = vld [vmem:[%s6591_s18 + $0x98] sm:$0xff] }
 0x67c   : > { %v5086_v40 = vmax.f32 %v5022_v18, 0.0  ;;  %v4512_v49 = vadd.f32 %v4404_v12, %v9151_v38  ;;  %4862 = vmatmul.bf16.gmra.mxu3 %v4690_v45  ;;  %v9156_v38 = vld [vmem:[#allocation127_spill] sm:$0xff] }
 0x67e   : > { %5150 = vst [vmem:[%s6591_s18 + $0x78] sm:$0xff] %v5086_v40  ;;  %v4580_v3 = vadd.f32 %v8016_v41, %v4512_v49 }
 0x67f   : > { %v4823_v53 = vpop.f32.mrf.mxu3 }
 0x680   : > { %v4824_v63 = vadd.f32 %v8140_v25, %v4823_v53  ;;  %v4644_v24 = vmax.f32 %v4580_v3, 0.0 }
 0x681   : > { %v4405_v43 = vpop.f32.mrf.mxu2 }
 0x682   : > { %v5023_v7 = vadd.f32 %v4959_v52, %v4824_v63  ;;  %v4406_v16 = vadd.f32 %v4405_v43, %v8118_v34  ;;  %v4960_v34 = vld [vmem:[%s6591_s18 + $0x88] sm:$0xff]  ;;  %v8302_v63 = vpop.f32.mrf.mxu0 }
 0x684   : > { %v5087_v35 = vmax.f32 %v5023_v7, 0.0  ;;  %v4513_v61 = vadd.f32 %v4406_v16, %v9152_v1  ;;  %v4963_v7 = vld [vmem:[%s6591_s18 + $0xa0] sm:$0xff] }
 0x686   : > { %5151 = vst [vmem:[%s6591_s18 + $0x80] sm:$0xff] %v5087_v35  ;;  %v4581_v51 = vadd.f32 %v8016_v41, %v4513_v61  ;;  %4447 = vmatmul.bf16.gmra.mxu2 %v8967_v22  ;;  %v8282_v22 = vpop.f32.mrf.mxu1  ;;  %v9157_v61 = vld [vmem:[#allocation91_spill] sm:$0xff] }
 0x687   : > { %v4825_v39 = vpop.f32.mrf.mxu3 }
 0x688   : > { %v4826_v30 = vadd.f32 %v8140_v25, %v4825_v39  ;;  %v4645_v57 = vmax.f32 %v4581_v51, 0.0 }
 0x689   : > { %v4408_v48 = vpop.f32.mrf.mxu2 }
 0x68a   : > { %v5024_v4 = vadd.f32 %v4960_v34, %v4826_v30  ;;  %v4409_v46 = vadd.f32 %v4408_v48, %v8122_v31  ;;  %v4691_v8 = vpack.c.bf16 %v4645_v57, %v4644_v24  ;;  %v4964_v48 = vld [vmem:[%s6591_s18 + $0xa8] sm:$0xff] }
 0x68c   : > { %v5088_v29 = vmax.f32 %v5024_v4, 0.0  ;;  %v4514_v2 = vadd.f32 %v4409_v46, %v9153_v60  ;;  %4867 = vmatmul.bf16.gmra.mxu3 %v4691_v8  ;;  %v8318_v46 = vpop.f32.mrf.mxu0 }
 0x68e   : > { %5152 = vst [vmem:[%s6591_s18 + $0x88] sm:$0xff] %v5088_v29  ;;  %v4582_v32 = vadd.f32 %v8016_v41, %v4514_v2  ;;  %v8295_v20 = vpop.f32.mrf.mxu1 }
 0x68f   : > { %v4828_v44 = vpop.f32.mrf.mxu3 }
 0x690   : > { %v4829_v10 = vadd.f32 %v8140_v25, %v4828_v44  ;;  %v4646_v54 = vmax.f32 %v4582_v32, 0.0  ;;  %v9160_v32 = vld [vmem:[#allocation95_spill] sm:$0xff] }
 0x691   : > { %v4410_v21 = vpop.f32.mrf.mxu2 }
 0x692   : > { %v5025_v23 = vadd.f32 %v4961_v5, %v4829_v10  ;;  %v4411_v31 = vadd.f32 %v4410_v21, %v8133_v6  ;;  %v4252_v10 = vadd.f32 %v8269_v28, %v8266_v42  ;;  %v9158_v5 = vld [vmem:[#allocation16_spill] sm:$0xff] }
 0x694   : > { %v5089_v36 = vmax.f32 %v5025_v23, 0.0  ;;  %v4515_v56 = vadd.f32 %v4411_v31, %v9154_v33  ;;  %v9159_v31 = vld [vmem:[#allocation18_spill] sm:$0xff] }
 0x696   : > { %5153 = vst [vmem:[%s6591_s18 + $0x90] sm:$0xff] %v5089_v36  ;;  %v4583_v13 = vadd.f32 %v8016_v41, %v4515_v56  ;;  %4452 = vmatmul.bf16.gmra.mxu2 %v9155_v62  ;;  %v8305_v43 = vpop.f32.mrf.mxu1  ;;  %v3714_v36 = vadd.f32 %v9160_v32, %v9159_v31  ;;  %v9165_v32 = vld [vmem:[#allocation134_spill] sm:$0xff] }
 0x697   : > { %v4830_v50 = vpop.f32.mrf.mxu3 }
 0x698   : > { %v4831_v6 = vadd.f32 %v8140_v25, %v4830_v50  ;;  %v4647_v15 = vmax.f32 %v4583_v13, 0.0  ;;  %v8330_v13 = vpop.f32.mrf.mxu0 }
 0x699   : > { %v4413_v58 = vpop.f32.mrf.mxu2 }
 0x69a   : > { %v5026_v18 = vadd.f32 %v4962_v11, %v4831_v6  ;;  %v4414_v12 = vadd.f32 %v4413_v58, %v8144_v26  ;;  %v4692_v45 = vpack.c.bf16 %v4647_v15, %v4646_v54 }
 0x69c   : > { %v5090_v40 = vmax.f32 %v5026_v18, 0.0  ;;  %v4516_v49 = vadd.f32 %v4414_v12, %v9156_v38  ;;  %4872 = vmatmul.bf16.gmra.mxu3 %v4692_v45  ;;  %v4966_v18 = vld [vmem:[%s6591_s18 + $0xb8] sm:$0xff]  ;;  %v4255_v45 = vadd.f32 %v8282_v22, %v8279_v0  ;;  %v4967_v0 = vld [vmem:[%s6591_s18 + $0xc0] sm:$0xff] }
 0x69e   : > { %5154 = vst [vmem:[%s6591_s18 + $0x98] sm:$0xff] %v5090_v40  ;;  %v4584_v35 = vadd.f32 %v8016_v41, %v4516_v49  ;;  %v8320_v60 = vpop.f32.mrf.mxu1 }
 0x69f   : > { %v4833_v53 = vpop.f32.mrf.mxu3  ;;  %v4262_v31 = vadd.f32 %v8320_v60, %v8318_v46 }
 0x6a0   : > { %v4834_v52 = vadd.f32 %v8140_v25, %v4833_v53  ;;  %v4648_v30 = vmax.f32 %v4584_v35, 0.0  ;;  %v9162_v35 = vld [vmem:[#allocation133_spill] sm:$0xff] }
 0x6a1   : > { %v4415_v16 = vpop.f32.mrf.mxu2 }
 0x6a2   : > { %v5027_v3 = vadd.f32 %v4963_v7, %v4834_v52  ;;  %v4416_v26 = vadd.f32 %v4415_v16, %v8156_v47  ;;  %v4250_v47 = vadd.f32 %v8258_v19, %v8255_v37  ;;  %v4965_v37 = vld [vmem:[%s6591_s18 + $0xb0] sm:$0xff]  ;;  %v8342_v52 = vpop.f32.mrf.mxu0  ;;  %v4257_v7 = vadd.f32 %v8295_v20, %v8290_v59  ;;  %v9161_v16 = vld [vmem:[#allocation19_spill] sm:$0xff] }
 0x6a4   : > { %v5091_v1 = vmax.f32 %v5027_v3, 0.0  ;;  %v4517_v51 = vadd.f32 %v4416_v26, %v9157_v61 }
 0x6a6   : > { %5155 = vst [vmem:[%s6591_s18 + $0xa0] sm:$0xff] %v5091_v1  ;;  %v4585_v39 = vadd.f32 %v8016_v41, %v4517_v51  ;;  %4457 = vmatmul.bf16.gmra.mxu2 %v8979_v17  ;;  %v8333_v6 = vpop.f32.mrf.mxu1  ;;  %v9163_v1 = vld [vmem:[#allocation100_spill] sm:$0xff] }
 0x6a7   : > { %v4835_v24 = vpop.f32.mrf.mxu3  ;;  %v3719_v61 = vadd.f32 %v9163_v1, %v9162_v35  ;;  %v9168_v35 = vld [vmem:[#allocation104_spill] sm:$0xff] }
 0x6a8   : > { %v4836_v57 = vadd.f32 %v8140_v25, %v4835_v24  ;;  %v4649_v34 = vmax.f32 %v4585_v39, 0.0  ;;  %v8357_v24 = vld [vmem:[%s8588_s4] ss:$0 sm:$0xff] }
 0x6a9   : > { %v4418_v4 = vpop.f32.mrf.mxu2 }
 0x6aa   : > { %v5028_v8 = vadd.f32 %v4964_v48, %v4836_v57  ;;  %v4693_v29 = vpack.c.bf16 %v4649_v34, %v4648_v30  ;;  %v4419_v44 = vadd.f32 %v4418_v4, %v4250_v47  ;;  %v9164_v34 = vld [vmem:[#allocation132_spill] sm:$0xff]  ;;  %v8363_v4 = vpop.f32.mrf.mxu0 }
 0x6ac   : > { %v5092_v2 = vmax.f32 %v5028_v8, 0.0  ;;  %4877 = vmatmul.bf16.gmra.mxu3 %v4693_v29  ;;  %v4518_v21 = vadd.f32 %v4419_v44, %v9158_v5  ;;  %v4968_v44 = vld [vmem:[%s6591_s18 + $0xc8] sm:$0xff] }
 0x6ae   : > { %5156 = vst [vmem:[%s6591_s18 + $0xa8] sm:$0xff] %v5092_v2  ;;  %v4586_v62 = vadd.f32 %v8016_v41, %v4518_v21 }
 0x6af   : > { %v4838_v17 = vpop.f32.mrf.mxu3 }
 0x6b0   : > { %v4839_v23 = vadd.f32 %v8140_v25, %v4838_v17  ;;  %v4650_v15 = vmax.f32 %v4586_v62, 0.0 }
 0x6b1   : > { %v4420_v19 = vpop.f32.mrf.mxu2 }
 0x6b2   : > { %v5029_v33 = vadd.f32 %v4965_v37, %v4839_v23  ;;  %v4421_v56 = vadd.f32 %v4420_v19, %v4252_v10  ;;  %v4260_v10 = vadd.f32 %v8305_v43, %v8302_v63  ;;  %v4102_v43 = vpop.f32.mrf.mxu0 }
 0x6b4   : > { %v5093_v50 = vmax.f32 %v5029_v33, 0.0  ;;  %v4519_v54 = vadd.f32 %v4421_v56, %v3714_v36  ;;  %v4969_v56 = vld [vmem:[%s6591_s18 + $0xd0] sm:$0xff] }
 0x6b6   : > { %5157 = vst [vmem:[%s6591_s18 + $0xb0] sm:$0xff] %v5093_v50  ;;  %v4587_v42 = vadd.f32 %v8016_v41, %v4519_v54  ;;  %4462 = vmatmul.bf16.gmra.mxu2 %v8984_v55  ;;  %v8345_v55 = vpop.f32.mrf.mxu1  ;;  %v9166_v50 = vld [vmem:[#allocation22_spill] sm:$0xff]  ;;  %v9167_v54 = vld [vmem:[#allocation21_spill] sm:$0xff] }
 0x6b7   : > { %v4840_v28 = vpop.f32.mrf.mxu3  ;;  %v3724_v63 = vadd.f32 %v9167_v54, %v9166_v50  ;;  %v4973_v50 = vld [vmem:[%s6591_s18 + $0xf0] sm:$0xff] }
 0x6b8   : > { %v4651_v11 = vmax.f32 %v4587_v42, 0.0  ;;  %v4841_v58 = vadd.f32 %v8140_v25, %v4840_v28 }
 0x6b9   : > { %v4423_v12 = vpop.f32.mrf.mxu2 }
 0x6ba   : > { %v5030_v40 = vadd.f32 %v4966_v18, %v4841_v58  ;;  %v4694_v38 = vpack.c.bf16 %v4651_v11, %v4650_v15  ;;  %v4424_v53 = vadd.f32 %v4423_v12, %v4255_v45 }
 0x6bc   : > { %v5094_v49 = vmax.f32 %v5030_v40, 0.0  ;;  %4882 = vmatmul.bf16.gmra.mxu3 %v4694_v38  ;;  %v4520_v3 = vadd.f32 %v4424_v53, %v9161_v16  ;;  %v4970_v38 = vld [vmem:[%s6591_s18 + $0xd8] sm:$0xff]  ;;  %v4265_v53 = vadd.f32 %v8333_v6, %v8330_v13  ;;  %v4105_v16 = vpop.f32.mrf.mxu0 }
 0x6bd   : > { %v9169_v6 = vld [vmem:[#allocation135_spill] sm:$0xff] }
 0x6be   : > { %5158 = vst [vmem:[%s6591_s18 + $0xb8] sm:$0xff] %v5094_v49  ;;  %v4588_v30 = vadd.f32 %v8357_v24, %v4520_v3  ;;  %v8366_v2 = vpop.f32.mrf.mxu1 }
 0x6bf   : > { %v4843_v41 = vpop.f32.mrf.mxu3 }
 0x6c0   : > { %v4844_v26 = vadd.f32 %v8140_v25, %v4843_v41  ;;  %v4652_v47 = vmax.f32 %v4588_v30, 0.0 }
 0x6c1   : > { %v4425_v22 = vpop.f32.mrf.mxu2 }
 0x6c2   : > { %v5031_v51 = vadd.f32 %v4967_v0, %v4844_v26  ;;  %v4426_v39 = vadd.f32 %v4425_v22, %v4257_v7  ;;  %v4267_v22 = vadd.f32 %v8345_v55, %v8342_v52 }
 0x6c4   : > { %v5095_v59 = vmax.f32 %v5031_v51, 0.0  ;;  %v4521_v20 = vadd.f32 %v4426_v39, %v3719_v61  ;;  %v4971_v51 = vld [vmem:[%s6591_s18 + $0xe0] sm:$0xff]  ;;  %v3729_v39 = vadd.f32 %v9169_v6, %v7880_v27  ;;  %v9174_v6 = vld [vmem:[#allocation54_spill] sm:$0xff] }
 0x6c6   : > { %5159 = vst [vmem:[%s6591_s18 + $0xc0] sm:$0xff] %v5095_v59  ;;  %v4589_v57 = vadd.f32 %v8357_v24, %v4521_v20  ;;  %4467 = vmatmul.bf16.gmra.mxu2 %v9164_v34  ;;  %v4271_v15 = vpop.f32.mrf.mxu1 }
 0x6c7   : > { %v4845_v48 = vpop.f32.mrf.mxu3 }
 0x6c8   : > { %v4653_v8 = vmax.f32 %v4589_v57, 0.0  ;;  %v4846_v29 = vadd.f32 %v8140_v25, %v4845_v48  ;;  %v4107_v48 = vpop.f32.mrf.mxu0 }
 0x6c9   : > { %v4428_v17 = vpop.f32.mrf.mxu2 }
 0x6ca   : > { %v5032_v5 = vadd.f32 %v4968_v44, %v4846_v29  ;;  %v4695_v21 = vpack.c.bf16 %v4653_v8, %v4652_v47  ;;  %v4429_v37 = vadd.f32 %v4428_v17, %v4260_v10  ;;  %v4972_v17 = vld [vmem:[%s6591_s18 + $0xe8] sm:$0xff]  ;;  %v4270_v10 = vadd.f32 %v8366_v2, %v8363_v4  ;;  %v9172_v4 = vld [vmem:[#allocation24_spill] sm:$0xff] }
 0x6cc   : > { %v5096_v23 = vmax.f32 %v5032_v5, 0.0  ;;  %4887 = vmatmul.bf16.gmra.mxu3 %v4695_v21  ;;  %v4522_v36 = vadd.f32 %v4429_v37, %v9165_v32 }
 0x6ce   : > { %5160 = vst [vmem:[%s6591_s18 + $0xc8] sm:$0xff] %v5096_v23  ;;  %v4590_v11 = vadd.f32 %v8357_v24, %v4522_v36  ;;  %v4274_v0 = vpop.f32.mrf.mxu1  ;;  %v9170_v36 = vld [vmem:[#allocation136_spill] sm:$0xff] }
 0x6cf   : > { %v4848_v19 = vpop.f32.mrf.mxu3 }
 0x6d0   : > { %v4849_v33 = vadd.f32 %v8140_v25, %v4848_v19  ;;  %v4654_v12 = vmax.f32 %v4590_v11, 0.0  ;;  %v4110_v32 = vpop.f32.mrf.mxu0 }
 0x6d1   : > { %v4430_v62 = vpop.f32.mrf.mxu2 }
 0x6d2   : > { %v5033_v42 = vadd.f32 %v4969_v56, %v4849_v33  ;;  %v4431_v28 = vadd.f32 %v4430_v62, %v4262_v31  ;;  %v4272_v31 = vadd.f32 %v4271_v15, %v4102_v43 }
 0x6d4   : > { %v5097_v58 = vmax.f32 %v5033_v42, 0.0  ;;  %v4523_v18 = vadd.f32 %v4431_v28, %v3724_v63  ;;  %v9171_v63 = vld [vmem:[#allocation25_spill] sm:$0xff] }
 0x6d5   : > { %v3734_v2 = vadd.f32 %v9172_v4, %v9171_v63  ;;  %v9177_v4 = vld [vmem:[#allocation112_spill] sm:$0xff] }
 0x6d6   : > { %5161 = vst [vmem:[%s6591_s18 + $0xd0] sm:$0xff] %v5097_v58  ;;  %v4591_v46 = vadd.f32 %v8357_v24, %v4523_v18  ;;  %4472 = vmatmul.bf16.gmra.mxu2 %v7967_v9  ;;  %v4276_v55 = vpop.f32.mrf.mxu1 }
 0x6d7   : > { %v4850_v60 = vpop.f32.mrf.mxu3 }
 0x6d8   : > { %v4655_v45 = vmax.f32 %v4591_v46, 0.0  ;;  %v4851_v40 = vadd.f32 %v8140_v25, %v4850_v60 }
 0x6d9   : > { %v4433_v49 = vpop.f32.mrf.mxu2 }
 0x6da   : > { %v5034_v41 = vadd.f32 %v4970_v38, %v4851_v40  ;;  %v4696_v7 = vpack.c.bf16 %v4655_v45, %v4654_v12  ;;  %v4434_v26 = vadd.f32 %v4433_v49, %v4265_v53  ;;  %v4974_v45 = vld [vmem:[%s6591_s18 + $0xf8] sm:$0xff]  ;;  %v4275_v38 = vadd.f32 %v4274_v0, %v4105_v16  ;;  %v4112_v49 = vpop.f32.mrf.mxu0  ;;  %v9175_v16 = vld [vmem:[#allocation137_spill] sm:$0xff] }
 0x6db   : > { %v3739_v0 = vadd.f32 %v9175_v16, %v9174_v6  ;;  %v9181_v6 = vld [vmem:[#allocation59_spill] sm:$0xff] }
 0x6dc   : > { %v5098_v3 = vmax.f32 %v5034_v41, 0.0  ;;  %4892 = vmatmul.bf16.gmra.mxu3 %v4696_v7  ;;  %v4524_v1 = vadd.f32 %v4434_v26, %v9168_v35  ;;  %v9173_v35 = vld [vmem:[#allocation108_spill] sm:$0xff] }
 0x6de   : > { %5162 = vst [vmem:[%s6591_s18 + $0xd8] sm:$0xff] %v5098_v3  ;;  %v4592_v20 = vadd.f32 %v8357_v24, %v4524_v1  ;;  %v4279_v62 = vpop.f32.mrf.mxu1 }
 0x6df   : > { %v4853_v9 = vpop.f32.mrf.mxu3 }
 0x6e0   : > { %v4854_v61 = vadd.f32 %v8140_v25, %v4853_v9  ;;  %v4656_v8 = vmax.f32 %v4592_v20, 0.0 }
 0x6e1   : > { %v4435_v13 = vpop.f32.mrf.mxu2 }
 0x6e2   : > { %v5035_v30 = vadd.f32 %v4971_v51, %v4854_v61  ;;  %v4436_v59 = vadd.f32 %v4435_v13, %v4267_v22  ;;  %v4277_v22 = vadd.f32 %v4276_v55, %v4107_v48  ;;  %v4975_v51 = vld [vmem:[%s6591_s18 + $0x100] sm:$0xff] }
 0x6e4   : > { %v5099_v57 = vmax.f32 %v5035_v30, 0.0  ;;  %v4525_v34 = vadd.f32 %v4436_v59, %v3729_v39  ;;  %v4115_v59 = vpop.f32.mrf.mxu0 }
 0x6e6   : > { %5163 = vst [vmem:[%s6591_s18 + $0xe0] sm:$0xff] %v5099_v57  ;;  %v4593_v52 = vadd.f32 %v8357_v24, %v4525_v34  ;;  %v4281_v7 = vpop.f32.mrf.mxu1 }
 0x6e7   : > { %v4855_v47 = vpop.f32.mrf.mxu3 }
 0x6e8   : > { %v4657_v29 = vmax.f32 %v4593_v52, 0.0  ;;  %v4856_v44 = vadd.f32 %v8140_v25, %v4855_v47 }
 0x6e9   : > { %v4438_v27 = vpop.f32.mrf.mxu2 }
 0x6ea   : > { %v5036_v5 = vadd.f32 %v4972_v17, %v4856_v44  ;;  %v4697_v21 = vpack.c.bf16 %v4657_v29, %v4656_v8  ;;  %v4439_v37 = vadd.f32 %v4438_v27, %v4270_v10  ;;  %v4976_v44 = vld [vmem:[%s6591_s18 + $0x108] sm:$0xff]  ;;  %v4280_v27 = vadd.f32 %v4279_v62, %v4110_v32  ;;  %v9178_v32 = vld [vmem:[#allocation28_spill] sm:$0xff] }
 0x6eb   : > { %v3744_v62 = vadd.f32 %v9178_v32, %v9177_v4  ;;  %v9184_v4 = vld [vmem:[#allocation116_spill] sm:$0xff] }
 0x6ec   : > { %v5100_v23 = vmax.f32 %v5036_v5, 0.0  ;;  %4897 = vmatmul.bf16.gmra.mxu3 %v4697_v21  ;;  %v4526_v33 = vadd.f32 %v4439_v37, %v9170_v36  ;;  %v4117_v37 = vpop.f32.mrf.mxu0  ;;  %v4282_v36 = vadd.f32 %v4281_v7, %v4112_v49 }
 0x6ee   : > { %5164 = vst [vmem:[%s6591_s18 + $0xe8] sm:$0xff] %v5100_v23  ;;  %v4594_v11 = vadd.f32 %v8357_v24, %v4526_v33  ;;  %v4284_v52 = vpop.f32.mrf.mxu1  ;;  %v9176_v33 = vld [vmem:[#allocation27_spill] sm:$0xff] }
 0x6ef   : > { %v4858_v19 = vpop.f32.mrf.mxu3  ;;  %v4285_v49 = vadd.f32 %v4284_v52, %v4115_v59 }
 0x6f0   : > { %v4859_v56 = vadd.f32 %v8140_v25, %v4858_v19  ;;  %v4658_v46 = vmax.f32 %v4594_v11, 0.0 }
 0x6f1   : > { %v4440_v54 = vpop.f32.mrf.mxu2 }
 0x6f2   : > { %v5037_v42 = vadd.f32 %v4973_v50, %v4859_v56  ;;  %v4441_v28 = vadd.f32 %v4440_v54, %v4272_v31  ;;  %v4977_v54 = vld [vmem:[%s6591_s18 + $0x110] sm:$0xff] }
 0x6f4   : > { %v5101_v58 = vmax.f32 %v5037_v42, 0.0  ;;  %v4527_v18 = vadd.f32 %v4441_v28, %v3734_v2 }
 0x6f6   : > { %5165 = vst [vmem:[%s6591_s18 + $0xf0] sm:$0xff] %v5101_v58  ;;  %v4595_v43 = vadd.f32 %v8357_v24, %v4527_v18  ;;  %v4286_v19 = vpop.f32.mrf.mxu1 }
 0x6f7   : > { %v4860_v15 = vpop.f32.mrf.mxu3 }
 0x6f8   : > { %v4659_v60 = vmax.f32 %v4595_v43, 0.0  ;;  %v4861_v12 = vadd.f32 %v8140_v25, %v4860_v15  ;;  %v4120_v15 = vpop.f32.mrf.mxu0 }
 0x6f9   : > { %v4443_v40 = vpop.f32.mrf.mxu2 }
 0x6fa   : > { %v5038_v53 = vadd.f32 %v4974_v45, %v4861_v12  ;;  %v4698_v41 = vpack.c.bf16 %v4659_v60, %v4658_v46  ;;  %v4444_v26 = vadd.f32 %v4443_v40, %v4275_v38  ;;  %v4978_v40 = vld [vmem:[%s6591_s18 + $0x118] sm:$0xff] }
 0x6fc   : > { %v5102_v3 = vmax.f32 %v5038_v53, 0.0  ;;  %4902 = vmatmul.bf16.gmra.mxu3 %v4698_v41  ;;  %v4528_v1 = vadd.f32 %v4444_v26, %v9173_v35 }
 0x6fe   : > { %5166 = vst [vmem:[%s6591_s18 + $0xf8] sm:$0xff] %v5102_v3  ;;  %v4596_v20 = vadd.f32 %v8357_v24, %v4528_v1  ;;  %v4289_v45 = vpop.f32.mrf.mxu1 }
 0x6ff   : > { %v4863_v9 = vpop.f32.mrf.mxu3 }
 0x700   : > { %v4864_v61 = vadd.f32 %v8140_v25, %v4863_v9  ;;  %v4660_v47 = vmax.f32 %v4596_v20, 0.0  ;;  %v4287_v9 = vadd.f32 %v4286_v19, %v4117_v37 }
 0x701   : > { %v4445_v13 = vpop.f32.mrf.mxu2 }
 0x702   : > { %v5039_v39 = vadd.f32 %v4975_v51, %v4864_v61  ;;  %v4446_v30 = vadd.f32 %v4445_v13, %v4277_v22  ;;  %v9179_v22 = vld [vmem:[#allocation58_spill] sm:$0xff]  ;;  %v4979_v61 = vld [vmem:[%s6591_s18 + $0x120] sm:$0xff] }
 0x703   : > { %v9180_v13 = vld [vmem:[#allocation30_spill] sm:$0xff] }
 0x704   : > { %v5103_v57 = vmax.f32 %v5039_v39, 0.0  ;;  %v4529_v34 = vadd.f32 %v4446_v30, %v3739_v0  ;;  %v3749_v16 = vadd.f32 %v9181_v6, %v9180_v13  ;;  %v4122_v0 = vpop.f32.mrf.mxu0  ;;  %v9186_v6 = vld [vmem:[#allocation34_spill] sm:$0xff] }
 0x706   : > { %5167 = vst [vmem:[%s6591_s18 + $0x100] sm:$0xff] %v5103_v57  ;;  %v4597_v48 = vadd.f32 %v8357_v24, %v4529_v34  ;;  %v4291_v59 = vpop.f32.mrf.mxu1 }
 0x707   : > { %v4865_v55 = vpop.f32.mrf.mxu3 }
 0x708   : > { %v4661_v8 = vmax.f32 %v4597_v48, 0.0  ;;  %v4866_v29 = vadd.f32 %v8140_v25, %v4865_v55 }
 0x709   : > { %v4448_v17 = vpop.f32.mrf.mxu2 }
 0x70a   : > { %v5040_v10 = vadd.f32 %v4976_v44, %v4866_v29  ;;  %v4699_v5 = vpack.c.bf16 %v4661_v8, %v4660_v47  ;;  %v4449_v23 = vadd.f32 %v4448_v17, %v4280_v27  ;;  %v4980_v29 = vld [vmem:[%s6591_s18 + $0x128] sm:$0xff]  ;;  %v4290_v17 = vadd.f32 %v4289_v45, %v4120_v15  ;;  %v4982_v45 = vld [vmem:[%s6591_s18 + $0x138] sm:$0xff] }
 0x70c   : > { %v5104_v21 = vmax.f32 %v5040_v10, 0.0  ;;  %4907 = vmatmul.bf16.gmra.mxu3 %v4699_v5  ;;  %v4530_v56 = vadd.f32 %v4449_v23, %v9176_v33  ;;  %v4125_v5 = vpop.f32.mrf.mxu0 }
 0x70e   : > { %5168 = vst [vmem:[%s6591_s18 + $0x108] sm:$0xff] %v5104_v21  ;;  %v4598_v28 = vadd.f32 %v8357_v24, %v4530_v56  ;;  %v4294_v37 = vpop.f32.mrf.mxu1 }
 0x70f   : > { %v4868_v31 = vpop.f32.mrf.mxu3 }
 0x710   : > { %v4869_v50 = vadd.f32 %v8140_v25, %v4868_v31  ;;  %v4662_v46 = vmax.f32 %v4598_v28, 0.0  ;;  %v4292_v31 = vadd.f32 %v4291_v59, %v4122_v0 }
 0x711   : > { %v4450_v63 = vpop.f32.mrf.mxu2 }
 0x712   : > { %v5041_v2 = vadd.f32 %v4977_v54, %v4869_v50  ;;  %v4451_v42 = vadd.f32 %v4450_v63, %v4282_v36  ;;  %v9182_v36 = vld [vmem:[#allocation31_spill] sm:$0xff]  ;;  %v4981_v50 = vld [vmem:[%s6591_s18 + $0x130] sm:$0xff] }
 0x713   : > { %v9183_v63 = vld [vmem:[#allocation63_spill] sm:$0xff] }
 0x714   : > { %v5105_v11 = vmax.f32 %v5041_v2, 0.0  ;;  %v4531_v58 = vadd.f32 %v4451_v42, %v3744_v62  ;;  %v3754_v32 = vadd.f32 %v9184_v4, %v9183_v63  ;;  %v9190_v63 = vld [vmem:[#allocation68_spill] sm:$0xff] }
 0x716   : > { %5169 = vst [vmem:[%s6591_s18 + $0x110] sm:$0xff] %v5105_v11  ;;  %v4599_v18 = vadd.f32 %v8357_v24, %v4531_v58  ;;  %v4127_v58 = vpop.f32.mrf.mxu0 }
 0x717   : > { %v4870_v43 = vpop.f32.mrf.mxu3 }
 0x718   : > { %v4663_v60 = vmax.f32 %v4599_v18, 0.0  ;;  %v4871_v12 = vadd.f32 %v8140_v25, %v4870_v43  ;;  %v8440_v25 = vld [vmem:[%s8590_s6] ss:$0 sm:$0xff]  ;;  %v4296_v43 = vpop.f32.mrf.mxu1 }
 0x719   : > { %v4453_v38 = vpop.f32.mrf.mxu2 }
 0x71a   : > { %v5042_v53 = vadd.f32 %v4978_v40, %v4871_v12  ;;  %v4700_v41 = vpack.c.bf16 %v4663_v60, %v4662_v46  ;;  %v4454_v3 = vadd.f32 %v4453_v38, %v4285_v49  ;;  %v4295_v38 = vadd.f32 %v4294_v37, %v4125_v5 }
 0x71c   : > { %v5106_v7 = vmax.f32 %v5042_v53, 0.0  ;;  %4912 = vmatmul.bf16.gmra.mxu3 %v4700_v41  ;;  %v4532_v35 = vadd.f32 %v4454_v3, %v9179_v22  ;;  %v9185_v22 = vld [vmem:[#allocation64_spill] sm:$0xff] }
 0x71e   : > { %5170 = vst [vmem:[%s6591_s18 + $0x118] sm:$0xff] %v5106_v7  ;;  %v4600_v20 = vadd.f32 %v8357_v24, %v4532_v35 }
 0x71f   : > { %v4873_v26 = vpop.f32.mrf.mxu3 }
 0x720   : > { %v4874_v1 = vadd.f32 %v8440_v25, %v4873_v26  ;;  %v4664_v55 = vmax.f32 %v4600_v20, 0.0  ;;  %v4297_v26 = vadd.f32 %v4296_v43, %v4127_v58 }
 0x721   : > { %v4455_v51 = vpop.f32.mrf.mxu2 }
 0x722   : > { %v5043_v39 = vadd.f32 %v4979_v61, %v4874_v1  ;;  %v4456_v30 = vadd.f32 %v4455_v51, %v4287_v9  ;;  %v4130_v9 = vpop.f32.mrf.mxu0  ;;  %v4299_v61 = vpop.f32.mrf.mxu1  ;;  %v4983_v51 = vld [vmem:[%s6591_s18 + $0x140] sm:$0xff] }
 0x724   : > { %v5107_v57 = vmax.f32 %v5043_v39, 0.0  ;;  %v4533_v34 = vadd.f32 %v4456_v30, %v3749_v16  ;;  %v9187_v16 = vld [vmem:[#allocation33_spill] sm:$0xff] }
 0x725   : > { %v3759_v0 = vadd.f32 %v9187_v16, %v9186_v6 }
 0x726   : > { %5171 = vst [vmem:[%s6591_s18 + $0x120] sm:$0xff] %v5107_v57  ;;  %v4601_v52 = vadd.f32 %v8357_v24, %v4533_v34 }
 0x727   : > { %v4875_v48 = vpop.f32.mrf.mxu3 }
 0x728   : > { %v4665_v47 = vmax.f32 %v4601_v52, 0.0  ;;  %v4876_v8 = vadd.f32 %v8440_v25, %v4875_v48 }
 0x729   : > { %v4458_v44 = vpop.f32.mrf.mxu2 }
 0x72a   : > { %v5044_v27 = vadd.f32 %v4980_v29, %v4876_v8  ;;  %v4701_v10 = vpack.c.bf16 %v4665_v47, %v4664_v55  ;;  %v4459_v23 = vadd.f32 %v4458_v44, %v4290_v17  ;;  %v4984_v8 = vld [vmem:[%s6591_s18 + $0x148] sm:$0xff]  ;;  %v4300_v44 = vadd.f32 %v4299_v61, %v4130_v9  ;;  %v4301_v5 = vpop.f32.mrf.mxu1  ;;  %v4987_v61 = vld [vmem:[%s6591_s18 + $0x160] sm:$0xff] }
 0x72c   : > { %v5108_v21 = vmax.f32 %v5044_v27, 0.0  ;;  %4917 = vmatmul.bf16.gmra.mxu3 %v4701_v10  ;;  %v4534_v33 = vadd.f32 %v4459_v23, %v9182_v36  ;;  %v4132_v10 = vpop.f32.mrf.mxu0 }
 0x72e   : > { %5172 = vst [vmem:[%s6591_s18 + $0x128] sm:$0xff] %v5108_v21  ;;  %v4602_v42 = vadd.f32 %v8357_v24, %v4534_v33 }
 0x72f   : > { %v4878_v19 = vpop.f32.mrf.mxu3 }
 0x730   : > { %v4879_v56 = vadd.f32 %v8440_v25, %v4878_v19  ;;  %v4666_v46 = vmax.f32 %v4602_v42, 0.0  ;;  %v4302_v19 = vadd.f32 %v4301_v5, %v4132_v10 }
 0x731   : > { %v4460_v54 = vpop.f32.mrf.mxu2 }
 0x732   : > { %v5045_v62 = vadd.f32 %v4981_v50, %v4879_v56  ;;  %v4461_v2 = vadd.f32 %v4460_v54, %v4292_v31  ;;  %v9188_v31 = vld [vmem:[#allocation120_spill] sm:$0xff]  ;;  %v4985_v56 = vld [vmem:[%s6591_s18 + $0x150] sm:$0xff]  ;;  %v9189_v54 = vld [vmem:[#allocation67_spill] sm:$0xff]  ;;  %v4304_v42 = vpop.f32.mrf.mxu1 }
 0x733   : > { %v3764_v4 = vadd.f32 %v9190_v63, %v9189_v54  ;;  %v4992_v63 = vld [vmem:[%s6591_s18 + $0x188] sm:$0xff] }
 0x734   : > { %v5109_v28 = vmax.f32 %v5045_v62, 0.0  ;;  %v4535_v11 = vadd.f32 %v4461_v2, %v3754_v32  ;;  %v4135_v2 = vpop.f32.mrf.mxu0 }
 0x736   : > { %5173 = vst [vmem:[%s6591_s18 + $0x130] sm:$0xff] %v5109_v28  ;;  %v4603_v18 = vadd.f32 %v8357_v24, %v4535_v11 }
 0x737   : > { %v4880_v15 = vpop.f32.mrf.mxu3 }
 0x738   : > { %v4667_v60 = vmax.f32 %v4603_v18, 0.0  ;;  %v4881_v12 = vadd.f32 %v8440_v25, %v4880_v15 }
 0x739   : > { %v4463_v40 = vpop.f32.mrf.mxu2 }
 0x73a   : > { %v5046_v49 = vadd.f32 %v4982_v45, %v4881_v12  ;;  %v4702_v53 = vpack.c.bf16 %v4667_v60, %v4666_v46  ;;  %v4464_v7 = vadd.f32 %v4463_v40, %v4295_v38  ;;  %v4305_v46 = vadd.f32 %v4304_v42, %v4135_v2  ;;  %v4986_v45 = vld [vmem:[%s6591_s18 + $0x158] sm:$0xff]  ;;  %v4993_v42 = vld [vmem:[%s6591_s18 + $0x190] sm:$0xff] }
 0x73c   : > { %v5110_v41 = vmax.f32 %v5046_v49, 0.0  ;;  %4922 = vmatmul.bf16.gmra.mxu3 %v4702_v53  ;;  %v4536_v35 = vadd.f32 %v4464_v7, %v9185_v22  ;;  %v4137_v7 = vpop.f32.mrf.mxu0  ;;  %v9191_v22 = vld [vmem:[#allocation36_spill] sm:$0xff] }
 0x73e   : > { %5174 = vst [vmem:[%s6591_s18 + $0x138] sm:$0xff] %v5110_v41  ;;  %v4604_v59 = vadd.f32 %v8357_v24, %v4536_v35 }
 0x73f   : > { %v4883_v3 = vpop.f32.mrf.mxu3 }
 0x740   : > { %v4884_v1 = vadd.f32 %v8440_v25, %v4883_v3  ;;  %v4668_v48 = vmax.f32 %v4604_v59, 0.0  ;;  %v4306_v3 = vpop.f32.mrf.mxu1 }
 0x741   : > { %v4465_v13 = vpop.f32.mrf.mxu2  ;;  %v4307_v9 = vadd.f32 %v4306_v3, %v4137_v7 }
 0x742   : > { %v5047_v39 = vadd.f32 %v4983_v51, %v4884_v1  ;;  %v4466_v30 = vadd.f32 %v4465_v13, %v4297_v26  ;;  %v9192_v13 = vld [vmem:[#allocation37_spill] sm:$0xff] }
 0x743   : > { %v3769_v6 = vadd.f32 %v8131_v14, %v9192_v13  ;;  %v4998_v13 = vld [vmem:[%s6591_s18 + $0x1b8] sm:$0xff] }
 0x744   : > { %v5111_v20 = vmax.f32 %v5047_v39, 0.0  ;;  %v4537_v57 = vadd.f32 %v4466_v30, %v3759_v0 }
 0x746   : > { %5175 = vst [vmem:[%s6591_s18 + $0x140] sm:$0xff] %v5111_v20  ;;  %v4605_v34 = vadd.f32 %v8357_v24, %v4537_v57 }
 0x747   : > { %v4885_v52 = vpop.f32.mrf.mxu3 }
 0x748   : > { %v4669_v55 = vmax.f32 %v4605_v34, 0.0  ;;  %v4886_v47 = vadd.f32 %v8440_v25, %v4885_v52 }
 0x749   : > { %v4468_v29 = vpop.f32.mrf.mxu2 }
 0x74a   : > { %v5048_v17 = vadd.f32 %v4984_v8, %v4886_v47  ;;  %v4703_v27 = vpack.c.bf16 %v4669_v55, %v4668_v48  ;;  %v4469_v23 = vadd.f32 %v4468_v29, %v4300_v44  ;;  %v4988_v55 = vld [vmem:[%s6591_s18 + $0x168] sm:$0xff] }
 0x74c   : > { %v5112_v21 = vmax.f32 %v5048_v17, 0.0  ;;  %4927 = vmatmul.bf16.gmra.mxu3 %v4703_v27  ;;  %v4538_v36 = vadd.f32 %v4469_v23, %v9188_v31 }
 0x74e   : > { %5176 = vst [vmem:[%s6591_s18 + $0x148] sm:$0xff] %v5112_v21  ;;  %v4606_v28 = vadd.f32 %v8357_v24, %v4538_v36  ;;  %v4990_v21 = vld [vmem:[%s6591_s18 + $0x178] sm:$0xff]  ;;  %v4991_v36 = vld [vmem:[%s6591_s18 + $0x180] sm:$0xff] }
 0x74f   : > { %v4888_v37 = vpop.f32.mrf.mxu3 }
 0x750   : > { %v4889_v33 = vadd.f32 %v8440_v25, %v4888_v37  ;;  %v4670_v15 = vmax.f32 %v4606_v28, 0.0 }
 0x751   : > { %v4470_v50 = vpop.f32.mrf.mxu2 }
 0x752   : > { %v5049_v32 = vadd.f32 %v4985_v56, %v4889_v33  ;;  %v4471_v62 = vadd.f32 %v4470_v50, %v4302_v19 }
 0x754   : > { %v5113_v11 = vmax.f32 %v5049_v32, 0.0  ;;  %v4539_v58 = vadd.f32 %v4471_v62, %v3764_v4 }
 0x756   : > { %5177 = vst [vmem:[%s6591_s18 + $0x150] sm:$0xff] %v5113_v11  ;;  %v4607_v18 = vadd.f32 %v8357_v24, %v4539_v58 }
 0x757   : > { %v4890_v43 = vpop.f32.mrf.mxu3 }
 0x758   : > { %v4671_v60 = vmax.f32 %v4607_v18, 0.0  ;;  %v4891_v12 = vadd.f32 %v8440_v25, %v4890_v43  ;;  %v4994_v43 = vld [vmem:[%s6591_s18 + $0x198] sm:$0xff] }
 0x759   : > { %v4473_v40 = vpop.f32.mrf.mxu2 }
 0x75a   : > { %v5050_v38 = vadd.f32 %v4986_v45, %v4891_v12  ;;  %v4704_v49 = vpack.c.bf16 %v4671_v60, %v4670_v15  ;;  %v4474_v41 = vadd.f32 %v4473_v40, %v4305_v46  ;;  %v4995_v45 = vld [vmem:[%s6591_s18 + $0x1a0] sm:$0xff] }
 0x75c   : > { %v5114_v53 = vmax.f32 %v5050_v38, 0.0  ;;  %4932 = vmatmul.bf16.gmra.mxu3 %v4704_v49  ;;  %v4540_v35 = vadd.f32 %v4474_v41, %v9191_v22  ;;  %v4996_v41 = vld [vmem:[%s6591_s18 + $0x1a8] sm:$0xff]  ;;  %v4997_v22 = vld [vmem:[%s6591_s18 + $0x1b0] sm:$0xff] }
 0x75e   : > { %5178 = vst [vmem:[%s6591_s18 + $0x158] sm:$0xff] %v5114_v53  ;;  %v4608_v39 = vadd.f32 %v8357_v24, %v4540_v35 }
 0x75f   : > { %v4893_v26 = vpop.f32.mrf.mxu3 }
 0x760   : > { %v4894_v1 = vadd.f32 %v8440_v25, %v4893_v26  ;;  %v4672_v34 = vmax.f32 %v4608_v39, 0.0 }
 0x761   : > { %v4475_v51 = vpop.f32.mrf.mxu2 }
 0x762   : > { %v5051_v16 = vadd.f32 %v4987_v61, %v4894_v1  ;;  %v4476_v0 = vadd.f32 %v4475_v51, %v4307_v9 }
 0x764   : > { %v5115_v30 = vmax.f32 %v5051_v16, 0.0  ;;  %v4541_v59 = vadd.f32 %v4476_v0, %v3769_v6 }
 0x766   : > { %5179 = vst [vmem:[%s6591_s18 + $0x160] sm:$0xff] %v5115_v30  ;;  %v4609_v20 = vadd.f32 %v8357_v24, %v4541_v59  ;;  %v4989_v24 = vld [vmem:[%s6591_s18 + $0x170] sm:$0xff]  ;;  %v4999_v30 = vld [vmem:[%s6591_s18 + $0x1c0] sm:$0xff] }
 0x767   : > { %v4895_v57 = vpop.f32.mrf.mxu3 }
 0x768   : > { %v4673_v52 = vmax.f32 %v4609_v20, 0.0  ;;  %v4896_v48 = vadd.f32 %v8440_v25, %v4895_v57 }
 0x76a   : > { %v5052_v14 = vadd.f32 %v4988_v55, %v4896_v48  ;;  %v4705_v47 = vpack.c.bf16 %v4673_v52, %v4672_v34  ;;  %v5000_v52 = vld [vmem:[%s6591_s18 + $0x1c8] sm:$0xff] }
 0x76c   : > { %v5116_v8 = vmax.f32 %v5052_v14, 0.0  ;;  %4937 = vmatmul.bf16.gmra.mxu3 %v4705_v47 }
 0x76e   : > { %5180 = vst [vmem:[%s6591_s18 + $0x168] sm:$0xff] %v5116_v8  ;;  %v5001_v8 = vld [vmem:[%s6591_s18 + $0x1d0] sm:$0xff] }
 0x76f   : > { %v4898_v29 = vpop.f32.mrf.mxu3 }
 0x770   : > { %v4899_v44 = vadd.f32 %v8440_v25, %v4898_v29 }
 0x772   : > { %v5053_v17 = vadd.f32 %v4989_v24, %v4899_v44 }
 0x774   : > { %v5117_v27 = vmax.f32 %v5053_v17, 0.0 }
 0x776   : > { %5181 = vst [vmem:[%s6591_s18 + $0x170] sm:$0xff] %v5117_v27  ;;  %v5002_v27 = vld [vmem:[%s6591_s18 + $0x1d8] sm:$0xff] }
 0x777   : > { %v4900_v10 = vpop.f32.mrf.mxu3 }
 0x778   : > { %v4901_v5 = vadd.f32 %v8440_v25, %v4900_v10 }
 0x77a   : > { %v5054_v23 = vadd.f32 %v4990_v21, %v4901_v5 }
 0x77c   : > { %v5118_v37 = vmax.f32 %v5054_v23, 0.0 }
 0x77e   : > { %5182 = vst [vmem:[%s6591_s18 + $0x178] sm:$0xff] %v5118_v37  ;;  %v5003_v37 = vld [vmem:[%s6591_s18 + $0x1e0] sm:$0xff] }
 0x77f   : > { %v4903_v19 = vpop.f32.mrf.mxu3 }
 0x780   : > { %v4904_v31 = vadd.f32 %v8440_v25, %v4903_v19 }
 0x782   : > { %v5055_v33 = vadd.f32 %v4991_v36, %v4904_v31 }
 0x784   : > { %v5119_v56 = vmax.f32 %v5055_v33, 0.0 }
 0x786   : > { %5183 = vst [vmem:[%s6591_s18 + $0x180] sm:$0xff] %v5119_v56  ;;  %v5004_v56 = vld [vmem:[%s6591_s18 + $0x1e8] sm:$0xff] }
 0x787   : > { %v4905_v50 = vpop.f32.mrf.mxu3 }
 0x788   : > { %v4906_v54 = vadd.f32 %v8440_v25, %v4905_v50 }
 0x78a   : > { %v5056_v4 = vadd.f32 %v4992_v63, %v4906_v54 }
 0x78c   : > { %v5120_v32 = vmax.f32 %v5056_v4, 0.0 }
 0x78e   : > { %5184 = vst [vmem:[%s6591_s18 + $0x188] sm:$0xff] %v5120_v32  ;;  %v5005_v32 = vld [vmem:[%s6591_s18 + $0x1f0] sm:$0xff] }
 0x78f   : > { %v4908_v62 = vpop.f32.mrf.mxu3 }
 0x790   : > { %v4909_v2 = vadd.f32 %v8440_v25, %v4908_v62 }
 0x792   : > { %v5057_v28 = vadd.f32 %v4993_v42, %v4909_v2 }
 0x794   : > { %v5121_v11 = vmax.f32 %v5057_v28, 0.0 }
 0x796   : > { %5185 = vst [vmem:[%s6591_s18 + $0x190] sm:$0xff] %v5121_v11  ;;  %v5006_v11 = vld [vmem:[%s6591_s18 + $0x1f8] sm:$0xff] }
 0x797   : > { %v4910_v58 = vpop.f32.mrf.mxu3 }
 0x798   : > { %v4911_v18 = vadd.f32 %v8440_v25, %v4910_v58 }
 0x79a   : > { %v5058_v15 = vadd.f32 %v4994_v43, %v4911_v18 }
 0x79c   : > { %v5122_v46 = vmax.f32 %v5058_v15, 0.0 }
 0x79e   : > { %5186 = vst [vmem:[%s6591_s18 + $0x198] sm:$0xff] %v5122_v46 }
 0x79f   : > { %v4913_v60 = vpop.f32.mrf.mxu3 }
 0x7a0   : > { %v4914_v12 = vadd.f32 %v8440_v25, %v4913_v60 }
 0x7a2   : > { %v5059_v40 = vadd.f32 %v4995_v45, %v4914_v12 }
 0x7a4   : > { %v5123_v38 = vmax.f32 %v5059_v40, 0.0 }
 0x7a6   : > { %5187 = vst [vmem:[%s6591_s18 + $0x1a0] sm:$0xff] %v5123_v38 }
 0x7a7   : > { %v4915_v49 = vpop.f32.mrf.mxu3 }
 0x7a8   : > { %v4916_v53 = vadd.f32 %v8440_v25, %v4915_v49 }
 0x7aa   : > { %v5060_v7 = vadd.f32 %v4996_v41, %v4916_v53 }
 0x7ac   : > { %v5124_v3 = vmax.f32 %v5060_v7, 0.0 }
 0x7ae   : > { %5188 = vst [vmem:[%s6591_s18 + $0x1a8] sm:$0xff] %v5124_v3 }
 0x7af   : > { %v4918_v26 = vpop.f32.mrf.mxu3 }
 0x7b0   : > { %v4919_v9 = vadd.f32 %v8440_v25, %v4918_v26 }
 0x7b2   : > { %v5061_v35 = vadd.f32 %v4997_v22, %v4919_v9 }
 0x7b4   : > { %v5125_v1 = vmax.f32 %v5061_v35, 0.0 }
 0x7b6   : > { %5189 = vst [vmem:[%s6591_s18 + $0x1b0] sm:$0xff] %v5125_v1 }
 0x7b7   : > { %v4920_v61 = vpop.f32.mrf.mxu3 }
 0x7b8   : > { %v4921_v51 = vadd.f32 %v8440_v25, %v4920_v61 }
 0x7ba   : > { %v5062_v6 = vadd.f32 %v4998_v13, %v4921_v51 }
 0x7bc   : > { %v5126_v16 = vmax.f32 %v5062_v6, 0.0 }
 0x7be   : > { %5190 = vst [vmem:[%s6591_s18 + $0x1b8] sm:$0xff] %v5126_v16 }
 0x7bf   : > { %v4923_v0 = vpop.f32.mrf.mxu3 }
 0x7c0   : > { %v4924_v39 = vadd.f32 %v8440_v25, %v4923_v0 }
 0x7c2   : > { %v5063_v59 = vadd.f32 %v4999_v30, %v4924_v39 }
 0x7c4   : > { %v5127_v20 = vmax.f32 %v5063_v59, 0.0 }
 0x7c6   : > { %5191 = vst [vmem:[%s6591_s18 + $0x1c0] sm:$0xff] %v5127_v20 }
 0x7c7   : > { %v4925_v57 = vpop.f32.mrf.mxu3 }
 0x7c8   : > { %v4926_v34 = vadd.f32 %v8440_v25, %v4925_v57 }
 0x7ca   : > { %v5064_v48 = vadd.f32 %v5000_v52, %v4926_v34 }
 0x7cc   : > { %v5128_v55 = vmax.f32 %v5064_v48, 0.0 }
 0x7ce   : > { %5192 = vst [vmem:[%s6591_s18 + $0x1c8] sm:$0xff] %v5128_v55 }
 0x7cf   : > { %v4928_v14 = vpop.f32.mrf.mxu3 }
 0x7d0   : > { %v4929_v47 = vadd.f32 %v8440_v25, %v4928_v14 }
 0x7d2   : > { %v5065_v29 = vadd.f32 %v5001_v8, %v4929_v47 }
 0x7d4   : > { %v5129_v44 = vmax.f32 %v5065_v29, 0.0 }
 0x7d6   : > { %5193 = vst [vmem:[%s6591_s18 + $0x1d0] sm:$0xff] %v5129_v44 }
 0x7d7   : > { %v4930_v24 = vpop.f32.mrf.mxu3 }
 0x7d8   : > { %v4931_v17 = vadd.f32 %v8440_v25, %v4930_v24 }
 0x7da   : > { %v5066_v10 = vadd.f32 %v5002_v27, %v4931_v17 }
 0x7dc   : > { %v5130_v5 = vmax.f32 %v5066_v10, 0.0 }
 0x7de   : > { %5194 = vst [vmem:[%s6591_s18 + $0x1d8] sm:$0xff] %v5130_v5 }
 0x7df   : > { %v4933_v21 = vpop.f32.mrf.mxu3 }
 0x7e0   : > { %v4934_v23 = vadd.f32 %v8440_v25, %v4933_v21 }
 0x7e2   : > { %v5067_v19 = vadd.f32 %v5003_v37, %v4934_v23 }
 0x7e4   : > { %v5131_v31 = vmax.f32 %v5067_v19, 0.0 }
 0x7e6   : > { %5195 = vst [vmem:[%s6591_s18 + $0x1e0] sm:$0xff] %v5131_v31 }
 0x7e7   : > { %v4935_v36 = vpop.f32.mrf.mxu3 }
 0x7e8   : > { %v4936_v33 = vadd.f32 %v8440_v25, %v4935_v36 }
 0x7ea   : > { %v5068_v50 = vadd.f32 %v5004_v56, %v4936_v33 }
 0x7ec   : > { %v5132_v54 = vmax.f32 %v5068_v50, 0.0 }
 0x7ee   : > { %5196 = vst [vmem:[%s6591_s18 + $0x1e8] sm:$0xff] %v5132_v54 }
 0x7ef   : > { %v4938_v63 = vpop.f32.mrf.mxu3 }
 0x7f0   : > { %v4939_v4 = vadd.f32 %v8440_v25, %v4938_v63 }
 0x7f2   : > { %v5069_v62 = vadd.f32 %v5005_v32, %v4939_v4 }
 0x7f4   : > { %v5133_v2 = vmax.f32 %v5069_v62, 0.0 }
 0x7f6   : > { %5197 = vst [vmem:[%s6591_s18 + $0x1f0] sm:$0xff] %v5133_v2 }
 0x7f7   : > { %v4940_v42 = vpop.f32.mrf.mxu3 }
 0x7f8   : > { %v4941_v28 = vadd.f32 %v8440_v25, %v4940_v42 }
 0x7fa   : > { %v5070_v58 = vadd.f32 %v5006_v11, %v4941_v28 }
 0x7fc   : > { %v5134_v18 = vmax.f32 %v5070_v58, 0.0 }
 0x7fe   : > { %5198 = vst [vmem:[%s6591_s18 + $0x1f8] sm:$0xff] %v5134_v18 }
 0x7ff   : > { %6298 = shalt.err (!%p6295_p10)
}
 0x800   : > { %s6354_s24 = smov 128   ;;  %s6355_s18 = smov 8  }
 0x801   : > { %6037 = dma.vmem_to_hbm [thread:$0]  (%p6502_p3), %s5214_s25, 8192, %s5216_s1, %s5200_s15, %s6354_s24, %s6354_s24, %s6355_s18  }
 0x802 PF: > { %s5230_s23 = sand.u32 1, %s6333_s30   ;;  %p9193_p12 = scmp.ge.s32.totalorder %s6345_s12, 2 }
 0x803   : > { %s5231_s26 = scalar_lea.sflag [#allocation4], %s5230_s23 }
 0x804   : > { %p6057_p13 = pnand %p9193_p12, %p6441_p6 }
 0x806   : > { %p6058_p0 = pneg %p6057_p13 }
 0x808   : > { %6328 = dma.done.wait (%p6058_p0), %s5231_s26, 8192  }
 0x809   : > { %6330 = vsyncadd (%p6058_p0), %s5231_s26, 4294959104  ;;  %p24_p5 = scmp.ge.s32.totalorder %s6492_s14, 4   ;;  %s9194_s30 = smov %s6337_s10 }
 0x80a   : > { %s9195_s10 = smov %s6341_s11  ;;  %s9196_s11 = smov %s6508_s22 }
 0x80b   : > { %s9197_s12 = smov %s6492_s14  ;;  %26 = sbr.rel (!%p24_p5) target bundleno = 11 (0xb), region = 119 }
 0x810   :  { %5237 = vsyncpa [#allocation3], 1 }
 0x811   :  { %5239 = vsyncpa [#allocation3 + $0x1], 1 }
 0x812   :  { %5240 = vsyncpa [#allocation6], 1 }
 0x813   :  { %5241 = vsyncpa [#allocation9], 1 }
 0x814   :  { %5242 = vsyncpa [#allocation4], 1 }
 0x815   :  { %5244 = vsyncpa [#allocation4 + $0x1], 1 }

</bundles_post_ra>
